<compile_context>
chip_gen: v5e
topology: v5e:2x2
jax: 0.10.0
libtpu: 0.0.40
codegen_flags: <defaults>
</compile_context>

<pallas_src>
import jax
import jax.numpy as jnp
from jax.experimental import pallas as pl
from jax.experimental.pallas import tpu as pltpu

LANE = 128
SUBLANE = 8
_WOFF = 8  # sublane-aligned left zero border of the padded image scratch


def _round_up(x, m):
    return (x + m - 1) // m * m


def _pick_row_tile(H, W, target_m=256):
    """Smallest divisor of H whose row tile fills the MXU M dim (~256 rows)."""
    for th in range(1, H + 1):
        if H % th == 0 and th * W >= target_m:
            return th
    return H


def _pick_vmem_limit():
    """Per-generation VMEM budget: ~60% of physical capacity, capped at 96 MiB."""
    cap = 64 * 1024 * 1024
    try:
        cap = pltpu.get_tpu_info().vmem_capacity_bytes
    except Exception:
        pass  # fall back to the conservative 64 MiB assumption (v7x-sized)
    return int(min(cap * 6 // 10, 96 * 1024 * 1024))


# -----------------------------------------------------------------------------
# Fused kernel: conv3x3+ReLU (stand-in backbone stage) + global-avg-pool + Linear
# grid = (batch, H row-tiles)
# -----------------------------------------------------------------------------
def fused_backbone_kernel(x_ref, w_ref, bconv_ref, wcls_ref, bcls_ref,
                          feat_ref, logits_ref,
                          xp_scr, pool_scr):
    # x_ref:      [1, H, W, Cin]       one image (f32, DMA'd once per batch element)
    # w_ref:      [K128, CPAD]         im2col conv weight (K = round_up(9*Cin,128)), bf16
    # bconv_ref:  [1, CPAD]            conv bias, f32, zero-padded
    # wcls_ref:   [CPAD, NCPAD]        classifier weight, bf16, zero-padded
    # bcls_ref:   [1, NCPAD]           classifier bias, f32
    # feat_ref:   [1, TH, W, CPAD]     lane-dense feature row-tile (output)
    # logits_ref: [1, 1, NCPAD]        lane-dense logits for this image (output)
    # xp_scr:     [H+2, WPAD, Cin]     zero-bordered bf16 image built in-kernel
    # pool_scr:   [1, CPAD]            running global sum of features (f32)
    t = pl.program_id(1)
    n_t = pl.num_programs(1)

    _, H, W, Cin = x_ref.shape
    _, TH, _, CPAD = feat_ref.shape
    _, WPAD, _ = xp_scr.shape
    K128 = w_ref.shape[0]
    K9 = 9 * Cin

    # ---- new image: border-only zeroing + single f32->bf16 image copy --------
    @pl.when(t == 0)
    def _init():
        dt = xp_scr.dtype
        # Only the halo border needs zeros; the interior is fully overwritten.
        xp_scr[0:1, :, :] = jnp.zeros((1, WPAD, Cin), dt)                    # top row
        xp_scr[H + 1:H + 2, :, :] = jnp.zeros((1, WPAD, Cin), dt)            # bottom row
        xp_scr[:, 0:_WOFF, :] = jnp.zeros((H + 2, _WOFF, Cin), dt)           # left cols
        xp_scr[:, _WOFF + W:WPAD, :] = jnp.zeros((H + 2, WPAD - _WOFF - W, Cin), dt)
        # One cast of the whole image (bf16 scratch -> no per-tap casts later).
        xp_scr[1:H + 1, _WOFF:_WOFF + W, :] = x_ref[0].astype(dt)
        pool_scr[...] = jnp.zeros_like(pool_scr)

    # ---- im2col patch for this row-tile: [TH*W, K128] (bf16) -----------------
    # Channels are contiguous per tap, so only 9*Cin of the K128 columns are
    # real; the rest are an explicit zero block (weight rows there are zero too).
    row0 = pl.multiple_of(t * TH, TH)
    taps = []
    for kh in range(3):
        # One aligned VMEM load per kh; kw shifts are in-register slices.
        win = xp_scr[pl.ds(row0 + kh, TH), :, :]              # [TH, WPAD, Cin]
        for kw in range(3):
            c0 = _WOFF - 1 + kw
            taps.append(win[:, c0:c0 + W, :].reshape(TH * W, Cin))
    if K128 > K9:
        taps.append(jnp.zeros((TH * W, K128 - K9), xp_scr.dtype))
    patch = jnp.concatenate(taps, axis=-1)                    # [TH*W, K128]

    # ---- single MXU contraction over K = K128, f32 accumulation --------------
    acc = jax.lax.dot_general(
        patch, w_ref[...],
        dimension_numbers=(((1,), (0,)), ((), ())),
        preferred_element_type=jnp.float32)                   # [TH*W, CPAD]
    acc = jnp.maximum(acc + bconv_ref[...], 0.0)              # bias + ReLU (f32 VPU)

    feat_ref[...] = acc.reshape(1, TH, W, CPAD).astype(feat_ref.dtype)

    # ---- fused global-average-pool accumulation (single-axis reduce) ---------
    pool_scr[...] += jnp.sum(acc, axis=0, keepdims=True)      # [1, CPAD]

    # ---- classifier head on the last row-tile of this image ------------------
    @pl.when(t == n_t - 1)
    def _head():
        pooled = pool_scr[...] * (1.0 / float(H * W))         # [1, CPAD] f32
        logits = jax.lax.dot_general(
            pooled.astype(wcls_ref.dtype), wcls_ref[...],     # bf16 x bf16 -> f32
            dimension_numbers=(((1,), (0,)), ((), ())),
            preferred_element_type=jnp.float32)
        logits = logits + bcls_ref[...]
        logits_ref[...] = logits.reshape(1, 1, -1).astype(logits_ref.dtype)


# -----------------------------------------------------------------------------
# Wrapper: backbone_model.forward -> (features NCHW, logits)
# -----------------------------------------------------------------------------
def backbone_model_forward(x_nchw, params, *, row_tile=None, feat_dtype=jnp.float32):
    w_conv, b_conv, w_cls_t, b_cls = params
    B, Cin, H, W = x_nchw.shape
    Cfeat = w_conv.shape[-1]
    n_cls = w_cls_t.shape[-1]

    CPAD = _round_up(Cfeat, LANE)        # lane-dense feature channels
    NCPAD = _round_up(n_cls, LANE)       # lane-dense logits
    K9 = 9 * Cin
    K128 = _round_up(K9, LANE)           # joint (kh,kw,cin) K padding, not per-tap
    WPAD = _round_up(_WOFF + W + 1, SUBLANE)

    TH = row_tile if row_tile is not None else _pick_row_tile(H, W)
    assert H % TH == 0, "H must be divisible by the row tile"
    NT = H // TH

    # NCHW -> NHWC layout glue.
    x = jnp.transpose(x_nchw, (0, 2, 3, 1)).astype(jnp.float32)

    # One-off parameter packing (host side).  im2col weight rows are ordered
    # (kh, kw, cin) to match the in-kernel patch columns; zero padding of K rows,
    # channels and classes guarantees padded lanes contribute nothing.
    w2d = w_conv.astype(jnp.float32).reshape(K9, Cfeat)
    w2d = jnp.pad(w2d, ((0, K128 - K9), (0, CPAD - Cfeat))).astype(jnp.bfloat16)
    bconv = jnp.pad(b_conv.astype(jnp.float32), (0, CPAD - Cfeat)).reshape(1, CPAD)
    wcls = jnp.pad(w_cls_t.astype(jnp.float32),
                   ((0, CPAD - Cfeat), (0, NCPAD - n_cls))).astype(jnp.bfloat16)
    bcls = jnp.pad(b_cls.astype(jnp.float32), (0, NCPAD - n_cls)).reshape(1, NCPAD)

    flops = 2 * B * NT * (TH * W) * K128 * CPAD + 2 * B * CPAD * NCPAD
    bytes_accessed = int(x.size * 4 + w2d.size * 2 + wcls.size * 2
                         + B * H * W * CPAD * jnp.dtype(feat_dtype).itemsize
                         + B * NCPAD * 4)

    feat_pad, logits_pad = pl.pallas_call(
        fused_backbone_kernel,
        out_shape=(
            jax.ShapeDtypeStruct((B, H, W, CPAD), feat_dtype),
            jax.ShapeDtypeStruct((B, 1, NCPAD), jnp.float32),
        ),
        grid_spec=pltpu.PrefetchScalarGridSpec(
            num_scalar_prefetch=0,
            grid=(B, NT),
            in_specs=[
                pl.BlockSpec((1, H, W, Cin), lambda b, t: (b, 0, 0, 0)),
                pl.BlockSpec((K128, CPAD), lambda b, t: (0, 0)),
                pl.BlockSpec((1, CPAD), lambda b, t: (0, 0)),
                pl.BlockSpec((CPAD, NCPAD), lambda b, t: (0, 0)),
                pl.BlockSpec((1, NCPAD), lambda b, t: (0, 0)),
            ],
            out_specs=(
                pl.BlockSpec((1, TH, W, CPAD), lambda b, t: (b, t, 0, 0)),
                pl.BlockSpec((1, 1, NCPAD), lambda b, t: (b, 0, 0)),
            ),
            scratch_shapes=[
                pltpu.VMEM((H + 2, WPAD, Cin), jnp.bfloat16),
                pltpu.VMEM((1, CPAD), jnp.float32),
            ],
        ),
        compiler_params=pltpu.CompilerParams(
            dimension_semantics=("parallel", "arbitrary"),
            vmem_limit_bytes=_pick_vmem_limit(),
        ),
        cost_estimate=pl.CostEstimate(
            flops=flops, transcendentals=0, bytes_accessed=bytes_accessed),
    )(x, w2d, bconv, wcls, bcls)

    features_nhwc = feat_pad[..., :Cfeat]          # drop lane padding
    logits = logits_pad[:, 0, :n_cls]
    features_nchw = jnp.transpose(features_nhwc, (0, 3, 1, 2))
    return features_nchw, logits


# -----------------------------------------------------------------------------
# Pure-JAX reference (bf16 MXU operands, f32 accumulation — same numerics)
# -----------------------------------------------------------------------------
def reference_forward(x_nchw, params):
    w_conv, b_conv, w_cls_t, b_cls = params
    x = jnp.transpose(x_nchw, (0, 2, 3, 1)).astype(jnp.float32)
    feat = jax.lax.conv_general_dilated(
        x.astype(jnp.bfloat16), w_conv.astype(jnp.bfloat16),
        window_strides=(1, 1), padding="SAME",
        dimension_numbers=("NHWC", "HWIO", "NHWC"),
        preferred_element_type=jnp.float32)
    feat = jnp.maximum(feat + b_conv[None, None, None, :].astype(jnp.float32), 0.0)
    pooled = jnp.mean(feat, axis=(1, 2))
    logits = pooled @ w_cls_t + b_cls[None, :]
    return jnp.transpose(feat, (0, 3, 1, 2)), logits


if __name__ == "__main__":
    # Small shapes consistent with the module's forward:
    # NCHW input [B=2, Cin=4, 16, 16], feature_size=32 (stand-in for 2048/1280/1664),
    # classes_num=8.
    B, Cin, H, W = 2, 4, 16, 16
    Cfeat, n_classes = 32, 8

    key = jax.random.PRNGKey(0)
    kx, kw1, kb1, kw2, kb2 = jax.random.split(key, 5)

    x = jax.random.normal(kx, (B, Cin, H, W), dtype=jnp.float32)

    # Deterministic synthetic parameters (not a pretrained checkpoint).
    w_conv = jax.random.normal(kw1, (3, 3, Cin, Cfeat), dtype=jnp.float32) * 0.1
    b_conv = jax.random.normal(kb1, (Cfeat,), dtype=jnp.float32) * 0.01
    # PyTorch nn.Linear(feature_size, classes_num) weight is [classes, features];
    # stored transposed so the kernel computes pooled @ W^T + b.
    w_cls = jax.random.normal(kw2, (n_classes, Cfeat), dtype=jnp.float32) * 0.1
    w_cls_t = jnp.transpose(w_cls, (1, 0))
    b_cls = jax.random.normal(kb2, (n_classes,), dtype=jnp.float32) * 0.01

    params = (w_conv, b_conv, w_cls_t, b_cls)

    features, logits = jax.block_until_ready(backbone_model_forward(x, params))
    ref_features, ref_logits = reference_forward(x, params)

    assert features.shape == (B, Cfeat, H, W)
    assert logits.shape == (B, n_classes)
    # bf16 MXU operands (f32 accumulation) in both kernel and reference.
    assert jnp.allclose(features, ref_features, atol=2e-2, rtol=2e-2)
    assert jnp.allclose(logits, ref_logits, atol=2e-2, rtol=2e-2)

    print("KERNEL_OK")
</pallas_src>

<mosaic_0001>
module attributes {stable_mosaic.version = 11 : i64} {
  func.func @fused_backbone_kernel(%arg0: i32, %arg1: i32, %arg2: memref<1x16x16x4xf32, #tpu.memory_space<vmem>>, %arg3: memref<128x128xbf16, #tpu.memory_space<vmem>>, %arg4: memref<1x128xf32, #tpu.memory_space<vmem>>, %arg5: memref<128x128xbf16, #tpu.memory_space<vmem>>, %arg6: memref<1x128xf32, #tpu.memory_space<vmem>>, %arg7: memref<1x16x16x128xf32, #tpu.memory_space<vmem>>, %arg8: memref<1x1x128xf32, #tpu.memory_space<vmem>>, %arg9: memref<18x32x4xbf16, #tpu.memory_space<vmem>>, %arg10: memref<1x128xf32, #tpu.memory_space<vmem>>) attributes {dimension_semantics = [#tpu.dimension_semantics<parallel>, #tpu.dimension_semantics<arbitrary>], iteration_bounds = array<i64: 2, 1>, scalar_prefetch = 0 : i64, scratch_operands = 2 : i64, tpu.core_type = #tpu.core_type<tc>, window_params = [{transform_indices = @transform_0, window_bounds = array<i64: 1, 16, 16, 4>}, {pipeline_mode = #tpu.pipeline_mode<synchronous>, transform_indices = @transform_1, window_bounds = array<i64: 128, 128>}, {pipeline_mode = #tpu.pipeline_mode<synchronous>, transform_indices = @transform_2, window_bounds = array<i64: 1, 128>}, {pipeline_mode = #tpu.pipeline_mode<synchronous>, transform_indices = @transform_3, window_bounds = array<i64: 128, 128>}, {pipeline_mode = #tpu.pipeline_mode<synchronous>, transform_indices = @transform_4, window_bounds = array<i64: 1, 128>}, {transform_indices = @transform_5, window_bounds = array<i64: 1, 16, 16, 128>}, {transform_indices = @transform_6, window_bounds = array<i64: 1, 1, 128>}]} {
    %c0_i32 = arith.constant 0 : i32
    %0 = arith.cmpi eq, %arg1, %c0_i32 : i32
    %1 = arith.extui %0 : i1 to i32
    %c0_i32_0 = arith.constant 0 : i32
    %2 = arith.cmpi ne, %1, %c0_i32_0 : i32
    scf.if %2 {
      %cst_24 = arith.constant 0.000000e+00 : bf16
      %51 = vector.broadcast %cst_24 : bf16 to vector<1x32x4xbf16>
      %c0_25 = arith.constant 0 : index
      %c0_26 = arith.constant 0 : index
      %c0_27 = arith.constant 0 : index
      %52 = vector.load %arg9[%c0_25, %c0_26, %c0_27] : memref<18x32x4xbf16, #tpu.memory_space<vmem>>, vector<1x32x4xbf16>
      tpu.vector_store %arg9[%c0_25, %c0_26, %c0_27], %51 {strides = array<i32>} : memref<18x32x4xbf16, #tpu.memory_space<vmem>>, vector<1x32x4xbf16>,
      %cst_28 = arith.constant 0.000000e+00 : bf16
      %53 = vector.broadcast %cst_28 : bf16 to vector<1x32x4xbf16>
      %c17 = arith.constant 17 : index
      %c0_29 = arith.constant 0 : index
      %c0_30 = arith.constant 0 : index
      %54 = vector.load %arg9[%c17, %c0_29, %c0_30] : memref<18x32x4xbf16, #tpu.memory_space<vmem>>, vector<1x32x4xbf16>
      tpu.vector_store %arg9[%c17, %c0_29, %c0_30], %53 {strides = array<i32>} : memref<18x32x4xbf16, #tpu.memory_space<vmem>>, vector<1x32x4xbf16>,
      %cst_31 = arith.constant 0.000000e+00 : bf16
      %55 = vector.broadcast %cst_31 : bf16 to vector<18x8x4xbf16>
      %c0_32 = arith.constant 0 : index
      %c0_33 = arith.constant 0 : index
      %c0_34 = arith.constant 0 : index
      %56 = vector.load %arg9[%c0_32, %c0_33, %c0_34] : memref<18x32x4xbf16, #tpu.memory_space<vmem>>, vector<18x8x4xbf16>
      tpu.vector_store %arg9[%c0_32, %c0_33, %c0_34], %55 {strides = array<i32>} : memref<18x32x4xbf16, #tpu.memory_space<vmem>>, vector<18x8x4xbf16>,
      %cst_35 = arith.constant 0.000000e+00 : bf16
      %57 = vector.broadcast %cst_35 : bf16 to vector<18x8x4xbf16>
      %c0_36 = arith.constant 0 : index
      %c24 = arith.constant 24 : index
      %c0_37 = arith.constant 0 : index
      %58 = vector.load %arg9[%c0_36, %c24, %c0_37] : memref<18x32x4xbf16, #tpu.memory_space<vmem>>, vector<18x8x4xbf16>
      tpu.vector_store %arg9[%c0_36, %c24, %c0_37], %57 {strides = array<i32>} : memref<18x32x4xbf16, #tpu.memory_space<vmem>>, vector<18x8x4xbf16>,
      %c0_38 = arith.constant 0 : index
      %c0_39 = arith.constant 0 : index
      %c0_40 = arith.constant 0 : index
      %c0_41 = arith.constant 0 : index
      %59 = vector.load %arg2[%c0_38, %c0_39, %c0_40, %c0_41] : memref<1x16x16x4xf32, #tpu.memory_space<vmem>>, vector<1x16x16x4xf32>
      %60 = vector.shape_cast %59 : vector<1x16x16x4xf32> to vector<16x16x4xf32>
      %61 = arith.truncf %60 : vector<16x16x4xf32> to vector<16x16x4xbf16>
      %c1 = arith.constant 1 : index
      %c8 = arith.constant 8 : index
      %c0_42 = arith.constant 0 : index
      %62 = vector.load %arg9[%c1, %c8, %c0_42] : memref<18x32x4xbf16, #tpu.memory_space<vmem>>, vector<16x16x4xbf16>
      tpu.vector_store %arg9[%c1, %c8, %c0_42], %61 {strides = array<i32>} : memref<18x32x4xbf16, #tpu.memory_space<vmem>>, vector<16x16x4xbf16>,
      %cst_43 = arith.constant 0.000000e+00 : f32
      %63 = vector.broadcast %cst_43 : f32 to vector<1x128xf32>
      %c0_44 = arith.constant 0 : index
      %c0_45 = arith.constant 0 : index
      %64 = vector.load %arg10[%c0_44, %c0_45] : memref<1x128xf32, #tpu.memory_space<vmem>>, vector<1x128xf32>
      tpu.vector_store %arg10[%c0_44, %c0_45], %63 {strides = array<i32>} : memref<1x128xf32, #tpu.memory_space<vmem>>, vector<1x128xf32>,
    } else {
    }
    %c16_i32 = arith.constant 16 : i32
    %3 = arith.muli %arg1, %c16_i32 : i32
    %4 = tpu.assume_multiple %3, 16 : i32
    %c0_i32_1 = arith.constant 0 : i32
    %5 = arith.addi %4, %c0_i32_1 : i32
    %6 = arith.index_cast %5 : i32 to index
    %c0 = arith.constant 0 : index
    %c0_2 = arith.constant 0 : index
    %7 = vector.load %arg9[%6, %c0, %c0_2] : memref<18x32x4xbf16, #tpu.memory_space<vmem>>, vector<16x32x4xbf16>
    %8 = vector.extract_strided_slice %7 {offsets = [0, 7, 0], sizes = [16, 16, 4], strides = [1, 1, 1]} : vector<16x32x4xbf16> to vector<16x16x4xbf16>
    %9 = vector.shape_cast %8 : vector<16x16x4xbf16> to vector<256x4xbf16>
    %10 = vector.extract_strided_slice %7 {offsets = [0, 8, 0], sizes = [16, 16, 4], strides = [1, 1, 1]} : vector<16x32x4xbf16> to vector<16x16x4xbf16>
    %11 = vector.shape_cast %10 : vector<16x16x4xbf16> to vector<256x4xbf16>
    %12 = vector.extract_strided_slice %7 {offsets = [0, 9, 0], sizes = [16, 16, 4], strides = [1, 1, 1]} : vector<16x32x4xbf16> to vector<16x16x4xbf16>
    %13 = vector.shape_cast %12 : vector<16x16x4xbf16> to vector<256x4xbf16>
    %c1_i32 = arith.constant 1 : i32
    %14 = arith.addi %4, %c1_i32 : i32
    %15 = arith.index_cast %14 : i32 to index
    %c0_3 = arith.constant 0 : index
    %c0_4 = arith.constant 0 : index
    %16 = vector.load %arg9[%15, %c0_3, %c0_4] : memref<18x32x4xbf16, #tpu.memory_space<vmem>>, vector<16x32x4xbf16>
    %17 = vector.extract_strided_slice %16 {offsets = [0, 7, 0], sizes = [16, 16, 4], strides = [1, 1, 1]} : vector<16x32x4xbf16> to vector<16x16x4xbf16>
    %18 = vector.shape_cast %17 : vector<16x16x4xbf16> to vector<256x4xbf16>
    %19 = vector.extract_strided_slice %16 {offsets = [0, 8, 0], sizes = [16, 16, 4], strides = [1, 1, 1]} : vector<16x32x4xbf16> to vector<16x16x4xbf16>
    %20 = vector.shape_cast %19 : vector<16x16x4xbf16> to vector<256x4xbf16>
    %21 = vector.extract_strided_slice %16 {offsets = [0, 9, 0], sizes = [16, 16, 4], strides = [1, 1, 1]} : vector<16x32x4xbf16> to vector<16x16x4xbf16>
    %22 = vector.shape_cast %21 : vector<16x16x4xbf16> to vector<256x4xbf16>
    %c2_i32 = arith.constant 2 : i32
    %23 = arith.addi %4, %c2_i32 : i32
    %24 = arith.index_cast %23 : i32 to index
    %c0_5 = arith.constant 0 : index
    %c0_6 = arith.constant 0 : index
    %25 = vector.load %arg9[%24, %c0_5, %c0_6] : memref<18x32x4xbf16, #tpu.memory_space<vmem>>, vector<16x32x4xbf16>
    %26 = vector.extract_strided_slice %25 {offsets = [0, 7, 0], sizes = [16, 16, 4], strides = [1, 1, 1]} : vector<16x32x4xbf16> to vector<16x16x4xbf16>
    %27 = vector.shape_cast %26 : vector<16x16x4xbf16> to vector<256x4xbf16>
    %28 = vector.extract_strided_slice %25 {offsets = [0, 8, 0], sizes = [16, 16, 4], strides = [1, 1, 1]} : vector<16x32x4xbf16> to vector<16x16x4xbf16>
    %29 = vector.shape_cast %28 : vector<16x16x4xbf16> to vector<256x4xbf16>
    %30 = vector.extract_strided_slice %25 {offsets = [0, 9, 0], sizes = [16, 16, 4], strides = [1, 1, 1]} : vector<16x32x4xbf16> to vector<16x16x4xbf16>
    %31 = vector.shape_cast %30 : vector<16x16x4xbf16> to vector<256x4xbf16>
    %cst = arith.constant 0.000000e+00 : bf16
    %32 = vector.broadcast %cst : bf16 to vector<256x92xbf16>
    %33 = tpu.concatenate %9, %11, %13, %18, %20, %22, %27, %29, %31, %32 in 1 : vector<256x4xbf16>, vector<256x4xbf16>, vector<256x4xbf16>, vector<256x4xbf16>, vector<256x4xbf16>, vector<256x4xbf16>, vector<256x4xbf16>, vector<256x4xbf16>, vector<256x4xbf16>, vector<256x92xbf16> -> vector<256x128xbf16>
    %c0_7 = arith.constant 0 : index
    %c0_8 = arith.constant 0 : index
    %34 = vector.load %arg3[%c0_7, %c0_8] : memref<128x128xbf16, #tpu.memory_space<vmem>>, vector<128x128xbf16>
    %cst_9 = arith.constant dense<0.000000e+00> : vector<256x128xf32>
    %35 = tpu.matmul %33, %34, %cst_9 {dimension_numbers = #tpu.dot_dimension_numbers<[1], [0], [0], [1], [0, 0, 1, 1], [], []>} : vector<256x128xbf16>, vector<128x128xbf16>, vector<256x128xf32> -> vector<256x128xf32>
    %c0_10 = arith.constant 0 : index
    %c0_11 = arith.constant 0 : index
    %36 = vector.load %arg4[%c0_10, %c0_11] : memref<1x128xf32, #tpu.memory_space<vmem>>, vector<1x128xf32>
    %37 = vector.broadcast %36 : vector<1x128xf32> to vector<256x128xf32>
    %38 = arith.addf %35, %37 : vector<256x128xf32>
    %cst_12 = arith.constant 0.000000e+00 : f32
    %39 = vector.broadcast %cst_12 : f32 to vector<256x128xf32>
    %40 = arith.maximumf %38, %39 : vector<256x128xf32>
    %41 = vector.shape_cast %40 : vector<256x128xf32> to vector<1x16x16x128xf32>
    %c0_13 = arith.constant 0 : index
    %c0_14 = arith.constant 0 : index
    %c0_15 = arith.constant 0 : index
    %c0_16 = arith.constant 0 : index
    %42 = vector.load %arg7[%c0_13, %c0_14, %c0_15, %c0_16] : memref<1x16x16x128xf32, #tpu.memory_space<vmem>>, vector<1x16x16x128xf32>
    tpu.vector_store %arg7[%c0_13, %c0_14, %c0_15, %c0_16], %41 {strides = array<i32>} : memref<1x16x16x128xf32, #tpu.memory_space<vmem>>, vector<1x16x16x128xf32>,
    %c0_17 = arith.constant 0 : index
    %c0_18 = arith.constant 0 : index
    %43 = vector.load %arg10[%c0_17, %c0_18] : memref<1x128xf32, #tpu.memory_space<vmem>>, vector<1x128xf32>
    %cst_19 = arith.constant dense<0.000000e+00> : vector<128xf32>
    %44 = vector.multi_reduction <add>, %40, %cst_19 [0] : vector<256x128xf32> to vector<128xf32>
    %45 = vector.shape_cast %44 : vector<128xf32> to vector<1x128xf32>
    %46 = arith.addf %43, %45 : vector<1x128xf32>
    %c0_20 = arith.constant 0 : index
    %c0_21 = arith.constant 0 : index
    %47 = vector.load %arg10[%c0_20, %c0_21] : memref<1x128xf32, #tpu.memory_space<vmem>>, vector<1x128xf32>
    tpu.vector_store %arg10[%c0_20, %c0_21], %46 {strides = array<i32>} : memref<1x128xf32, #tpu.memory_space<vmem>>, vector<1x128xf32>,
    %c0_i32_22 = arith.constant 0 : i32
    %48 = arith.cmpi eq, %arg1, %c0_i32_22 : i32
    %49 = arith.extui %48 : i1 to i32
    %c0_i32_23 = arith.constant 0 : i32
    %50 = arith.cmpi ne, %49, %c0_i32_23 : i32
    scf.if %50 {
      %c0_24 = arith.constant 0 : index
      %c0_25 = arith.constant 0 : index
      %51 = vector.load %arg10[%c0_24, %c0_25] : memref<1x128xf32, #tpu.memory_space<vmem>>, vector<1x128xf32>
      %cst_26 = arith.constant 3.906250e-03 : f32
      %52 = vector.broadcast %cst_26 : f32 to vector<1x128xf32>
      %53 = arith.mulf %51, %52 : vector<1x128xf32>
      %54 = arith.truncf %53 : vector<1x128xf32> to vector<1x128xbf16>
      %c0_27 = arith.constant 0 : index
      %c0_28 = arith.constant 0 : index
      %55 = vector.load %arg5[%c0_27, %c0_28] : memref<128x128xbf16, #tpu.memory_space<vmem>>, vector<128x128xbf16>
      %cst_29 = arith.constant dense<0.000000e+00> : vector<1x128xf32>
      %56 = tpu.matmul %54, %55, %cst_29 {dimension_numbers = #tpu.dot_dimension_numbers<[1], [0], [0], [1], [0, 0, 1, 1], [], []>} : vector<1x128xbf16>, vector<128x128xbf16>, vector<1x128xf32> -> vector<1x128xf32>
      %c0_30 = arith.constant 0 : index
      %c0_31 = arith.constant 0 : index
      %57 = vector.load %arg6[%c0_30, %c0_31] : memref<1x128xf32, #tpu.memory_space<vmem>>, vector<1x128xf32>
      %58 = arith.addf %56, %57 : vector<1x128xf32>
      %59 = vector.shape_cast %58 : vector<1x128xf32> to vector<1x1x128xf32>
      %c0_32 = arith.constant 0 : index
      %c0_33 = arith.constant 0 : index
      %c0_34 = arith.constant 0 : index
      %60 = vector.load %arg8[%c0_32, %c0_33, %c0_34] : memref<1x1x128xf32, #tpu.memory_space<vmem>>, vector<1x1x128xf32>
      tpu.vector_store %arg8[%c0_32, %c0_33, %c0_34], %59 {strides = array<i32>} : memref<1x1x128xf32, #tpu.memory_space<vmem>>, vector<1x1x128xf32>,
    } else {
    }
    return
  }
  func.func @transform_0(%arg0: i32, %arg1: i32) -> (i32, i32, i32, i32) {
    %c0_i32 = arith.constant 0 : i32
    %c0_i32_0 = arith.constant 0 : i32
    %c0_i32_1 = arith.constant 0 : i32
    %c0_i32_2 = arith.constant 0 : i32
    return %arg0, %c0_i32, %c0_i32_0, %c0_i32_1 : i32, i32, i32, i32
  }
  func.func @transform_1(%arg0: i32, %arg1: i32) -> (i32, i32) {
    %c0_i32 = arith.constant 0 : i32
    %c0_i32_0 = arith.constant 0 : i32
    %c0_i32_1 = arith.constant 0 : i32
    return %c0_i32, %c0_i32_0 : i32, i32
  }
  func.func @transform_2(%arg0: i32, %arg1: i32) -> (i32, i32) {
    %c0_i32 = arith.constant 0 : i32
    %c0_i32_0 = arith.constant 0 : i32
    %c0_i32_1 = arith.constant 0 : i32
    return %c0_i32, %c0_i32_0 : i32, i32
  }
  func.func @transform_3(%arg0: i32, %arg1: i32) -> (i32, i32) {
    %c0_i32 = arith.constant 0 : i32
    %c0_i32_0 = arith.constant 0 : i32
    %c0_i32_1 = arith.constant 0 : i32
    return %c0_i32, %c0_i32_0 : i32, i32
  }
  func.func @transform_4(%arg0: i32, %arg1: i32) -> (i32, i32) {
    %c0_i32 = arith.constant 0 : i32
    %c0_i32_0 = arith.constant 0 : i32
    %c0_i32_1 = arith.constant 0 : i32
    return %c0_i32, %c0_i32_0 : i32, i32
  }
  func.func @transform_5(%arg0: i32, %arg1: i32) -> (i32, i32, i32, i32) {
    %c0_i32 = arith.constant 0 : i32
    %c0_i32_0 = arith.constant 0 : i32
    %c0_i32_1 = arith.constant 0 : i32
    return %arg0, %arg1, %c0_i32, %c0_i32_0 : i32, i32, i32, i32
  }
  func.func @transform_6(%arg0: i32, %arg1: i32) -> (i32, i32, i32) {
    %c0_i32 = arith.constant 0 : i32
    %c0_i32_0 = arith.constant 0 : i32
    %c0_i32_1 = arith.constant 0 : i32
    return %arg0, %c0_i32, %c0_i32_0 : i32, i32, i32
  }
}

</mosaic_0001>

<bundles_post_ra>
// kernel: tpu_custom_call.1
= control target key start
LH: loop header
LB: loop body
LE: loop exit
PB: predicated region body
PF: predicated region fallthrough
CT: control target
= control target key end

     0   :  { %s7022_s0 = inlined_call_operand.vmem [shape: f32[2,16,16,4], index: 0, kind: input, shape index: {}]   ;;  %s7023_s1 = inlined_call_operand.vmem [shape: bf16[128,128], index: 1, kind: input, shape index: {}]   ;;  %s7024_s2 = inlined_call_operand.vmem [shape: f32[1,128], index: 2, kind: input, shape index: {}]   ;;  %s7025_s3 = inlined_call_operand.vmem [shape: bf16[128,128], index: 3, kind: input, shape index: {}]   ;;  %s7026_s4 = inlined_call_operand.vmem [shape: f32[1,128], index: 4, kind: input, shape index: {}]   ;;  %s7027_s5 = inlined_call_operand.hbm [shape: f32[2,16,16,128], index: 5, kind: output, shape index: {0}]   ;;  %s7028_s6 = inlined_call_operand.hbm [shape: f32[2,1,128], index: 6, kind: output, shape index: {1}]  }
   0x1   :  { %7074 = sst [smem:[#allocation10_spill]] %s7022_s0 }
   0x2   :  { %7075 = sst [smem:[#allocation11_spill]] %s7023_s1 }
   0x3   :  { %12 = vsyncpa [#allocation5], 0 }
   0x4   :  { %14 = vsyncpa [#allocation5 + $0x1], 0 }
   0x5   :  { %15 = vsyncpa [#allocation7], 0 }
   0x6   :  { %17 = vsyncpa [#allocation7 + $0x1], 0  ;;  %s4737_s21 = smov 0   ;;  %s4739_s22 = smov 0  }
   0x7   :  { %s4741_s23 = smov 0   ;;  %s4743_s24 = smov 0  }
   0x8   :  { %s4745_s25 = smov 0   ;;  %s4747_s26 = smov 0  }
   0x9 LB: > { %s3953_s27 = sadd.s32 4294967295, %s4689_s26   ;;  %s3954_s28 = sadd.s32 4294967294, %s4689_s26   ;;  %s4689_s26 = sphi %s4747_s26, %s23_s26   ;;  %s4685_s25 = sphi %s4745_s25, %s7133_s25   ;;  %s4681_s24 = sphi %s4743_s24, %s7132_s24   ;;  %s4677_s23 = sphi %s4741_s23, %s7131_s23   ;;  %s4673_s22 = sphi %s4739_s22, %s7130_s22   ;;  %s4669_s21 = sphi %s4737_s21, %s7129_s21  }
   0xa   : > { %s35_s29 = sadd.s32 1, %s4685_s25  ;;  %s154_s30 = sadd.s32 1, %s4677_s23 }
   0xb   : > { %p37_p0 = scmp.ge.s32.totalorder %s35_s29, 2  ;;  %p164_p1 = scmp.ne.s32.totalorder %s4677_s23, %s4673_s22 }
   0xc   : > { %p165_p2 = scmp.eq.s32.totalorder %s3953_s27, 1  ;;  %p170_p3 = scmp.ne.s32.totalorder %s4673_s22, %s4669_s21 }
   0xd   : > { %s7135_s29 = smov (%p37_p0, %s35_s29), 0  ;;  %p171_p5 = scmp.eq.s32.totalorder %s3954_s28, 1 }
   0xe   : > { %p4777_p4 = por %p165_p2, %p164_p1  ;;  %s149_s8 = ssub.s32 %s4685_s25, %s7135_s29 }
   0xf   : > { %p3957_p6 = scmp.ge.s32.totalorder %s4689_s26, 1  ;;  %p152_p7 = scmp.eq.s32.totalorder %s149_s8, 0 }
  0x10   : > { %p4784_p8 = por %p171_p5, %p170_p3  ;;  %p235_p9 = scmp.lt.s32.totalorder %s4689_s26, 3 }
  0x11   : > { %s4790_s10 = scalar_select %p152_p7, %s4677_s23, %s154_s30  }
  0x12   : > { %p236_p10 = pnand %p3957_p6, %p235_p9 }
  0x13   : > { %s4692_s11 = smov (!%p236_p10), 4   ;;  %p269_p11 = scmp.lt.s32.totalorder (!%p236_p10), %s4681_s24, 1 }
  0x14   : > { %239 = sbr.rel (%p236_p10) target bundleno = 889 (0x379), region = 40  ;;  %s7078_s0 = sld [smem:[#allocation10_spill]] (!%p236_p10) }
  0x15   : > { %s4693_s17 = smov (!%p236_p10), 16   ;;  %s7073_s18 = smov (!%p236_p10), 8  }
  0x16   : > { %s4695_s19 = smov (!%p236_p10), 28   ;;  %s4696_s20 = smov (!%p236_p10), 24  }
  0x17   : > { %s4697_s27 = smov (!%p236_p10), 32   ;;  %s4698_s28 = smov (!%p236_p10), 12  }
  0x18   : > { %s4699_s30 = smov (!%p236_p10), 20   ;;  %s7083_s1 = sld [smem:[#allocation11_spill]] (!%p236_p10) }
  0x19   : > { %vm280_vm0 = vcmask 27648   ;;  %v4691_v0 = vmov 0   ;;  %s270_s12 = scalar_select %p269_p11, %s4681_s24, 1  ;;  %vm847_vm1 = vsmask.f32 3328  ;;  %vm3146_vm7 = vcmask 31744  }
  0x1a   : > { %282 = vst.msk [vmem:[#allocation2 + $0x4] sm:$0xf] %vm280_vm0, %v4691_v0  ;;  %vm848_vm2 = vsmask.f32 7440  ;;  %vm492_vm4 = vsmask.f32 256 }
  0x1b   : > { %283 = vst.msk [vmem:[#allocation2 + $0x8] sm:$0xf] %vm280_vm0, %v4691_v0  ;;  %s4414_s13 = sshll.u32 %s270_s12, 8  ;;  %vm4931_vm3 = vmor %vm847_vm1, %vm848_vm2  ;;  %vm493_vm5 = vsmask.f32 4368  ;;  %vm3195_vm8 = vcmask 64512  }
  0x1c   : > { %281 = vst.msk [vmem:[#allocation2] sm:$0xf] %vm280_vm0, %v4691_v0  ;;  %s4864_s16 = scalar_lea.vmem %s7078_s0, %s4414_s13  ;;  %vm4986_vm6 = vmor %vm492_vm4, %vm493_vm5  ;;  %vm3228_vm9 = vcmask 97280   ;;  %vm3261_vm10 = vcmask 130048   ;;  %vm3294_vm11 = vcmask 162816   ;;  %vm3327_vm12 = vcmask 195584  }
  0x1d   : > { %284 = vst.msk [vmem:[#allocation2 + $0xc] sm:$0xf] %vm280_vm0, %v4691_v0  ;;  %v336_v8 = vld [vmem:[%s4864_s16 + $0x50] sm:$0xff]  ;;  %v337_v9 = vld [vmem:[%s4864_s16 + $0x58] sm:$0xff]  ;;  %v326_v18 = vld [vmem:[%s4864_s16] sm:$0xff]  ;;  %vm3360_vm13 = vcmask 228352  }
  0x1e   : > { %286 = vst.msk [vmem:[#allocation2 + $0x110] sm:$0xf] %vm280_vm0, %v4691_v0  ;;  %v368_v14 = vpack.c.bf16 %v336_v8, %v336_v8  ;;  %v369_v15 = vpack.c.bf16 %v337_v9, %v337_v9  ;;  %v327_v22 = vld [vmem:[%s4864_s16 + $0x8] sm:$0xff]  ;;  %v338_v23 = vld [vmem:[%s4864_s16 + $0x60] sm:$0xff]  ;;  %v328_v24 = vld [vmem:[%s4864_s16 + $0x10] sm:$0xff]  ;;  %v358_v27 = vpack.c.bf16 %v326_v18, %v326_v18  ;;  %vm3393_vm14 = vcmask 261120  }
  0x1f   : > { %287 = vst.msk [vmem:[#allocation2 + $0x114] sm:$0xf] %vm280_vm0, %v4691_v0  ;;  %v339_v28 = vld [vmem:[%s4864_s16 + $0x68] sm:$0xff]  ;;  %v329_v29 = vld [vmem:[%s4864_s16 + $0x18] sm:$0xff]  ;;  %v359_v31 = vpack.c.bf16 %v327_v22, %v327_v22  ;;  %v370_v35 = vpack.c.bf16 %v338_v23, %v338_v23  ;;  %v340_v41 = vld [vmem:[%s4864_s16 + $0x70] sm:$0xff]  ;;  %v360_v43 = vpack.c.bf16 %v328_v24, %v328_v24  ;;  %vm3426_vm15 = vcmask 293888  }
  0x20   : > { %288 = vst.msk [vmem:[#allocation2 + $0x118] sm:$0xf] %vm280_vm0, %v4691_v0  ;;  %v371_v38 = vpack.c.bf16 %v339_v28, %v339_v28  ;;  %v341_v42 = vld [vmem:[%s4864_s16 + $0x78] sm:$0xff]  ;;  %v361_v48 = vpack.c.bf16 %v329_v29, %v329_v29  ;;  %v372_v55 = vpack.c.bf16 %v340_v41, %v340_v41  ;;  %s6169_s12 = sand.u32 1, %s4673_s22  }
  0x21   : > { %289 = vst.msk [vmem:[#allocation2 + $0x11c] sm:$0xf] %vm280_vm0, %v4691_v0  ;;  %v4853_v2 = vld [vmem:[#allocation2 + $0x4] sm:$0xf]  ;;  %v373_v56 = vpack.c.bf16 %v341_v42, %v341_v42  ;;  %s3958_s15 = sshll.u32 %s6169_s12, 8 }
  0x22   : > { %v4415_v1 = vld [vmem:[#allocation2 + $0x4] sm:$0xff]  ;;  %291 = vst.msk [vmem:[#allocation2 + $0x10] sm:$0xf] %vm280_vm0, %v4691_v0  ;;  %v501_v4 = vshrl.u32 %v4853_v2, 16  ;;  %v504_v5 = vshll.u32 %v4853_v2, 16  ;;  %s6221_s8 = scalar_lea.vmem [#allocation4], %s3958_s15 }
  0x23   : > { %292 = vst.msk [vmem:[#allocation2 + $0x20] sm:$0xf] %vm280_vm0, %v4691_v0  ;;  %2490 = vrot.lane.b32.xlu0 %v4415_v1, %s4692_s11  ;;  %v4855_v3 = vld [vmem:[#allocation2 + $0x8] sm:$0xf]  ;;  %s3826_s13 = sshll.u32 %s6221_s8, 4  ;;  %s3827_s13 = int_to_ptr.vmem [resolvable:$true] %s3826_s13 }
  0x24   : > { %293 = vst.msk [vmem:[#allocation2 + $0x30] sm:$0xf] %vm280_vm0, %v4691_v0  ;;  %v510_v6 = vshrl.u32 %v4855_v3, 16  ;;  %v513_v7 = vshll.u32 %v4855_v3, 16  ;;  %v850_v10 = vrot.slane %v501_v4, 4  ;;  %v851_v11 = vrot.slane %v504_v5, 5 }
  0x25   : > { %294 = vst.msk [vmem:[#allocation2 + $0x40] sm:$0xf] %vm280_vm0, %v4691_v0 }
  0x26   : > { %295 = vst.msk [vmem:[#allocation2 + $0x50] sm:$0xf] %vm280_vm0, %v4691_v0  ;;  %v4888_v12 = vrot.slane %v513_v7, 5  ;;  %v856_v13 = vrot.slane %v510_v6, 4  ;;  %v852_v19 = vor.u32 %v851_v11, %v850_v10 }
  0x27   : > { %296 = vst.msk [vmem:[#allocation2 + $0x60] sm:$0xf] %vm280_vm0, %v4691_v0 }
  0x28   : > { %297 = vst.msk [vmem:[#allocation2 + $0x70] sm:$0xf] %vm280_vm0, %v4691_v0  ;;  %v857_v20 = vor.u32 %v856_v13, %v4888_v12  ;;  %v853_v32 = vrot.slane %v852_v19, 4 }
  0x29   : > { %298 = vst.msk [vmem:[#allocation2 + $0x80] sm:$0xf] %vm280_vm0, %v4691_v0  ;;  %v3977_v21 = vld [vmem:[#allocation2 + $0x10] sm:$0xf] }
  0x2a   : > { %299 = vst.msk [vmem:[#allocation2 + $0x90] sm:$0xf] %vm280_vm0, %v4691_v0  ;;  %v4057_v16 = vld [vmem:[#allocation2 + $0x20] sm:$0xf]  ;;  %v1143_v30 = vshrl.u32 %v3977_v21, 16  ;;  %v4913_v33 = vrot.slane %v857_v20, 4  ;;  %v855_v61 = vsel %vm4931_vm3, %v853_v32, %v4888_v12 }
  0x2b   : > { %300 = vst.msk [vmem:[#allocation2 + $0xa0] sm:$0xf] %vm280_vm0, %v4691_v0  ;;  %v1787_v25 = vshrl.u32 %v4057_v16, 16 }
  0x2c   : > { %301 = vst.msk [vmem:[#allocation2 + $0xb0] sm:$0xf] %vm280_vm0, %v4691_v0  ;;  %v4926_v44 = vrot.slane %v1143_v30, 11 }
  0x2d   : > { %302 = vst.msk [vmem:[#allocation2 + $0xc0] sm:$0xf] %vm280_vm0, %v4691_v0  ;;  %v4919_v39 = vrot.slane %v1787_v25, 11 }
  0x2e   : > { %303 = vst.msk [vmem:[#allocation2 + $0xd0] sm:$0xf] %vm280_vm0, %v4691_v0 }
  0x2f   : > { %304 = vst.msk [vmem:[#allocation2 + $0xe0] sm:$0xf] %vm280_vm0, %v4691_v0  ;;  %v4001_v37 = vld [vmem:[#allocation2 + $0x70] sm:$0xf] }
  0x30   : > { %305 = vst.msk [vmem:[#allocation2 + $0xf0] sm:$0xf] %vm280_vm0, %v4691_v0  ;;  %v1275_v50 = vshrl.u32 %v4001_v37, 16 }
  0x31   : > { %306 = vst.msk [vmem:[#allocation2 + $0x100] sm:$0xf] %vm280_vm0, %v4691_v0 }
  0x32   : > { %309 = vst.msk [vmem:[#allocation2 + $0x1c] sm:$0xf] %vm280_vm0, %v4691_v0  ;;  %v4968_v16 = vrot.slane %v1275_v50, 11 }
  0x33   : > { %310 = vst.msk [vmem:[#allocation2 + $0x2c] sm:$0xf] %vm280_vm0, %v4691_v0 }
  0x34   : > { %311 = vst.msk [vmem:[#allocation2 + $0x3c] sm:$0xf] %vm280_vm0, %v4691_v0 }
  0x35   : > { %312 = vst.msk [vmem:[#allocation2 + $0x4c] sm:$0xf] %vm280_vm0, %v4691_v0 }
  0x36   : > { %313 = vst.msk [vmem:[#allocation2 + $0x5c] sm:$0xf] %vm280_vm0, %v4691_v0 }
  0x37   : > { %314 = vst.msk [vmem:[#allocation2 + $0x6c] sm:$0xf] %vm280_vm0, %v4691_v0 }
  0x38   : > { %315 = vst.msk [vmem:[#allocation2 + $0x7c] sm:$0xf] %vm280_vm0, %v4691_v0 }
  0x39   : > { %316 = vst.msk [vmem:[#allocation2 + $0x8c] sm:$0xf] %vm280_vm0, %v4691_v0  ;;  %v3980_v34 = vld [vmem:[#allocation2 + $0x1c] sm:$0xf] }
  0x3a   : > { %317 = vst.msk [vmem:[#allocation2 + $0x9c] sm:$0xf] %vm280_vm0, %v4691_v0  ;;  %v4060_v17 = vld [vmem:[#allocation2 + $0x2c] sm:$0xf]  ;;  %v1504_v45 = vshll.u32 %v3980_v34, 16 }
  0x3b   : > { %318 = vst.msk [vmem:[#allocation2 + $0xac] sm:$0xf] %vm280_vm0, %v4691_v0  ;;  %v2148_v26 = vshll.u32 %v4060_v17, 16 }
  0x3c   : > { %319 = vst.msk [vmem:[#allocation2 + $0xbc] sm:$0xf] %vm280_vm0, %v4691_v0  ;;  %v4950_v62 = vrot.slane %v1504_v45, 5 }
  0x3d   : > { %320 = vst.msk [vmem:[#allocation2 + $0xcc] sm:$0xf] %vm280_vm0, %v4691_v0  ;;  %v4921_v40 = vrot.slane %v2148_v26, 5 }
  0x3e   : > { %321 = vst.msk [vmem:[#allocation2 + $0xdc] sm:$0xf] %vm280_vm0, %v4691_v0  ;;  %v455_v46 = vld [vmem:[#allocation2 + $0x6c] sm:$0xf] }
  0x3f   : > { %322 = vst.msk [vmem:[#allocation2 + $0xec] sm:$0xf] %vm280_vm0, %v4691_v0  ;;  %v4004_v36 = vld [vmem:[#allocation2 + $0x7c] sm:$0xf]  ;;  %v944_v60 = vshll.u32 %v455_v46, 16 }
  0x40   : > { %323 = vst.msk [vmem:[#allocation2 + $0xfc] sm:$0xf] %vm280_vm0, %v4691_v0  ;;  %v1588_v49 = vshll.u32 %v4004_v36, 16 }
  0x41   : > { %324 = vst.msk [vmem:[#allocation2 + $0x10c] sm:$0xf] %vm280_vm0, %v4691_v0  ;;  %v4970_v18 = vrot.slane %v944_v60, 5 }
  0x42   : > { %401 = vst.msk [vmem:[#allocation2 + $0x64] sm:$0xf] %vm280_vm0, %v368_v14  ;;  %v4961_v11 = vrot.slane %v1588_v49, 5  ;;  %v2522_v14 = vunpack.c.l.b16 %v855_v61 }
  0x43   : > { %402 = vst.msk [vmem:[#allocation2 + $0x68] sm:$0xf] %vm280_vm0, %v369_v15 }
  0x44   : > { %290 = vst.msk [vmem:[#allocation2] sm:$0xf] %vm280_vm0, %v4691_v0 }
  0x45   : > { %307 = vst.msk [vmem:[#allocation2 + $0x110] sm:$0xf] %vm280_vm0, %v4691_v0 }
  0x46   : > { %308 = vst.msk [vmem:[#allocation2 + $0xc] sm:$0xf] %vm280_vm0, %v4691_v0 }
  0x47   : > { %325 = vst.msk [vmem:[#allocation2 + $0x11c] sm:$0xf] %vm280_vm0, %v4691_v0  ;;  %v4084_v0 = vld [vmem:[#allocation2 + $0x8c] sm:$0xf] }
  0x48   : > { %391 = vst.msk [vmem:[#allocation2 + $0x14] sm:$0xf] %vm280_vm0, %v358_v27  ;;  %v2232_v13 = vshll.u32 %v4084_v0, 16 }
  0x49   : > { %392 = vst.msk [vmem:[#allocation2 + $0x18] sm:$0xf] %vm280_vm0, %v359_v31  ;;  %v4935_v51 = vld [vmem:[#allocation2 + $0x64] sm:$0xf] }
  0x4a   : > { %v4421_v52 = vld [vmem:[#allocation2 + $0x64] sm:$0xff]  ;;  %403 = vst.msk [vmem:[#allocation2 + $0x74] sm:$0xf] %vm280_vm0, %v370_v35  ;;  %v633_v54 = vshrl.u32 %v4935_v51, 16  ;;  %v636_v57 = vshll.u32 %v4935_v51, 16  ;;  %v4977_v28 = vrot.slane %v2232_v13, 5 }
  0x4b   : > { %v4938_v53 = vld [vmem:[#allocation2 + $0x68] sm:$0xf]  ;;  %404 = vst.msk [vmem:[#allocation2 + $0x78] sm:$0xf] %vm280_vm0, %v371_v38  ;;  %2502 = vrot.lane.b32.xlu0 %v4421_v52, %s4692_s11 }
  0x4c   : > { %v642_v58 = vshrl.u32 %v4938_v53, 16  ;;  %v645_v59 = vshll.u32 %v4938_v53, 16  ;;  %393 = vst.msk [vmem:[#allocation2 + $0x24] sm:$0xf] %vm280_vm0, %v360_v43  ;;  %v934_v63 = vrot.slane %v633_v54, 4  ;;  %v935_v8 = vrot.slane %v636_v57, 5 }
  0x4d   : > { %v431_v1 = vld [vmem:[#allocation2 + $0xc] sm:$0xf]  ;;  %394 = vst.msk [vmem:[#allocation2 + $0x28] sm:$0xf] %vm280_vm0, %v361_v48 }
  0x4e   : > { %v4959_v9 = vrot.slane %v645_v59, 5  ;;  %v860_v10 = vshll.u32 %v431_v1, 16  ;;  %v4965_v12 = vrot.slane %v642_v58, 4  ;;  %405 = vst.msk [vmem:[#allocation2 + $0x84] sm:$0xf] %vm280_vm0, %v372_v55  ;;  %v936_v17 = vor.u32 %v935_v8, %v934_v63 }
  0x4f   : > { %v3978_v15 = vld [vmem:[#allocation2 + $0x14] sm:$0xf]  ;;  %406 = vst.msk [vmem:[#allocation2 + $0x88] sm:$0xf] %vm280_vm0, %v373_v56 }
  0x50   : > { %v4431_v19 = vld [vmem:[#allocation2 + $0x14] sm:$0xff]  ;;  %v862_v20 = vrot.slane %v860_v10, 5  ;;  %v1148_v22 = vshrl.u32 %v3978_v15, 16  ;;  %v1151_v23 = vshll.u32 %v3978_v15, 16  ;;  %v941_v24 = vor.u32 %v4965_v12, %v4959_v9 }
  0x51   : > { %v3979_v21 = vld [vmem:[#allocation2 + $0x18] sm:$0xf]  ;;  %v4975_v27 = vrot.slane %v936_v17, 4  ;;  %2762 = vrot.lane.b32.xlu1 %v4431_v19, %s4693_s17 }
  0x52   : > { %v1157_v25 = vshrl.u32 %v3979_v21, 16  ;;  %v1160_v26 = vshll.u32 %v3979_v21, 16  ;;  %v4437_v29 = vld [vmem:[#allocation2 + $0x74] sm:$0xff]  ;;  %v863_v30 = vsel %vm4931_vm3, %v4913_v33, %v862_v20  ;;  %v1150_v31 = vrot.slane %v1148_v22, 7 }
  0x53   : > { %v1494_v32 = vrot.slane %v1148_v22, 4  ;;  %v1495_v34 = vrot.slane %v1151_v23, 5  ;;  %v2523_v35 = vunpack.c.l.b16 %v863_v30  ;;  %v4058_v36 = vld [vmem:[#allocation2 + $0x24] sm:$0xf]  ;;  %2774 = vrot.lane.b32.xlu2 %v4437_v29, %s4693_s17  ;;  %v4003_v30 = vld [vmem:[#allocation2 + $0x78] sm:$0xf] }
  0x54   : > { %v1159_v37 = vrot.slane %v1157_v25, 7  ;;  %v1498_v38 = vrot.slane %v1160_v26, 5  ;;  %v1500_v41 = vrot.slane %v1157_v25, 4  ;;  %v4059_v42 = vld [vmem:[#allocation2 + $0x28] sm:$0xf]  ;;  %v1792_v43 = vshrl.u32 %v4058_v36, 16 }
  0x55   : > { %v1795_v45 = vshll.u32 %v4058_v36, 16  ;;  %v1153_v46 = vor.u32 %v1151_v23, %v1150_v31  ;;  %v1155_v48 = vrot.slane %v1150_v31, 4  ;;  %v2554_v49 = vpack.c.b16 %v2523_v35, %v2522_v14  ;;  %v4447_v56 = vld [vmem:[#allocation2 + $0x24] sm:$0xff]  ;;  %v4002_v14 = vld [vmem:[#allocation2 + $0x74] sm:$0xf] }
  0x56   : > { %v1801_v50 = vshrl.u32 %v4059_v42, 16  ;;  %v1804_v52 = vshll.u32 %v4059_v42, 16  ;;  %v1162_v55 = vor.u32 %v1160_v26, %v1159_v37  ;;  %v1794_v60 = vrot.slane %v1792_v43, 7 }
  0x57   : > { %v2138_v61 = vrot.slane %v1792_v43, 4  ;;  %v2139_v63 = vrot.slane %v1795_v45, 5  ;;  %v1154_v0 = vsel %vm4986_vm6, %v4926_v44, %v1153_v46  ;;  %2570 = vrot.lane.b32.xlu0 %v2554_v49, %s7073_s18  ;;  %v1496_v25 = vor.u32 %v1495_v34, %v1494_v32 }
  0x58   : > { %v1803_v1 = vrot.slane %v1801_v50, 7  ;;  %v2142_v8 = vrot.slane %v1804_v52, 5  ;;  %v2144_v10 = vrot.slane %v1801_v50, 4  ;;  %v1163_v13 = vsel %vm4986_vm6, %v1155_v48, %v1162_v55 }
  0x59   : > { %v1797_v15 = vor.u32 %v1795_v45, %v1794_v60  ;;  %v1799_v17 = vrot.slane %v1794_v60, 4  ;;  %v2140_v19 = vor.u32 %v2139_v63, %v2138_v61  ;;  %v2602_v20 = vunpack.c.l.b16 %v1154_v0  ;;  %3034 = vrot.lane.b32.xlu1 %v4447_v56, %s4695_s19 }
  0x5a   : > { %v1806_v21 = vor.u32 %v1804_v52, %v1803_v1  ;;  %v2145_v22 = vor.u32 %v2144_v10, %v2142_v8  ;;  %v2603_v23 = vunpack.c.l.b16 %v1163_v13  ;;  %v1501_v29 = vor.u32 %v1500_v41, %v1498_v38  ;;  %v4082_v10 = vld [vmem:[#allocation2 + $0x84] sm:$0xf] }
  0x5b   : > { %v1798_v44 = vsel %vm4986_vm6, %v4919_v39, %v1797_v15  ;;  %v2141_v26 = vrot.slane %v2140_v19, 4  ;;  %v1280_v31 = vshrl.u32 %v4002_v14, 16  ;;  %v1497_v34 = vrot.slane %v1496_v25, 4  ;;  %v4083_v25 = vld [vmem:[#allocation2 + $0x88] sm:$0xf] }
  0x5c   : > { %v1807_v35 = vsel %vm4986_vm6, %v1799_v17, %v1806_v21  ;;  %v2874_v36 = vunpack.c.l.b16 %v1798_v44  ;;  %v2146_v37 = vrot.slane %v2145_v22, 4  ;;  %v2634_v42 = vpack.c.b16 %v2603_v23, %v2602_v20 }
  0x5d   : > { %v2875_v43 = vunpack.c.l.b16 %v1807_v35  ;;  %v2143_v32 = vsel %vm4931_vm3, %v2141_v26, %v2142_v8  ;;  %v1502_v45 = vrot.slane %v1501_v29, 4  ;;  %v1283_v41 = vshll.u32 %v4002_v14, 16 }
  0x5e   : > { %v2151_v39 = vsel %vm4931_vm3, %v2146_v37, %v4921_v40  ;;  %v3066_v46 = vunpack.c.l.b16 %v2143_v32  ;;  %v1289_v48 = vshrl.u32 %v4003_v30, 16  ;;  %v1499_v52 = vsel %vm4931_vm3, %v1497_v34, %v1498_v38 }
  0x5f   : > { %v2906_v49 = vpack.c.b16 %v2875_v43, %v2874_v36  ;;  %v3067_v50 = vunpack.c.l.b16 %v2151_v39  ;;  %v1507_v55 = vsel %vm4931_vm3, %v1502_v45, %v4950_v62  ;;  %v2794_v56 = vunpack.c.l.b16 %v1499_v52  ;;  %v4081_v43 = vld [vmem:[#allocation2 + $0x80] sm:$0xf]  ;;  %v5035_v39 = vld [vmem:[#allocation2 + $0x24] sm:$0xf] }
  0x60   : > { %v2795_v60 = vunpack.c.l.b16 %v1507_v55  ;;  %v1292_v61 = vshll.u32 %v4003_v30, 16  ;;  %v1578_v63 = vrot.slane %v1280_v31, 4  ;;  %v1579_v0 = vrot.slane %v1283_v41, 5  ;;  %v3981_v45 = vld [vmem:[#allocation2 + $0x20] sm:$0xf] }
  0x61   : > { %2922 = vrot.lane.b32.xlu2 %v2906_v49, %s4696_s20  ;;  %v3098_v40 = vpack.c.b16 %v3067_v50, %v3066_v46  ;;  %v1584_v1 = vrot.slane %v1289_v48, 4  ;;  %v1282_v8 = vrot.slane %v1280_v31, 7  ;;  %v1291_v15 = vrot.slane %v1289_v48, 7  ;;  %2650 = vrot.lane.b32.xlu1 %v2634_v42, %s4698_s28 }
  0x62   : > { %v2826_v13 = vpack.c.b16 %v2795_v60, %v2794_v56  ;;  %v1582_v14 = vrot.slane %v1292_v61, 5  ;;  %v939_v62 = vsel %vm4931_vm3, %v4975_v27, %v4959_v9  ;;  %v1580_v38 = vor.u32 %v1579_v0, %v1578_v63 }
  0x63   : > { %3114 = vrot.lane.b32.xlu0 %v3098_v40, %s4697_s27  ;;  %v1285_v17 = vor.u32 %v1283_v41, %v1282_v8  ;;  %v1287_v19 = vrot.slane %v1282_v8, 4  ;;  %v942_v20 = vrot.slane %v941_v24, 4  ;;  %v1294_v22 = vor.u32 %v1292_v61, %v1291_v15  ;;  %v5039_v61 = vld [vmem:[#allocation2 + $0x28] sm:$0xf] }
  0x64   : > { %v1585_v21 = vor.u32 %v1584_v1, %v1582_v14  ;;  %v2534_v23 = vunpack.c.l.b16 %v939_v62  ;;  %v1924_v44 = vshrl.u32 %v4082_v10, 16  ;;  %v1581_v26 = vrot.slane %v1580_v38, 4 }
  0x65   : > { %v1286_v27 = vsel %vm4986_vm6, %v4968_v16, %v1285_v17  ;;  %v947_v29 = vsel %vm4931_vm3, %v942_v20, %v4970_v18  ;;  %v1927_v30 = vshll.u32 %v4082_v10, 16  ;;  %v1295_v9 = vsel %vm4986_vm6, %v1287_v19, %v1294_v22 }
  0x66   : > { %v1586_v31 = vrot.slane %v1585_v21, 4  ;;  %v2614_v12 = vunpack.c.l.b16 %v1286_v27  ;;  %v2535_v24 = vunpack.c.l.b16 %v947_v29  ;;  %v1583_v35 = vsel %vm4931_vm3, %v1581_v26, %v1582_v14  ;;  %v5047_v21 = vld [vmem:[#allocation2 + $0x14] sm:$0xf]  ;;  %v5053_v26 = vld [vmem:[#allocation2 + $0x18] sm:$0xf] }
  0x67   : > { %v2615_v36 = vunpack.c.l.b16 %v1295_v9  ;;  %v1933_v37 = vshrl.u32 %v4083_v25, 16  ;;  %v1936_v42 = vshll.u32 %v4083_v25, 16  ;;  %v2806_v32 = vunpack.c.l.b16 %v1583_v35  ;;  %v435_v35 = vld [vmem:[#allocation2 + $0x1c] sm:$0xf] }
  0x68   : > { %v1591_v16 = vsel %vm4931_vm3, %v1586_v31, %v4961_v11  ;;  %v2560_v18 = vpack.c.b16 %v2535_v24, %v2534_v23  ;;  %v2222_v34 = vrot.slane %v1924_v44, 4  ;;  %v2223_v48 = vrot.slane %v1927_v30, 5 }
  0x69   : > { %2842 = vrot.lane.b32.xlu2 %v2826_v13, %s4699_s30  ;;  %v2807_v46 = vunpack.c.l.b16 %v1591_v16  ;;  %v2640_v41 = vpack.c.b16 %v2615_v36, %v2614_v12  ;;  %v2226_v49 = vrot.slane %v1936_v42, 5  ;;  %v2228_v50 = vrot.slane %v1933_v37, 4  ;;  %v330_v16 = vld [vmem:[%s4864_s16 + $0x20] sm:$0xff] }
  0x6a   : > { %v1919_v52 = vshrl.u32 %v4081_v43, 16  ;;  %v1926_v55 = vrot.slane %v1924_v44, 7  ;;  %v1935_v56 = vrot.slane %v1933_v37, 7  ;;  %v2224_v11 = vor.u32 %v2223_v48, %v2222_v34 }
  0x6b   : > { %v2832_v60 = vpack.c.b16 %v2807_v46, %v2806_v32  ;;  %2662 = vrot.lane.b32.xlu1 %v2640_v41, %s4698_s28  ;;  %v1165_v63 = vshrl.u32 %v3981_v45, 16  ;;  %v1170_v40 = vshrl.u32 %v5035_v39, 16  ;;  %v2229_v0 = vor.u32 %v2228_v50, %v2226_v49  ;;  %v331_v32 = vld [vmem:[%s4864_s16 + $0x28] sm:$0xff] }
  0x6c   : > { %v4127_v1 = vrot.slane %v1919_v52, 11  ;;  %v1929_v8 = vor.u32 %v1927_v30, %v1926_v55  ;;  %v1931_v10 = vrot.slane %v1926_v55, 4  ;;  %v2225_v13 = vrot.slane %v2224_v11, 4  ;;  %v4453_v50 = vld [vmem:[#allocation2 + $0x84] sm:$0xff]  ;;  %v4061_v11 = vld [vmem:[#allocation2 + $0x30] sm:$0xf] }
  0x6d   : > { %2854 = vrot.lane.b32.xlu0 %v2832_v60, %s4699_s30  ;;  %v1938_v14 = vor.u32 %v1936_v42, %v1935_v56  ;;  %v4042_v15 = vrot.slane %v1165_v63, 11  ;;  %v1172_v62 = vrot.slane %v1170_v40, 7  ;;  %v2230_v38 = vrot.slane %v2229_v0, 4 }
  0x6e   : > { %v1930_v17 = vsel %vm4986_vm6, %v4127_v1, %v1929_v8  ;;  %v1173_v19 = vshll.u32 %v5035_v39, 16  ;;  %v1179_v20 = vshrl.u32 %v5039_v61, 16  ;;  %v2227_v22 = vsel %vm4931_vm3, %v2225_v13, %v2226_v49  ;;  %v5080_v8 = vld [vmem:[#allocation2 + $0x74] sm:$0xf] }
  0x6f   : > { %v1939_v23 = vsel %vm4986_vm6, %v1931_v10, %v1938_v14  ;;  %v2886_v25 = vunpack.c.l.b16 %v1930_v17  ;;  %v1177_v44 = vrot.slane %v1172_v62, 4  ;;  %v2235_v27 = vsel %vm4931_vm3, %v2230_v38, %v4977_v28  ;;  %v5082_v10 = vld [vmem:[#allocation2 + $0x78] sm:$0xf] }
  0x70   : > { %v3078_v29 = vunpack.c.l.b16 %v2227_v22  ;;  %v2887_v30 = vunpack.c.l.b16 %v1939_v23  ;;  %v1175_v31 = vor.u32 %v1173_v19, %v1172_v62  ;;  %v3079_v9 = vunpack.c.l.b16 %v2235_v27  ;;  %v4416_v17 = vld [vmem:[#allocation2 + $0x14] sm:$0xff] }
  0x71   : > { %2582 = vrot.lane.b32.xlu2 %v2560_v18, %s7073_s18  ;;  %v1181_v12 = vrot.slane %v1179_v20, 7  ;;  %v1182_v24 = vshll.u32 %v5039_v61, 16  ;;  %v523_v36 = vshrl.u32 %v5047_v21, 16  ;;  %v526_v43 = vshll.u32 %v5047_v21, 16  ;;  %v3984_v61 = vld [vmem:[#allocation2 + $0x2c] sm:$0xf] }
  0x72   : > { %v2912_v37 = vpack.c.b16 %v2887_v30, %v2886_v25  ;;  %v1176_v42 = vsel %vm4986_vm6, %v4042_v15, %v1175_v31  ;;  %v532_v28 = vshrl.u32 %v5053_v26, 16  ;;  %v3104_v34 = vpack.c.b16 %v3079_v9, %v3078_v29 }
  0x73   : > { %v1184_v45 = vor.u32 %v1182_v24, %v1181_v12  ;;  %v2604_v18 = vunpack.c.l.b16 %v1176_v42  ;;  %v535_v39 = vshll.u32 %v5053_v26, 16  ;;  %v864_v46 = vrot.slane %v523_v36, 4 }
  0x74   : > { %2934 = vrot.lane.b32.xlu1 %v2912_v37, %s4696_s20  ;;  %v865_v41 = vrot.slane %v526_v43, 5  ;;  %v870_v48 = vrot.slane %v532_v28, 4  ;;  %v874_v49 = vshll.u32 %v435_v35, 16  ;;  %v362_v56 = vpack.c.bf16 %v330_v16, %v330_v16 }
  0x75   : > { %3126 = vrot.lane.b32.xlu0 %v3104_v34, %s4697_s27  ;;  %v1185_v52 = vsel %vm4986_vm6, %v1177_v44, %v1184_v45  ;;  %v868_v55 = vrot.slane %v535_v39, 5  ;;  %v363_v60 = vpack.c.bf16 %v331_v32, %v331_v32  ;;  %v1508_v14 = vrot.slane %v1170_v40, 4 }
  0x76   : > { %v2605_v63 = vunpack.c.l.b16 %v1185_v52  ;;  %v866_v0 = vor.u32 %v865_v41, %v864_v46  ;;  %v876_v1 = vrot.slane %v874_v49, 5  ;;  %395 = vst.msk [vmem:[#allocation2 + $0x34] sm:$0xf] %vm280_vm0, %v362_v56  ;;  %v1509_v15 = vrot.slane %v1173_v19, 5  ;;  %v459_v19 = vld [vmem:[#allocation2 + $0x7c] sm:$0xf] }
  0x77   : > { %v871_v13 = vor.u32 %v870_v48, %v868_v55  ;;  %v1512_v62 = vrot.slane %v1182_v24, 5  ;;  %396 = vst.msk [vmem:[#allocation2 + $0x38] sm:$0xf] %vm280_vm0, %v363_v60  ;;  %v1809_v23 = vshrl.u32 %v4061_v11, 16  ;;  %v1514_v25 = vrot.slane %v1179_v20, 4 }
  0x78   : > { %v2635_v38 = vpack.c.b16 %v2605_v63, %v2604_v18  ;;  %v867_v22 = vrot.slane %v866_v0, 4  ;;  %v1510_v27 = vor.u32 %v1509_v15, %v1508_v14  ;;  %v1518_v29 = vshll.u32 %v3984_v61, 16 }
  0x79   : > { %3046 = vrot.lane.b32.xlu2 %v4453_v50, %s4695_s19  ;;  %v872_v44 = vrot.slane %v871_v13, 4  ;;  %v655_v30 = vshrl.u32 %v5080_v8, 16  ;;  %v1515_v40 = vor.u32 %v1514_v25, %v1512_v62  ;;  %v658_v9 = vshll.u32 %v5080_v8, 16  ;;  %v4432_v13 = vld [vmem:[#allocation2 + $0x24] sm:$0xff] }
  0x7a   : > { %v869_v31 = vsel %vm4931_vm3, %v867_v22, %v868_v55  ;;  %v7037_v12 = vshrl.u32 %v5082_v10, 16  ;;  %v1511_v35 = vrot.slane %v1510_v27, 4  ;;  %v1520_v37 = vrot.slane %v1518_v29, 5  ;;  %v4064_v27 = vld [vmem:[#allocation2 + $0x3c] sm:$0xf] }
  0x7b   : > { %v877_v24 = vsel %vm4931_vm3, %v872_v44, %v876_v1  ;;  %v2524_v20 = vunpack.c.l.b16 %v869_v31  ;;  %v1516_v16 = vrot.slane %v1515_v40, 4  ;;  %v7036_v32 = vshll.u32 %v5082_v10, 16 }
  0x7c   : > { %2492 = vrot.lane.b32.xlu1 %v4416_v17, %s4692_s11  ;;  %v2525_v42 = vunpack.c.l.b16 %v877_v24  ;;  %v948_v34 = vrot.slane %v655_v30, 4  ;;  %v1513_v45 = vsel %vm4931_vm3, %v1511_v35, %v1512_v62  ;;  %v949_v18 = vrot.slane %v658_v9, 5  ;;  %v4005_v35 = vld [vmem:[#allocation2 + $0x80] sm:$0xf] }
  0x7d   : > { %2652 = vrot.lane.b32.xlu0 %v2635_v38, %s4698_s28  ;;  %v954_v46 = vrot.slane %v7037_v12, 4  ;;  %v958_v41 = vshll.u32 %v459_v19, 16  ;;  %v4062_v49 = vld [vmem:[#allocation2 + $0x34] sm:$0xf]  ;;  %v1521_v50 = vsel %vm4931_vm3, %v1516_v16, %v1520_v37  ;;  %v2796_v52 = vunpack.c.l.b16 %v1513_v45  ;;  %v4104_v12 = vld [vmem:[#allocation2 + $0xdc] sm:$0xf] }
  0x7e   : > { %v2555_v48 = vpack.c.b16 %v2525_v42, %v2524_v20  ;;  %v952_v55 = vrot.slane %v7036_v32, 5  ;;  %v4063_v56 = vld [vmem:[#allocation2 + $0x38] sm:$0xf]  ;;  %v1814_v60 = vshrl.u32 %v4062_v49, 16  ;;  %v1817_v11 = vshll.u32 %v4062_v49, 16 }
  0x7f   : > { %v2797_v61 = vunpack.c.l.b16 %v1521_v50  ;;  %v950_v63 = vor.u32 %v949_v18, %v948_v34  ;;  %v1823_v0 = vshrl.u32 %v4063_v56, 16  ;;  %v1826_v1 = vshll.u32 %v4063_v56, 16 }
  0x80   : > { %v955_v14 = vor.u32 %v954_v46, %v952_v55  ;;  %v960_v15 = vrot.slane %v958_v41, 5  ;;  %v4122_v62 = vrot.slane %v1809_v23, 11  ;;  %v1816_v38 = vrot.slane %v1814_v60, 7  ;;  %v4006_v41 = vld [vmem:[#allocation2 + $0x84] sm:$0xf] }
  0x81   : > { %2572 = vrot.lane.b32.xlu2 %v2555_v48, %s7073_s18  ;;  %v951_v17 = vrot.slane %v950_v63, 4  ;;  %v2152_v22 = vrot.slane %v1814_v60, 4  ;;  %v1825_v25 = vrot.slane %v1823_v0, 7  ;;  %v2153_v29 = vrot.slane %v1817_v11, 5  ;;  %v346_v63 = vld [vmem:[%s4864_s16 + $0xa0] sm:$0xff] }
  0x82   : > { %v956_v44 = vrot.slane %v955_v14, 4  ;;  %v2156_v31 = vrot.slane %v1826_v1, 5  ;;  %v1819_v40 = vor.u32 %v1817_v11, %v1816_v38  ;;  %v1821_v19 = vrot.slane %v1816_v38, 4 }
  0x83   : > { %v953_v24 = vsel %vm4931_vm3, %v951_v17, %v952_v55  ;;  %v2158_v20 = vrot.slane %v1823_v0, 4  ;;  %v1828_v37 = vor.u32 %v1826_v1, %v1825_v25  ;;  %v2827_v42 = vpack.c.b16 %v2797_v61, %v2796_v52  ;;  %v4007_v52 = vld [vmem:[#allocation2 + $0x88] sm:$0xf]  ;;  %v4422_v0 = vld [vmem:[#allocation2 + $0x74] sm:$0xff] }
  0x84   : > { %2764 = vrot.lane.b32.xlu1 %v4432_v13, %s4693_s17  ;;  %v961_v23 = vsel %vm4931_vm3, %v956_v44, %v960_v15  ;;  %v2154_v16 = vor.u32 %v2153_v29, %v2152_v22  ;;  %v1820_v34 = vsel %vm4986_vm6, %v4122_v62, %v1819_v40  ;;  %v5117_v45 = vunpack.c.l.b16 %v953_v24  ;;  %v347_v62 = vld [vmem:[%s4864_s16 + $0xa8] sm:$0xff]  ;;  %v475_v44 = vld [vmem:[#allocation2 + $0xbc] sm:$0xf] }
  0x85   : > { %v2159_v18 = vor.u32 %v2158_v20, %v2156_v31  ;;  %v2162_v46 = vshll.u32 %v4064_v27, 16  ;;  %v1829_v48 = vsel %vm4986_vm6, %v1821_v19, %v1828_v37  ;;  %v2876_v49 = vunpack.c.l.b16 %v1820_v34 }
  0x86   : > { %v2155_v50 = vrot.slane %v2154_v16, 4  ;;  %v1297_v55 = vshrl.u32 %v4005_v35, 16  ;;  %v2877_v56 = vunpack.c.l.b16 %v1829_v48  ;;  %v5121_v60 = vunpack.c.l.b16 %v961_v23  ;;  %v4008_v35 = vld [vmem:[#allocation2 + $0x8c] sm:$0xf]  ;;  %v4448_v16 = vld [vmem:[#allocation2 + $0x34] sm:$0xff] }
  0x87   : > { %v2160_v11 = vrot.slane %v2159_v18, 4  ;;  %v2164_v61 = vrot.slane %v2162_v46, 5  ;;  %v1302_v14 = vshrl.u32 %v4006_v41, 16  ;;  %v1305_v15 = vshll.u32 %v4006_v41, 16  ;;  %v343_v23 = vld [vmem:[%s4864_s16 + $0x88] sm:$0xff] }
  0x88   : > { %v2157_v1 = vsel %vm4931_vm3, %v2155_v50, %v2156_v31  ;;  %v4048_v13 = vrot.slane %v1297_v55, 11  ;;  %v2907_v38 = vpack.c.b16 %v2877_v56, %v2876_v49  ;;  %v1311_v25 = vshrl.u32 %v4007_v52, 16 }
  0x89   : > { %2844 = vrot.lane.b32.xlu2 %v2827_v42, %s4699_s30  ;;  %v2165_v17 = vsel %vm4931_vm3, %v2160_v11, %v2164_v61  ;;  %v5130_v22 = vunpack.c.l.b16 %v2157_v1  ;;  %v1304_v29 = vrot.slane %v1302_v14, 7  ;;  %v1314_v40 = vshll.u32 %v4007_v52, 16  ;;  %v342_v42 = vld [vmem:[%s4864_s16 + $0x80] sm:$0xff]  ;;  %v4085_v52 = vld [vmem:[#allocation2 + $0x90] sm:$0xf] }
  0x8a   : > { %v3069_v27 = vunpack.c.l.b16 %v2165_v17  ;;  %v378_v31 = vpack.c.bf16 %v346_v63, %v346_v63  ;;  %2924 = vrot.lane.b32.xlu0 %v2907_v38, %s4696_s20  ;;  %v2561_v19 = vpack.c.b16 %v5121_v60, %v5117_v45  ;;  %v1313_v24 = vrot.slane %v1311_v25, 7  ;;  %v348_v61 = vld [vmem:[%s4864_s16 + $0xb0] sm:$0xff]  ;;  %v349_v63 = vld [vmem:[%s4864_s16 + $0xb8] sm:$0xff]  ;;  %v4024_v38 = vld [vmem:[#allocation2 + $0xcc] sm:$0xf] }
  0x8b   : > { %v379_v20 = vpack.c.bf16 %v347_v62, %v347_v62  ;;  %v1592_v37 = vrot.slane %v1302_v14, 4  ;;  %v1307_v34 = vor.u32 %v1305_v15, %v1304_v29  ;;  %v1309_v18 = vrot.slane %v1304_v29, 4  ;;  %v4088_v17 = vld [vmem:[#allocation2 + $0x9c] sm:$0xf] }
  0x8c   : > { %2504 = vrot.lane.b32.xlu1 %v4422_v0, %s4692_s11  ;;  %411 = vst.msk [vmem:[#allocation2 + $0xb4] sm:$0xf] %vm280_vm0, %v378_v31  ;;  %v1014_v46 = vshll.u32 %v475_v44, 16  ;;  %v1593_v41 = vrot.slane %v1305_v15, 5  ;;  %v3099_v48 = vpack.c.b16 %v3069_v27, %v5130_v22  ;;  %v1316_v45 = vor.u32 %v1314_v40, %v1313_v24  ;;  %v4021_v0 = vld [vmem:[#allocation2 + $0xc0] sm:$0xf] }
  0x8d   : > { %412 = vst.msk [vmem:[#allocation2 + $0xb8] sm:$0xf] %vm280_vm0, %v379_v20  ;;  %v1596_v49 = vrot.slane %v1314_v40, 5  ;;  %v1598_v50 = vrot.slane %v1311_v25, 4  ;;  %v1308_v55 = vsel %vm4986_vm6, %v4048_v13, %v1307_v34  ;;  %v1602_v60 = vshll.u32 %v4008_v35, 16 }
  0x8e   : > { %v1594_v56 = vor.u32 %v1593_v41, %v1592_v37  ;;  %v374_v11 = vpack.c.bf16 %v342_v42, %v342_v42  ;;  %v1317_v1 = vsel %vm4986_vm6, %v1309_v18, %v1316_v45  ;;  %v2616_v14 = vunpack.c.l.b16 %v1308_v55  ;;  %v350_v42 = vld [vmem:[%s4864_s16 + $0xc0] sm:$0xff] }
  0x8f   : > { %v1599_v15 = vor.u32 %v1598_v50, %v1596_v49  ;;  %v375_v62 = vpack.c.bf16 %v343_v23, %v343_v23  ;;  %v2617_v22 = vunpack.c.l.b16 %v1317_v1  ;;  %v1604_v44 = vrot.slane %v1602_v60, 5  ;;  %v351_v23 = vld [vmem:[%s4864_s16 + $0xc8] sm:$0xff] }
  0x90   : > { %v1595_v25 = vrot.slane %v1594_v56, 4  ;;  %407 = vst.msk [vmem:[#allocation2 + $0x94] sm:$0xf] %vm280_vm0, %v374_v11  ;;  %v1941_v13 = vshrl.u32 %v4085_v52, 16  ;;  %v380_v29 = vpack.c.bf16 %v348_v61, %v348_v61  ;;  %v381_v40 = vpack.c.bf16 %v349_v63, %v349_v63  ;;  %v4438_v61 = vld [vmem:[#allocation2 + $0x84] sm:$0xff] }
  0x91   : > { %3036 = vrot.lane.b32.xlu2 %v4448_v16, %s4695_s19  ;;  %v1600_v27 = vrot.slane %v1599_v15, 4  ;;  %408 = vst.msk [vmem:[#allocation2 + $0x98] sm:$0xf] %vm280_vm0, %v375_v62  ;;  %v1385_v31 = vshrl.u32 %v4021_v0, 16  ;;  %v2641_v24 = vpack.c.b16 %v2617_v22, %v2616_v14  ;;  %v5150_v20 = vrot.slane %v1014_v46, 5 }
  0x92   : > { %v1597_v35 = vsel %vm4931_vm3, %v1595_v25, %v1596_v49  ;;  %v1658_v37 = vshll.u32 %v4024_v38, 16  ;;  %2584 = vrot.lane.b32.xlu0 %v2561_v19, %s7073_s18  ;;  %v5163_v41 = vrot.slane %v1941_v13, 11  ;;  %413 = vst.msk [vmem:[#allocation2 + $0xc4] sm:$0xf] %vm280_vm0, %v380_v29  ;;  %v2246_v46 = vshll.u32 %v4088_v17, 16 }
  0x93   : > { %v5157_v34 = vld [vmem:[#allocation2 + $0xb4] sm:$0xf]  ;;  %v1605_v16 = vsel %vm4931_vm3, %v1600_v27, %v1604_v44  ;;  %v5161_v18 = vunpack.c.l.b16 %v1597_v35  ;;  %v5173_v52 = vrot.slane %v1385_v31, 11  ;;  %414 = vst.msk [vmem:[#allocation2 + $0xc8] sm:$0xf] %vm280_vm0, %v381_v40  ;;  %v382_v11 = vpack.c.bf16 %v350_v42, %v350_v42 }
  0x94   : > { %3116 = vrot.lane.b32.xlu1 %v3099_v48, %s4697_s27  ;;  %v5167_v45 = vld [vmem:[#allocation2 + $0xb8] sm:$0xf]  ;;  %v7035_v49 = vshrl.u32 %v5157_v34, 16  ;;  %v7030_v19 = vshll.u32 %v5157_v34, 16  ;;  %v5171_v50 = vunpack.c.l.b16 %v1605_v16  ;;  %v5178_v60 = vrot.slane %v1658_v37, 5  ;;  %v332_v48 = vld [vmem:[%s4864_s16 + $0x30] sm:$0xff] }
  0x95   : > { %v7031_v55 = vshrl.u32 %v5167_v45, 16  ;;  %v7029_v56 = vshll.u32 %v5167_v45, 16  ;;  %v5185_v1 = vrot.slane %v2246_v46, 5  ;;  %v383_v14 = vpack.c.bf16 %v351_v23, %v351_v23  ;;  %v5187_v15 = vld [vmem:[#allocation2 + $0xd0] sm:$0xf]  ;;  %v4426_v44 = vld [vmem:[#allocation2 + $0xb4] sm:$0xff] }
  0x96   : > { %v1004_v63 = vrot.slane %v7035_v49, 4  ;;  %v1005_v0 = vrot.slane %v7030_v19, 5  ;;  %v2833_v17 = vpack.c.b16 %v5171_v50, %v5161_v18  ;;  %415 = vst.msk [vmem:[#allocation2 + $0xd4] sm:$0xf] %vm280_vm0, %v382_v11  ;;  %v364_v40 = vpack.c.bf16 %v332_v48, %v332_v48 }
  0x97   : > { %v1008_v62 = vrot.slane %v7029_v56, 5  ;;  %v1010_v38 = vrot.slane %v7031_v55, 4  ;;  %v4086_v22 = vld [vmem:[#allocation2 + $0x94] sm:$0xf]  ;;  %416 = vst.msk [vmem:[#allocation2 + $0xd8] sm:$0xf] %vm280_vm0, %v383_v14 }
  0x98   : > { %v1006_v25 = vor.u32 %v1005_v0, %v1004_v63  ;;  %v4087_v13 = vld [vmem:[#allocation2 + $0x98] sm:$0xf]  ;;  %v1946_v27 = vshrl.u32 %v4086_v22, 16  ;;  %v1949_v29 = vshll.u32 %v4086_v22, 16  ;;  %v2029_v42 = vshrl.u32 %v5187_v15, 16 }
  0x99   : > { %2664 = vrot.lane.b32.xlu2 %v2641_v24, %s4698_s28  ;;  %v1011_v31 = vor.u32 %v1010_v38, %v1008_v62  ;;  %v1955_v35 = vshrl.u32 %v4087_v13, 16  ;;  %v1958_v37 = vshll.u32 %v4087_v13, 16  ;;  %v4022_v18 = vld [vmem:[#allocation2 + $0xc4] sm:$0xf]  ;;  %397 = vst.msk [vmem:[#allocation2 + $0x44] sm:$0xf] %vm280_vm0, %v364_v40 }
  0x9a   : > { %v1007_v23 = vrot.slane %v1006_v25, 4  ;;  %v1948_v16 = vrot.slane %v1946_v27, 7  ;;  %v2236_v46 = vrot.slane %v1946_v27, 4  ;;  %v2237_v50 = vrot.slane %v1949_v29, 5  ;;  %2776 = vrot.lane.b32.xlu0 %v4438_v61, %s4693_s17  ;;  %v4023_v22 = vld [vmem:[#allocation2 + $0xc8] sm:$0xf] }
  0x9b   : > { %v1012_v11 = vrot.slane %v1011_v31, 4  ;;  %v1957_v63 = vrot.slane %v1955_v35, 7  ;;  %v1390_v0 = vshrl.u32 %v4022_v18, 16  ;;  %v1393_v48 = vshll.u32 %v4022_v18, 16 }
  0x9c   : > { %v1009_v24 = vsel %vm4931_vm3, %v1007_v23, %v1008_v62  ;;  %2512 = vrot.lane.b32.xlu1 %v4426_v44, %s4692_s11  ;;  %v1951_v38 = vor.u32 %v1949_v29, %v1948_v16  ;;  %v1953_v14 = vrot.slane %v1948_v16, 4  ;;  %v2238_v15 = vor.u32 %v2237_v50, %v2236_v46 }
  0x9d   : > { %v1017_v25 = vsel %vm4931_vm3, %v1012_v11, %v5150_v20  ;;  %v2544_v13 = vunpack.c.l.b16 %v1009_v24  ;;  %v1960_v27 = vor.u32 %v1958_v37, %v1957_v63  ;;  %v1392_v61 = vrot.slane %v1390_v0, 7 }
  0x9e   : > { %v2545_v31 = vunpack.c.l.b16 %v1017_v25  ;;  %v1952_v18 = vsel %vm4986_vm6, %v5163_v41, %v1951_v38  ;;  %v1399_v56 = vshrl.u32 %v4023_v22, 16  ;;  %v1402_v62 = vshll.u32 %v4023_v22, 16  ;;  %v5216_v22 = vld [vmem:[#allocation2 + $0xd4] sm:$0xf] }
  0x9f   : > { %v1961_v44 = vsel %vm4986_vm6, %v1953_v14, %v1960_v27  ;;  %v2888_v29 = vunpack.c.l.b16 %v1952_v18  ;;  %v1395_v23 = vor.u32 %v1393_v48, %v1392_v61  ;;  %v1397_v16 = vrot.slane %v1392_v61, 4 }
  0xa0   : > { %v2565_v46 = vpack.c.b16 %v2545_v31, %v2544_v13  ;;  %v2889_v20 = vunpack.c.l.b16 %v1961_v44  ;;  %v1401_v50 = vrot.slane %v1399_v56, 7  ;;  %v1648_v11 = vrot.slane %v1390_v0, 4 }
  0xa1   : > { %2856 = vrot.lane.b32.xlu2 %v2833_v17, %s4699_s30  ;;  %v1396_v41 = vsel %vm4986_vm6, %v5173_v52, %v1395_v23  ;;  %v1649_v63 = vrot.slane %v1393_v48, 5  ;;  %v1652_v24 = vrot.slane %v1402_v62, 5  ;;  %v1654_v38 = vrot.slane %v1399_v56, 4  ;;  %v5219_v17 = vld [vmem:[#allocation2 + $0xd8] sm:$0xf] }
  0xa2   : > { %v2913_v14 = vpack.c.b16 %v2889_v20, %v2888_v29  ;;  %v1404_v25 = vor.u32 %v1402_v62, %v1401_v50  ;;  %v2624_v27 = vunpack.c.l.b16 %v1396_v41  ;;  %v2239_v61 = vrot.slane %v2238_v15, 4  ;;  %2592 = vrot.lane.b32.xlu0 %v2565_v46, %s7073_s18  ;;  %v4470_v52 = vld [vmem:[%s7083_s1 + $0x38] sm:$0xff]  ;;  %v4469_v29 = vld [vmem:[%s7083_s1 + $0x30] sm:$0xff] }
  0xa3   : > { %v1650_v40 = vor.u32 %v1649_v63, %v1648_v11  ;;  %v1655_v13 = vor.u32 %v1654_v38, %v1652_v24  ;;  %v2240_v0 = vrot.slane %v1958_v37, 5  ;;  %v2242_v31 = vrot.slane %v1955_v35, 4  ;;  %3528 = vmatpush.bf16.msra.mxu0 %v4470_v52  ;;  %4481 = vmatpush.bf16.msra.mxu2 %v4470_v52  ;;  %v3985_v20 = vld [vmem:[#allocation2 + $0x30] sm:$0xf]  ;;  %v5239_v50 = vld [vmem:[#allocation2 + $0x34] sm:$0xf] }
  0xa4   : > { %2936 = vrot.lane.b32.xlu1 %v2913_v14, %s4696_s20  ;;  %v1405_v56 = vsel %vm4986_vm6, %v1397_v16, %v1404_v25  ;;  %v4132_v48 = vrot.slane %v2029_v42, 11  ;;  %v2034_v15 = vshrl.u32 %v5216_v22, 16  ;;  %v2037_v18 = vshll.u32 %v5216_v22, 16  ;;  %4482 = vmatpush.bf16.msra.mxu3 %v4470_v52  ;;  %v4454_v11 = vld [vmem:[#allocation2 + $0x94] sm:$0xff] }
  0xa5   : > { %v2625_v62 = vunpack.c.l.b16 %v1405_v56  ;;  %v1651_v44 = vrot.slane %v1650_v40, 4  ;;  %v1656_v37 = vrot.slane %v1655_v13, 4  ;;  %v2241_v35 = vsel %vm4931_vm3, %v2239_v61, %v2240_v0  ;;  %4480 = vmatpush.bf16.msra.mxu1 %v4470_v52  ;;  %v4442_v40 = vld [vmem:[#allocation2 + $0xc4] sm:$0xff] }
  0xa6   : > { %v2243_v23 = vor.u32 %v2242_v31, %v2240_v0  ;;  %v5234_v46 = vunpack.c.l.b16 %v2241_v35  ;;  %v2036_v42 = vrot.slane %v2034_v15, 7  ;;  %v2043_v16 = vshrl.u32 %v5219_v17, 16  ;;  %v5253_v31 = vld [vmem:[#allocation2 + $0x24] sm:$0xf] }
  0xa7   : > { %v2645_v41 = vpack.c.b16 %v2625_v62, %v2624_v27  ;;  %v1653_v63 = vsel %vm4931_vm3, %v1651_v44, %v1652_v24  ;;  %v1661_v38 = vsel %vm4931_vm3, %v1656_v37, %v5178_v60  ;;  %v2046_v14 = vshll.u32 %v5219_v17, 16  ;;  %v5258_v60 = vld [vmem:[#allocation2 + $0x38] sm:$0xf]  ;;  %3529 = vmatpush.bf16.msra.mxu0 %v4469_v29  ;;  %4484 = vmatpush.bf16.msra.mxu2 %v4469_v29 }
  0xa8   : > { %v5247_v25 = vunpack.c.l.b16 %v1653_v63  ;;  %v5249_v61 = vunpack.c.l.b16 %v1661_v38  ;;  %v2244_v13 = vrot.slane %v2243_v23, 4  ;;  %v2039_v0 = vor.u32 %v2037_v18, %v2036_v42  ;;  %v5269_v23 = vld [vmem:[#allocation2 + $0x28] sm:$0xf]  ;;  %4485 = vmatpush.bf16.msra.mxu3 %v4469_v29  ;;  %v333_v17 = vld [vmem:[%s4864_s16 + $0x38] sm:$0xff] }
  0xa9   : > { %2672 = vrot.lane.b32.xlu2 %v2645_v41, %s4698_s28  ;;  %v2041_v24 = vrot.slane %v2036_v42, 4  ;;  %v2045_v27 = vrot.slane %v2043_v16, 7  ;;  %v1187_v52 = vshrl.u32 %v3985_v20, 16  ;;  %v1192_v56 = vshrl.u32 %v5239_v50, 16  ;;  %4483 = vmatpush.bf16.msra.mxu1 %v4469_v29 }
  0xaa   : > { %v2837_v62 = vpack.c.b16 %v5249_v61, %v5247_v25  ;;  %v2249_v44 = vsel %vm4931_vm3, %v2244_v13, %v5185_v1  ;;  %v2040_v37 = vsel %vm4986_vm6, %v4132_v48, %v2039_v0  ;;  %v1195_v35 = vshll.u32 %v5239_v50, 16  ;;  %3048 = vrot.lane.b32.xlu0 %v4454_v11, %s4695_s19  ;;  %v439_v13 = vld [vmem:[#allocation2 + $0x2c] sm:$0xf] }
  0xab   : > { %v3081_v42 = vunpack.c.l.b16 %v2249_v44  ;;  %v2048_v20 = vor.u32 %v2046_v14, %v2045_v27  ;;  %v2896_v41 = vunpack.c.l.b16 %v2040_v37  ;;  %v4043_v63 = vrot.slane %v1187_v52, 11 }
  0xac   : > { %2784 = vrot.lane.b32.xlu1 %v4442_v40, %s4693_s17  ;;  %v1194_v1 = vrot.slane %v1192_v56, 7  ;;  %v1201_v48 = vshrl.u32 %v5258_v60, 16  ;;  %v1204_v38 = vshll.u32 %v5258_v60, 16  ;;  %v7032_v25 = vshrl.u32 %v5253_v31, 16  ;;  %v4468_v40 = vld [vmem:[%s7083_s1 + $0x28] sm:$0xff] }
  0xad   : > { %v3105_v11 = vpack.c.b16 %v3081_v42, %v5234_v46  ;;  %v2049_v61 = vsel %vm4986_vm6, %v2041_v24, %v2048_v20  ;;  %v7033_v0 = vshll.u32 %v5253_v31, 16  ;;  %v7034_v29 = vshrl.u32 %v5269_v23, 16  ;;  %3530 = vmatpush.bf16.msra.mxu0 %v4468_v40  ;;  %4487 = vmatpush.bf16.msra.mxu2 %v4468_v40 }
  0xae   : > { %v2897_v27 = vunpack.c.l.b16 %v2049_v61  ;;  %v1197_v52 = vor.u32 %v1195_v35, %v1194_v1  ;;  %v1199_v44 = vrot.slane %v1194_v1, 4  ;;  %v1203_v46 = vrot.slane %v1201_v48, 7  ;;  %v4467_v61 = vld [vmem:[%s7083_s1 + $0x20] sm:$0xff]  ;;  %4488 = vmatpush.bf16.msra.mxu3 %v4468_v40  ;;  %4486 = vmatpush.bf16.msra.mxu1 %v4468_v40 }
  0xaf   : > { %v557_v37 = vshll.u32 %v5269_v23, 16  ;;  %v878_v24 = vrot.slane %v7032_v25, 4  ;;  %v879_v42 = vrot.slane %v7033_v0, 5  ;;  %v884_v20 = vrot.slane %v7034_v29, 4  ;;  %v5307_v0 = vpop.permute.xlu2 %2774 }
  0xb0   : > { %v2917_v1 = vpack.c.b16 %v2897_v27, %v2896_v41  ;;  %v1198_v19 = vsel %vm4986_vm6, %v4043_v63, %v1197_v52  ;;  %v1206_v55 = vor.u32 %v1204_v38, %v1203_v46  ;;  %v888_v25 = vshll.u32 %v439_v13, 16 }
  0xb1   : > { %3128 = vrot.lane.b32.xlu2 %v3105_v11, %s4697_s27  ;;  %v2606_v29 = vunpack.c.l.b16 %v1198_v19  ;;  %v880_v49 = vor.u32 %v879_v42, %v878_v24  ;;  %v882_v32 = vrot.slane %v557_v37, 5  ;;  %v2292_v41 = vrot.slane %v2034_v15, 4  ;;  %3531 = vmatpush.bf16.msra.mxu0 %v4467_v61  ;;  %v4466_v24 = vld [vmem:[%s7083_s1 + $0x18] sm:$0xff] }
  0xb2   : > { %v1207_v63 = vsel %vm4986_vm6, %v1199_v44, %v1206_v55  ;;  %v890_v27 = vrot.slane %v888_v25, 5  ;;  %v2293_v13 = vrot.slane %v2037_v18, 5  ;;  %v2296_v11 = vrot.slane %v2046_v14, 5  ;;  %2864 = vrot.lane.b32.xlu0 %v2837_v62, %s4699_s30  ;;  %v4417_v55 = vld [vmem:[#allocation2 + $0x24] sm:$0xff]  ;;  %v428_v18 = vld [vmem:[#allocation2] sm:$0xf]  ;;  %4490 = vmatpush.bf16.msra.mxu2 %v4467_v61 }
  0xb3   : > { %v2607_v19 = vunpack.c.l.b16 %v1207_v63  ;;  %v881_v40 = vrot.slane %v880_v49, 4  ;;  %v885_v52 = vor.u32 %v884_v20, %v882_v32  ;;  %v2298_v46 = vrot.slane %v2043_v16, 4  ;;  %v4065_v16 = vld [vmem:[#allocation2 + $0x40] sm:$0xf]  ;;  %4491 = vmatpush.bf16.msra.mxu3 %v4467_v61  ;;  %4489 = vmatpush.bf16.msra.mxu1 %v4467_v61  ;;  %v5335_v20 = vpop.permute.xlu0 %2490  ;;  %v4465_v61 = vld [vmem:[%s7083_s1 + $0x10] sm:$0xff] }
  0xb4   : > { %2944 = vrot.lane.b32.xlu1 %v2917_v1, %s4696_s20  ;;  %v2294_v15 = vor.u32 %v2293_v13, %v2292_v41  ;;  %v2302_v25 = vshll.u32 %v4104_v12, 16  ;;  %v512_v22 = vrot.slane %v510_v6, 7  ;;  %v496_v63 = vshrl.u32 %v428_v18, 16 }
  0xb5   : > { %v5325_v14 = vpack.c.b16 %v2607_v19, %v2606_v29  ;;  %v883_v49 = vsel %vm4931_vm3, %v881_v40, %v882_v32  ;;  %v886_v62 = vrot.slane %v885_v52, 4  ;;  %v2299_v44 = vor.u32 %v2298_v46, %v2296_v11  ;;  %v4458_v32 = vld [vmem:[#allocation2 + $0xd4] sm:$0xff]  ;;  %3532 = vmatpush.bf16.msra.mxu0 %v4466_v24  ;;  %v5346_v40 = vld [vmem:[#allocation2 + $0x44] sm:$0xf] }
  0xb6   : > { %v2526_v12 = vunpack.c.l.b16 %v883_v49  ;;  %v2295_v42 = vrot.slane %v2294_v15, 4  ;;  %v2304_v6 = vrot.slane %v2302_v25, 5  ;;  %v515_v29 = vor.u32 %v513_v7, %v512_v22  ;;  %4493 = vmatpush.bf16.msra.mxu2 %v4466_v24  ;;  %v3988_v49 = vld [vmem:[#allocation2 + $0x3c] sm:$0xf] }
  0xb7   : > { %v891_v1 = vsel %vm4931_vm3, %v886_v62, %v890_v27  ;;  %v2300_v41 = vrot.slane %v2299_v44, 4  ;;  %v503_v13 = vrot.slane %v501_v4, 7  ;;  %v365_v7 = vpack.c.bf16 %v333_v17, %v333_v17  ;;  %4494 = vmatpush.bf16.msra.mxu3 %v4466_v24  ;;  %4492 = vmatpush.bf16.msra.mxu1 %v4466_v24  ;;  %v452_v17 = vld [vmem:[#allocation2 + $0x60] sm:$0xf] }
  0xb8   : > { %v2527_v19 = vunpack.c.l.b16 %v891_v1  ;;  %v2297_v3 = vsel %vm4931_vm3, %v2295_v42, %v2296_v11  ;;  %v1831_v52 = vshrl.u32 %v4065_v16, 16  ;;  %v3961_v46 = vrot.slane %v496_v63, 11 }
  0xb9   : > { %2494 = vrot.lane.b32.xlu2 %v4417_v55, %s4692_s11  ;;  %v2305_v27 = vsel %vm4931_vm3, %v2300_v41, %v2304_v6  ;;  %v3088_v4 = vunpack.c.l.b16 %v2297_v3  ;;  %v506_v15 = vor.u32 %v504_v5, %v503_v13  ;;  %v508_v18 = vrot.slane %v503_v13, 4  ;;  %398 = vst.msk [vmem:[#allocation2 + $0x48] sm:$0xf] %vm280_vm0, %v365_v7  ;;  %3533 = vmatpush.bf16.msra.mxu0 %v4465_v61  ;;  %v4433_v3 = vld [vmem:[#allocation2 + $0x34] sm:$0xff] }
  0xba   : > { %v2556_v25 = vpack.c.b16 %v2527_v19, %v2526_v12  ;;  %v3089_v22 = vunpack.c.l.b16 %v2305_v27  ;;  %v4123_v11 = vrot.slane %v1831_v52, 11  ;;  %3056 = vrot.lane.b32.xlu0 %v4458_v32, %s4695_s19  ;;  %v1836_v44 = vshrl.u32 %v5346_v40, 16  ;;  %4496 = vmatpush.bf16.msra.mxu2 %v4465_v61  ;;  %v4463_v19 = vld [vmem:[%s7083_s1] sm:$0xff] }
  0xbb   : > { %v5355_v55 = vpop.permute.xlu2 %2922  ;;  %v507_v62 = vsel %vm4986_vm6, %v3961_v46, %v506_v15  ;;  %v1839_v2 = vshll.u32 %v5346_v40, 16  ;;  %v1522_v5 = vrot.slane %v1192_v56, 4  ;;  %v516_v24 = vsel %vm4986_vm6, %v508_v18, %v515_v29  ;;  %v4464_v29 = vld [vmem:[%s7083_s1 + $0x8] sm:$0xff]  ;;  %4497 = vmatpush.bf16.msra.mxu3 %v4465_v61  ;;  %4495 = vmatpush.bf16.msra.mxu1 %v4465_v61  ;;  %v5401_v18 = vld [vmem:[#allocation2 + $0x84] sm:$0xf] }
  0xbc   : > { %2574 = vrot.lane.b32.xlu1 %v2556_v25, %s7073_s18  ;;  %v3109_v16 = vpack.c.b16 %v3089_v22, %v3088_v4  ;;  %v2362_v12 = vunpack.c.l.b16 %v507_v62  ;;  %v1523_v42 = vrot.slane %v1195_v35, 5  ;;  %v2363_v6 = vunpack.c.l.b16 %v516_v24  ;;  %v5407_v62 = vld [vmem:[#allocation2 + $0x88] sm:$0xf] }
  0xbd   : > { %v5370_v32 = vrot.slane %v1836_v44, 7  ;;  %v1526_v56 = vrot.slane %v1204_v38, 5  ;;  %v1528_v1 = vrot.slane %v1201_v48, 4  ;;  %v1532_v50 = vshll.u32 %v3988_v49, 16  ;;  %3534 = vmatpush.bf16.msra.mxu0 %v4464_v29  ;;  %v2503_v61 = vpop.permute.xlu0 %2502 }
  0xbe   : > { %v1524_v41 = vor.u32 %v1523_v42, %v1522_v5  ;;  %v628_v35 = vshrl.u32 %v452_v17, 16  ;;  %v644_v63 = vrot.slane %v642_v58, 7  ;;  %v2394_v13 = vpack.c.b16 %v2363_v6, %v2362_v12  ;;  %4499 = vmatpush.bf16.msra.mxu2 %v4464_v29 }
  0xbf   : > { %v1841_v38 = vor.u32 %v1839_v2, %v5370_v32  ;;  %v1843_v60 = vrot.slane %v5370_v32, 4  ;;  %v1529_v48 = vor.u32 %v1528_v1, %v1526_v56  ;;  %v1534_v52 = vrot.slane %v1532_v50, 5  ;;  %4500 = vmatpush.bf16.msra.mxu3 %v4464_v29  ;;  %4498 = vmatpush.bf16.msra.mxu1 %v4464_v29  ;;  %v4009_v1 = vld [vmem:[#allocation2 + $0x90] sm:$0xf] }
  0xc0   : > { %v1525_v7 = vrot.slane %v1524_v41, 4  ;;  %v3967_v27 = vrot.slane %v628_v35, 11  ;;  %v647_v58 = vor.u32 %v645_v59, %v644_v63  ;;  %v5393_v4 = vsel %vm3146_vm7, %v2394_v13, %v5335_v20  ;;  %v5395_v46 = vld [vmem:[#allocation2 + $0x48] sm:$0xf]  ;;  %v5431_v63 = vld [vmem:[#allocation2 + $0x94] sm:$0xf] }
  0xc1   : > { %3136 = vrot.lane.b32.xlu2 %v3109_v16, %s4697_s27  ;;  %v1842_v15 = vsel %vm4986_vm6, %v4123_v11, %v1841_v38  ;;  %v1530_v25 = vrot.slane %v1529_v48, 4  ;;  %v635_v22 = vrot.slane %v633_v54, 7  ;;  %v1845_v53 = vshrl.u32 %v5395_v46, 16  ;;  %3535 = vmatpush.bf16.msra.mxu0 %v4463_v19 }
  0xc2   : > { %v1848_v59 = vshll.u32 %v5395_v46, 16  ;;  %v2878_v49 = vunpack.c.l.b16 %v1842_v15  ;;  %v1527_v20 = vsel %vm4931_vm3, %v1525_v7, %v1526_v56  ;;  %2654 = vrot.lane.b32.xlu0 %v5325_v14, %s4698_s28  ;;  %v677_v14 = vshrl.u32 %v5401_v18, 16  ;;  %4502 = vmatpush.bf16.msra.mxu2 %v4463_v19 }
  0xc3   : > { %v5411_v11 = vpop.permute.xlu2 %2842  ;;  %v1535_v54 = vsel %vm4931_vm3, %v1530_v25, %v1534_v52  ;;  %v2798_v5 = vunpack.c.l.b16 %v1527_v20  ;;  %v638_v17 = vor.u32 %v636_v57, %v635_v22  ;;  %v640_v16 = vrot.slane %v635_v22, 4  ;;  %v5425_v51 = vpop.permute.xlu1 %2762  ;;  %v463_v57 = vld [vmem:[#allocation2 + $0x8c] sm:$0xf]  ;;  %4503 = vmatpush.bf16.msra.mxu3 %v4463_v19  ;;  %4501 = vmatpush.bf16.msra.mxu1 %v4463_v19  ;;  %v5445_v20 = vld [vmem:[#allocation2 + $0x98] sm:$0xf] }
  0xc4   : > { %v1847_v24 = vrot.slane %v1845_v53, 7  ;;  %2766 = vrot.lane.b32.xlu1 %v4433_v3, %s4693_s17  ;;  %v2799_v12 = vunpack.c.l.b16 %v1535_v54  ;;  %v7041_v32 = vshll.u32 %v5401_v18, 16  ;;  %v7043_v56 = vshrl.u32 %v5407_v62, 16 }
  0xc5   : > { %v639_v42 = vsel %vm4986_vm6, %v3967_v27, %v638_v17  ;;  %v648_v6 = vsel %vm4986_vm6, %v640_v16, %v647_v58  ;;  %v7040_v13 = vshll.u32 %v5407_v62, 16  ;;  %v962_v38 = vrot.slane %v677_v14, 4  ;;  %v4423_v58 = vld [vmem:[#allocation2 + $0x84] sm:$0xff] }
  0xc6   : > { %v1850_v29 = vor.u32 %v1848_v59, %v1847_v24  ;;  %v2828_v41 = vpack.c.b16 %v2799_v12, %v2798_v5  ;;  %v2374_v50 = vunpack.c.l.b16 %v639_v42  ;;  %v2375_v35 = vunpack.c.l.b16 %v648_v6 }
  0xc7   : > { %v963_v48 = vrot.slane %v7041_v32, 5  ;;  %v968_v3 = vrot.slane %v7043_v56, 4  ;;  %v972_v27 = vshll.u32 %v463_v57, 16  ;;  %v1319_v15 = vshrl.u32 %v4009_v1, 16 }
  0xc8   : > { %v1851_v7 = vsel %vm4986_vm6, %v1843_v60, %v1850_v29  ;;  %v2400_v52 = vpack.c.b16 %v2375_v35, %v2374_v50  ;;  %v966_v22 = vrot.slane %v7040_v13, 5  ;;  %v1324_v54 = vshrl.u32 %v5431_v63, 16  ;;  %v4012_v13 = vld [vmem:[#allocation2 + $0x9c] sm:$0xf] }
  0xc9   : > { %v2879_v25 = vunpack.c.l.b16 %v1851_v7  ;;  %2846 = vrot.lane.b32.xlu2 %v2828_v41, %s4699_s30  ;;  %v964_v19 = vor.u32 %v963_v48, %v962_v38  ;;  %v974_v17 = vrot.slane %v972_v27, 5  ;;  %v2571_v16 = vpop.permute.xlu0 %2570  ;;  %v4049_v60 = vrot.slane %v1319_v15, 11  ;;  %v4449_v38 = vld [vmem:[#allocation2 + $0x44] sm:$0xff]  ;;  %v4068_v48 = vld [vmem:[#allocation2 + $0x4c] sm:$0xf] }
  0xca   : > { %v3167_v5 = vsel %vm3146_vm7, %v2400_v52, %v2503_v61  ;;  %v1327_v24 = vshll.u32 %v5431_v63, 16  ;;  %v969_v57 = vor.u32 %v968_v3, %v966_v22  ;;  %v3197_v1 = vsel %vm3195_vm8, %v5393_v4, %v2571_v16 }
  0xcb   : > { %v2908_v12 = vpack.c.b16 %v2879_v25, %v2878_v49  ;;  %v2583_v42 = vpop.permute.xlu2 %2582  ;;  %v965_v6 = vrot.slane %v964_v19, 4  ;;  %v1326_v61 = vrot.slane %v1324_v54, 7  ;;  %v1333_v41 = vshrl.u32 %v5445_v20, 16  ;;  %v5463_v4 = vpop.permute.xlu1 %3034 }
  0xcc   : > { %v5453_v29 = vsel %vm3195_vm8, %v3167_v5, %v2583_v42  ;;  %2506 = vrot.lane.b32.xlu1 %v4423_v58, %s4692_s11  ;;  %v1336_v50 = vshll.u32 %v5445_v20, 16  ;;  %v970_v35 = vrot.slane %v969_v57, 4  ;;  %v2166_v3 = vrot.slane %v1836_v44, 4 }
  0xcd   : > { %2926 = vrot.lane.b32.xlu0 %v2908_v12, %s4696_s20  ;;  %v967_v49 = vsel %vm4931_vm3, %v965_v6, %v966_v22  ;;  %v2167_v7 = vrot.slane %v1839_v2, 5  ;;  %v1329_v27 = vor.u32 %v1327_v24, %v1326_v61  ;;  %v1331_v58 = vrot.slane %v1326_v61, 4  ;;  %v5484_v6 = vld [vmem:[#allocation2 + $0x44] sm:$0xf] }
  0xce   : > { %v2538_v52 = vunpack.c.l.b16 %v967_v49  ;;  %v1335_v15 = vrot.slane %v1333_v41, 7  ;;  %v975_v25 = vsel %vm4931_vm3, %v970_v35, %v974_v17  ;;  %v2170_v22 = vrot.slane %v1848_v59, 5  ;;  %v5486_v59 = vld [vmem:[#allocation2 + $0x48] sm:$0xf] }
  0xcf   : > { %v2168_v19 = vor.u32 %v2167_v7, %v2166_v3  ;;  %v2172_v44 = vrot.slane %v1845_v53, 4  ;;  %v2539_v40 = vunpack.c.l.b16 %v975_v25  ;;  %v1330_v2 = vsel %vm4986_vm6, %v4049_v60, %v1329_v27  ;;  %v447_v60 = vld [vmem:[#allocation2 + $0x4c] sm:$0xf] }
  0xd0   : > { %v1338_v5 = vor.u32 %v1336_v50, %v1335_v15  ;;  %v2176_v16 = vshll.u32 %v4068_v48, 16  ;;  %v2618_v12 = vunpack.c.l.b16 %v1330_v2  ;;  %v589_v3 = vshrl.u32 %v5484_v6, 16  ;;  %v4419_v15 = vld [vmem:[#allocation2 + $0x44] sm:$0xff] }
  0xd1   : > { %3038 = vrot.lane.b32.xlu2 %v4449_v38, %s4695_s19  ;;  %v2169_v42 = vrot.slane %v2168_v19, 4  ;;  %v2173_v17 = vor.u32 %v2172_v44, %v2170_v22  ;;  %v2562_v46 = vpack.c.b16 %v2539_v40, %v2538_v52  ;;  %v592_v7 = vshll.u32 %v5484_v6, 16 }
  0xd2   : > { %v1339_v53 = vsel %vm4986_vm6, %v1331_v58, %v1338_v5  ;;  %v2178_v57 = vrot.slane %v2176_v16, 5  ;;  %v598_v52 = vshrl.u32 %v5486_v59, 16  ;;  %v916_v44 = vshll.u32 %v447_v60, 16 }
  0xd3   : > { %v5490_v61 = vpop.permute.xlu2 %3046  ;;  %v2619_v49 = vunpack.c.l.b16 %v1339_v53  ;;  %v2171_v35 = vsel %vm4931_vm3, %v2169_v42, %v2170_v22  ;;  %v2174_v38 = vrot.slane %v2173_v17, 4  ;;  %v2651_v19 = vpop.permute.xlu1 %2650  ;;  %v601_v22 = vshll.u32 %v5486_v59, 16  ;;  %v5512_v53 = vld [vmem:[#allocation2 + $0xc4] sm:$0xf] }
  0xd4   : > { %v3070_v48 = vunpack.c.l.b16 %v2171_v35  ;;  %v3230_v2 = vsel %vm3228_vm9, %v3197_v1, %v2651_v19  ;;  %v906_v5 = vrot.slane %v589_v3, 4  ;;  %v907_v16 = vrot.slane %v592_v7, 5 }
  0xd5   : > { %2586 = vrot.lane.b32.xlu0 %v2562_v46, %s7073_s18  ;;  %v2642_v27 = vpack.c.b16 %v2619_v49, %v2618_v12  ;;  %v2179_v58 = vsel %vm4931_vm3, %v2174_v38, %v2178_v57  ;;  %v3115_v25 = vpop.permute.xlu0 %3114  ;;  %v3263_v12 = vsel %vm3261_vm10, %v3230_v2, %v5425_v51  ;;  %v910_v42 = vrot.slane %v601_v22, 5  ;;  %v5516_v49 = vld [vmem:[#allocation2 + $0xc8] sm:$0xf]  ;;  %v479_v38 = vld [vmem:[#allocation2 + $0xcc] sm:$0xf] }
  0xd6   : > { %v3071_v40 = vunpack.c.l.b16 %v2179_v58  ;;  %v912_v17 = vrot.slane %v598_v52, 4  ;;  %v918_v46 = vrot.slane %v916_v44, 5  ;;  %v3296_v1 = vsel %vm3294_vm11, %v3263_v12, %v5411_v11  ;;  %v334_v12 = vld [vmem:[%s4864_s16 + $0x40] sm:$0xff] }
  0xd7   : > { %v908_v60 = vor.u32 %v907_v16, %v906_v5  ;;  %v3329_v35 = vsel %vm3327_vm12, %v3296_v1, %v5355_v55  ;;  %v7038_v58 = vshrl.u32 %v5512_v53, 16  ;;  %v7039_v55 = vshll.u32 %v5512_v53, 16  ;;  %v4439_v1 = vld [vmem:[#allocation2 + $0x94] sm:$0xff] }
  0xd8   : > { %v3100_v57 = vpack.c.b16 %v3071_v40, %v3070_v48  ;;  %v913_v51 = vor.u32 %v912_v17, %v910_v42  ;;  %v3362_v11 = vsel %vm3360_vm13, %v3329_v35, %v5463_v4  ;;  %v7042_v40 = vshrl.u32 %v5516_v49, 16  ;;  %v335_v17 = vld [vmem:[%s4864_s16 + $0x48] sm:$0xff]  ;;  %v3993_v35 = vld [vmem:[#allocation2 + $0x50] sm:$0xf] }
  0xd9   : > { %2498 = vrot.lane.b32.xlu2 %v4419_v15, %s4692_s11  ;;  %v909_v48 = vrot.slane %v908_v60, 4  ;;  %v3395_v44 = vsel %vm3393_vm14, %v3362_v11, %v3115_v25  ;;  %v7044_v5 = vshll.u32 %v5516_v49, 16  ;;  %v1018_v4 = vrot.slane %v7038_v58, 4 }
  0xda   : > { %3118 = vrot.lane.b32.xlu1 %v3100_v57, %s4697_s27  ;;  %v914_v15 = vrot.slane %v913_v51, 4  ;;  %4361 = vmatmul.msk.bf16.vlgmr.msra.gmra.mxu0 %vm3426_vm15, %v3395_v44  ;;  %v1028_v16 = vshll.u32 %v479_v38, 16  ;;  %v1024_v51 = vrot.slane %v7042_v40, 4  ;;  %v4427_v44 = vld [vmem:[#allocation2 + $0xc4] sm:$0xff]  ;;  %v366_v58 = vpack.c.bf16 %v334_v12, %v334_v12 }
  0xdb   : > { %v5525_v19 = vpop.permute.xlu2 %2572  ;;  %v911_v2 = vsel %vm4931_vm3, %v909_v48, %v910_v42  ;;  %v1019_v42 = vrot.slane %v7039_v55, 5  ;;  %v367_v55 = vpack.c.bf16 %v335_v17, %v335_v17  ;;  %v1231_v56 = vshrl.u32 %v3993_v35, 16 }
  0xdc   : > { %v919_v25 = vsel %vm4931_vm3, %v914_v15, %v918_v46  ;;  %v2530_v57 = vunpack.c.l.b16 %v911_v2  ;;  %v1030_v11 = vrot.slane %v1028_v16, 5  ;;  %399 = vst.msk [vmem:[#allocation2 + $0x54] sm:$0xf] %vm280_vm0, %v366_v58  ;;  %v1612_v12 = vrot.slane %v1333_v41, 4 }
  0xdd   : > { %2666 = vrot.lane.b32.xlu0 %v2642_v27, %s4698_s28  ;;  %v2663_v60 = vpop.permute.xlu1 %2662  ;;  %v2531_v48 = vunpack.c.l.b16 %v919_v25  ;;  %v1022_v27 = vrot.slane %v7044_v5, 5  ;;  %v1020_v2 = vor.u32 %v1019_v42, %v1018_v4  ;;  %v1606_v25 = vrot.slane %v1324_v54, 4  ;;  %400 = vst.msk [vmem:[#allocation2 + $0x58] sm:$0xf] %vm280_vm0, %v367_v55  ;;  %v5572_v42 = vld [vmem:[#allocation2 + $0xd8] sm:$0xf] }
  0xde   : > { %v3242_v38 = vsel %vm3228_vm9, %v5453_v29, %v2663_v60  ;;  %v4025_v29 = vld [vmem:[#allocation2 + $0xd0] sm:$0xf]  ;;  %v5553_v60 = vld [vmem:[#allocation2 + $0xd4] sm:$0xf]  ;;  %v1610_v4 = vrot.slane %v1336_v50, 5  ;;  %v5565_v17 = vrot.slane %v1231_v56, 11 }
  0xdf   : > { %v2855_v46 = vpop.permute.xlu0 %2854  ;;  %v3275_v15 = vsel %vm3261_vm10, %v3242_v38, %v5307_v0  ;;  %v2558_v32 = vpack.c.b16 %v2531_v48, %v2530_v57  ;;  %v1025_v40 = vor.u32 %v1024_v51, %v1022_v27  ;;  %v1021_v16 = vrot.slane %v1020_v2, 4 }
  0xe0   : > { %v1607_v0 = vrot.slane %v1327_v24, 5  ;;  %v1616_v57 = vshll.u32 %v4012_v13, 16  ;;  %v1613_v50 = vor.u32 %v1612_v12, %v1610_v4  ;;  %v1407_v20 = vshrl.u32 %v4025_v29, 16  ;;  %v344_v29 = vld [vmem:[%s4864_s16 + $0x90] sm:$0xff] }
  0xe1   : > { %2778 = vrot.lane.b32.xlu2 %v4439_v1, %s4693_s17  ;;  %v1026_v54 = vrot.slane %v1025_v40, 4  ;;  %v3308_v1 = vsel %vm3294_vm11, %v3275_v15, %v2855_v46  ;;  %v1023_v63 = vsel %vm4931_vm3, %v1021_v16, %v1022_v27  ;;  %v1412_v56 = vshrl.u32 %v5553_v60, 16 }
  0xe2   : > { %2578 = vrot.lane.b32.xlu1 %v2558_v32, %s7073_s18  ;;  %v1608_v24 = vor.u32 %v1607_v0, %v1606_v25  ;;  %v2546_v41 = vunpack.c.l.b16 %v1023_v63  ;;  %v1618_v55 = vrot.slane %v1616_v57, 5  ;;  %v1614_v51 = vrot.slane %v1613_v50, 4  ;;  %v432_v50 = vld [vmem:[#allocation2 + $0x10] sm:$0xf] }
  0xe3   : > { %v5568_v58 = vpop.permute.xlu2 %2844  ;;  %v1031_v32 = vsel %vm4931_vm3, %v1026_v54, %v1030_v11  ;;  %v4053_v35 = vrot.slane %v1407_v20, 11  ;;  %v1414_v38 = vrot.slane %v1412_v56, 7  ;;  %v1415_v27 = vshll.u32 %v5553_v60, 16  ;;  %v3994_v16 = vld [vmem:[#allocation2 + $0x54] sm:$0xf] }
  0xe4   : > { %v2547_v13 = vunpack.c.l.b16 %v1031_v32  ;;  %v1609_v40 = vrot.slane %v1608_v24, 4  ;;  %v1421_v46 = vshrl.u32 %v5572_v42, 16  ;;  %v1424_v11 = vshll.u32 %v5572_v42, 16  ;;  %v4089_v24 = vld [vmem:[#allocation2 + $0xa0] sm:$0xf] }
  0xe5   : > { %2514 = vrot.lane.b32.xlu0 %v4427_v44, %s4692_s11  ;;  %v1619_v44 = vsel %vm4931_vm3, %v1614_v51, %v1618_v55  ;;  %v1417_v63 = vor.u32 %v1415_v27, %v1414_v38  ;;  %v1236_v20 = vshrl.u32 %v3994_v16, 16  ;;  %v1239_v32 = vshll.u32 %v3994_v16, 16 }
  0xe6   : > { %v2935_v48 = vpop.permute.xlu1 %2934  ;;  %v2566_v15 = vpack.c.b16 %v2547_v13, %v2546_v41  ;;  %v1611_v2 = vsel %vm4931_vm3, %v1609_v40, %v1610_v4  ;;  %v2811_v12 = vunpack.c.l.b16 %v1619_v44  ;;  %v3995_v4 = vld [vmem:[#allocation2 + $0x58] sm:$0xf]  ;;  %v1419_v55 = vrot.slane %v1414_v38, 4 }
  0xe7   : > { %v3341_v25 = vsel %vm3327_vm12, %v3308_v1, %v2935_v48  ;;  %v2810_v0 = vunpack.c.l.b16 %v1611_v2  ;;  %v3127_v54 = vpop.permute.xlu0 %3126  ;;  %v345_v1 = vld [vmem:[%s4864_s16 + $0x98] sm:$0xff]  ;;  %v1245_v13 = vshrl.u32 %v3995_v4, 16  ;;  %v1248_v40 = vshll.u32 %v3995_v4, 16 }
  0xe8   : > { %v3374_v57 = vsel %vm3360_vm13, %v3341_v25, %v5490_v61  ;;  %v1418_v61 = vsel %vm4986_vm6, %v4053_v35, %v1417_v63  ;;  %v1238_v48 = vrot.slane %v1236_v20, 7  ;;  %v1423_v44 = vrot.slane %v1421_v46, 7 }
  0xe9   : > { %v3407_v41 = vsel %vm3393_vm14, %v3374_v57, %v3127_v54  ;;  %v2834_v51 = vpack.c.b16 %v2811_v12, %v2810_v0  ;;  %v2626_v25 = vunpack.c.l.b16 %v1418_v61  ;;  %v376_v16 = vpack.c.bf16 %v344_v29, %v344_v29 }
  0xea   : > { %4367 = vmatmul.msk.bf16.vlgmr.msra.gmra.mxu2 %vm3426_vm15, %v3407_v41  ;;  %v1247_v5 = vrot.slane %v1245_v13, 7  ;;  %v377_v38 = vpack.c.bf16 %v345_v1, %v345_v1  ;;  %v1963_v54 = vshrl.u32 %v4089_v24, 16  ;;  %v518_v57 = vshrl.u32 %v432_v50, 16 }
  0xeb   : > { %v5598_v2 = vpop.permute.xlu2 %3036  ;;  %2858 = vrot.lane.b32.xlu2 %v2834_v51, %s4699_s30  ;;  %v1241_v0 = vor.u32 %v1239_v32, %v1238_v48  ;;  %v1243_v12 = vrot.slane %v1238_v48, 4  ;;  %v1426_v35 = vor.u32 %v1424_v11, %v1423_v44  ;;  %409 = vst.msk [vmem:[#allocation2 + $0xa4] sm:$0xf] %vm280_vm0, %v376_v16  ;;  %v534_v63 = vrot.slane %v532_v28, 7 }
  0xec   : > { %v1250_v4 = vor.u32 %v1248_v40, %v1247_v5  ;;  %410 = vst.msk [vmem:[#allocation2 + $0xa8] sm:$0xf] %vm280_vm0, %v377_v38  ;;  %v5610_v29 = vrot.slane %v1963_v54, 11  ;;  %v3962_v41 = vrot.slane %v518_v57, 11  ;;  %v3996_v5 = vld [vmem:[#allocation2 + $0x5c] sm:$0xf] }
  0xed   : > { %2594 = vrot.lane.b32.xlu0 %v2566_v15, %s7073_s18  ;;  %v525_v15 = vrot.slane %v523_v36, 7  ;;  %v1242_v50 = vsel %vm4986_vm6, %v5565_v17, %v1241_v0  ;;  %v1427_v1 = vsel %vm4986_vm6, %v1419_v55, %v1426_v35  ;;  %v537_v28 = vor.u32 %v535_v39, %v534_v63  ;;  %v352_v0 = vld [vmem:[%s4864_s16 + $0xd0] sm:$0xff] }
  0xee   : > { %v2493_v24 = vpop.permute.xlu1 %2492  ;;  %v1550_v51 = vrot.slane %v1236_v20, 4  ;;  %v1251_v61 = vsel %vm4986_vm6, %v1243_v12, %v1250_v4  ;;  %v2610_v48 = vunpack.c.l.b16 %v1242_v50  ;;  %v2627_v44 = vunpack.c.l.b16 %v1427_v1 }
  0xef   : > { %v528_v36 = vor.u32 %v526_v43, %v525_v15  ;;  %v2611_v16 = vunpack.c.l.b16 %v1251_v61  ;;  %v530_v38 = vrot.slane %v525_v15, 4  ;;  %v1551_v17 = vrot.slane %v1239_v32, 5  ;;  %v2653_v35 = vpop.permute.xlu0 %2652 }
  0xf0   : > { %v1554_v54 = vrot.slane %v1248_v40, 5  ;;  %v2646_v57 = vpack.c.b16 %v2627_v44, %v2626_v25  ;;  %v1556_v55 = vrot.slane %v1245_v13, 4  ;;  %v1560_v39 = vshll.u32 %v3996_v5, 16 }
  0xf1   : > { %v529_v26 = vsel %vm4986_vm6, %v3962_v41, %v528_v36  ;;  %v2638_v20 = vpack.c.b16 %v2611_v16, %v2610_v48  ;;  %v538_v12 = vsel %vm4986_vm6, %v530_v38, %v537_v28  ;;  %v1552_v21 = vor.u32 %v1551_v17, %v1550_v51 }
  0xf2   : > { %v2364_v63 = vunpack.c.l.b16 %v529_v26  ;;  %v5632_v43 = vld [vmem:[#allocation2 + $0xa4] sm:$0xf]  ;;  %v2365_v32 = vunpack.c.l.b16 %v538_v12  ;;  %v1557_v40 = vor.u32 %v1556_v55, %v1554_v54  ;;  %v1562_v25 = vrot.slane %v1560_v39, 5  ;;  %v4028_v39 = vld [vmem:[#allocation2 + $0xdc] sm:$0xf] }
  0xf3   : > { %v5630_v4 = vpop.permute.xlu2 %2664  ;;  %v1662_v41 = vrot.slane %v1412_v56, 4  ;;  %2658 = vrot.lane.b32.xlu1 %v2638_v20, %s4698_s28  ;;  %v5638_v13 = vld [vmem:[#allocation2 + $0xa8] sm:$0xf]  ;;  %v1968_v15 = vshrl.u32 %v5632_v43, 16  ;;  %v1971_v50 = vshll.u32 %v5632_v43, 16  ;;  %v1553_v1 = vrot.slane %v1552_v21, 4 }
  0xf4   : > { %v384_v28 = vpack.c.bf16 %v352_v0, %v352_v0  ;;  %v1977_v5 = vshrl.u32 %v5638_v13, 16  ;;  %v1980_v51 = vshll.u32 %v5638_v13, 16  ;;  %v2395_v61 = vpack.c.b16 %v2365_v32, %v2364_v63  ;;  %v4435_v0 = vld [vmem:[#allocation2 + $0x54] sm:$0xff]  ;;  %v4073_v32 = vld [vmem:[#allocation2 + $0x60] sm:$0xf] }
  0xf5   : > { %2674 = vrot.lane.b32.xlu0 %v2646_v57, %s4698_s28  ;;  %v1558_v48 = vrot.slane %v1557_v40, 4  ;;  %v1970_v56 = vrot.slane %v1968_v15, 7  ;;  %v1555_v36 = vsel %vm4931_vm3, %v1553_v1, %v1554_v54  ;;  %v1663_v16 = vrot.slane %v1415_v27, 5 }
  0xf6   : > { %v2765_v44 = vpop.permute.xlu1 %2764  ;;  %v1666_v38 = vrot.slane %v1424_v11, 5  ;;  %417 = vst.msk [vmem:[#allocation2 + $0xe4] sm:$0xf] %vm280_vm0, %v384_v28  ;;  %v1979_v17 = vrot.slane %v1977_v5, 7  ;;  %v3152_v57 = vsel %vm3146_vm7, %v2395_v61, %v2493_v24  ;;  %v5654_v55 = vunpack.c.l.b16 %v1555_v36  ;;  %v4443_v11 = vld [vmem:[#allocation2 + $0xd4] sm:$0xff] }
  0xf7   : > { %v1563_v26 = vsel %vm4931_vm3, %v1558_v48, %v1562_v25  ;;  %v1973_v54 = vor.u32 %v1971_v50, %v1970_v56  ;;  %v1975_v60 = vrot.slane %v1970_v56, 4  ;;  %v3199_v27 = vsel %vm3195_vm8, %v3152_v57, %v5525_v19  ;;  %v5670_v28 = vld [vmem:[#allocation2 + $0x64] sm:$0xf]  ;;  %v5672_v61 = vld [vmem:[#allocation2 + $0x68] sm:$0xf] }
  0xf8   : > { %v2803_v20 = vunpack.c.l.b16 %v1563_v26  ;;  %v1982_v12 = vor.u32 %v1980_v51, %v1979_v17  ;;  %v3232_v63 = vsel %vm3228_vm9, %v3199_v27, %v2653_v35  ;;  %v1664_v24 = vor.u32 %v1663_v16, %v1662_v41 }
  0xf9   : > { %v1668_v21 = vrot.slane %v1421_v46, 4  ;;  %v1974_v40 = vsel %vm4986_vm6, %v5610_v29, %v1973_v54  ;;  %v3265_v13 = vsel %vm3261_vm10, %v3232_v63, %v2765_v44  ;;  %v1672_v19 = vshll.u32 %v4028_v39, 16  ;;  %v456_v63 = vld [vmem:[#allocation2 + $0x70] sm:$0xf] }
  0xfa   : > { %v2830_v25 = vpack.c.b16 %v2803_v20, %v5654_v55  ;;  %v1983_v42 = vsel %vm4986_vm6, %v1975_v60, %v1982_v12  ;;  %v2890_v46 = vunpack.c.l.b16 %v1974_v40  ;;  %v5678_v35 = vsel %vm3294_vm11, %v3265_v13, %v5568_v58  ;;  %v4092_v60 = vld [vmem:[#allocation2 + $0xac] sm:$0xf] }
  0xfb   : > { %v5668_v1 = vpop.permute.xlu2 %2856  ;;  %v1665_v29 = vrot.slane %v1664_v24, 4  ;;  %2770 = vrot.lane.b32.xlu1 %v4435_v0, %s4693_s17  ;;  %v2891_v41 = vunpack.c.l.b16 %v1983_v42  ;;  %v1669_v44 = vor.u32 %v1668_v21, %v1666_v38  ;;  %v1674_v56 = vrot.slane %v1672_v19, 5 }
  0xfc   : > { %v5682_v48 = vpop.permute.xlu0 %2924  ;;  %v1875_v36 = vshrl.u32 %v4073_v32, 16  ;;  %v1880_v17 = vshrl.u32 %v5670_v28, 16  ;;  %v1883_v57 = vshll.u32 %v5670_v28, 16  ;;  %v1889_v58 = vshrl.u32 %v5672_v61, 16 }
  0xfd   : > { %2786 = vrot.lane.b32.xlu0 %v4443_v11, %s4693_s17  ;;  %v1667_v16 = vsel %vm4931_vm3, %v1665_v29, %v1666_v38  ;;  %v2914_v55 = vpack.c.b16 %v2891_v41, %v2890_v46  ;;  %v1670_v39 = vrot.slane %v1669_v44, 4  ;;  %v1892_v20 = vshll.u32 %v5672_v61, 16 }
  0xfe   : > { %v5689_v26 = vpop.permute.xlu1 %2504  ;;  %v2818_v0 = vunpack.c.l.b16 %v1667_v16  ;;  %v4125_v54 = vrot.slane %v1875_v36, 11  ;;  %v1882_v27 = vrot.slane %v1880_v17, 7  ;;  %v1891_v11 = vrot.slane %v1889_v58, 7 }
  0xff   : > { %v2250_v12 = vrot.slane %v1968_v15, 4  ;;  %2938 = vrot.lane.b32.xlu2 %v2914_v55, %s4696_s20  ;;  %v1675_v38 = vsel %vm4931_vm3, %v1670_v39, %v1674_v56  ;;  %v2251_v24 = vrot.slane %v1971_v50, 5  ;;  %v2254_v21 = vrot.slane %v1980_v51, 5 }
 0x100   : > { %v2256_v32 = vrot.slane %v1977_v5, 4  ;;  %v2819_v40 = vunpack.c.l.b16 %v1675_v38  ;;  %v1885_v13 = vor.u32 %v1883_v57, %v1882_v27  ;;  %v1887_v19 = vrot.slane %v1882_v27, 4  ;;  %v4455_v5 = vld [vmem:[#allocation2 + $0xa4] sm:$0xff] }
 0x101   : > { %v1894_v28 = vor.u32 %v1892_v20, %v1891_v11  ;;  %v2252_v42 = vor.u32 %v2251_v24, %v2250_v12  ;;  %v2260_v29 = vshll.u32 %v4092_v60, 16  ;;  %v650_v61 = vshrl.u32 %v456_v63, 16  ;;  %v4076_v63 = vld [vmem:[#allocation2 + $0x6c] sm:$0xf]  ;;  %v353_v24 = vld [vmem:[%s4864_s16 + $0xd8] sm:$0xff] }
 0x102   : > { %v2257_v46 = vor.u32 %v2256_v32, %v2254_v21  ;;  %v2838_v41 = vpack.c.b16 %v2819_v40, %v2818_v0  ;;  %v1886_v44 = vsel %vm4986_vm6, %v4125_v54, %v1885_v13  ;;  %v657_v50 = vrot.slane %v655_v30, 7  ;;  %v4105_v13 = vld [vmem:[#allocation2 + $0xe0] sm:$0xf] }
 0x103   : > { %v5697_v15 = vpop.permute.xlu2 %2672  ;;  %v1895_v43 = vsel %vm4986_vm6, %v1887_v19, %v1894_v28  ;;  %2850 = vrot.lane.b32.xlu1 %v2830_v25, %s4699_s30  ;;  %v2882_v51 = vunpack.c.l.b16 %v1886_v44  ;;  %v2253_v36 = vrot.slane %v2252_v42, 4  ;;  %v2262_v39 = vrot.slane %v2260_v29, 5  ;;  %v5718_v19 = vld [vmem:[#allocation2 + $0xe4] sm:$0xf] }
 0x104   : > { %v2883_v56 = vunpack.c.l.b16 %v1895_v43  ;;  %v2258_v16 = vrot.slane %v2257_v46, 4  ;;  %v2585_v55 = vpop.permute.xlu0 %2584  ;;  %v3968_v0 = vrot.slane %v650_v61, 11  ;;  %v660_v54 = vor.u32 %v658_v9, %v657_v50 }
 0x105   : > { %2866 = vrot.lane.b32.xlu0 %v2838_v41, %s4699_s30  ;;  %v662_v60 = vrot.slane %v657_v50, 4  ;;  %v2255_v30 = vsel %vm4931_vm3, %v2253_v36, %v2254_v21  ;;  %v7084_v25 = vshrl.u32 %v5082_v10, 16  ;;  %v2194_v38 = vrot.slane %v1880_v17, 4 }
 0x106   : > { %v3117_v27 = vpop.permute.xlu1 %3116  ;;  %v2910_v11 = vpack.c.b16 %v2883_v56, %v2882_v51  ;;  %v2263_v32 = vsel %vm4931_vm3, %v2258_v16, %v2262_v39  ;;  %v3082_v40 = vunpack.c.l.b16 %v2255_v30  ;;  %v661_v8 = vsel %vm4986_vm6, %v3968_v0, %v660_v54 }
 0x107   : > { %v666_v12 = vrot.slane %v7084_v25, 7  ;;  %v2195_v9 = vrot.slane %v1883_v57, 5  ;;  %3050 = vrot.lane.b32.xlu2 %v4455_v5, %s4695_s19  ;;  %v3083_v21 = vunpack.c.l.b16 %v2263_v32  ;;  %v7085_v28 = vshll.u32 %v5082_v10, 16 }
 0x108   : > { %v2376_v46 = vunpack.c.l.b16 %v661_v8  ;;  %v2198_v17 = vrot.slane %v1892_v20, 5  ;;  %v2200_v61 = vrot.slane %v1889_v58, 4  ;;  %v2204_v41 = vshll.u32 %v4076_v63, 16  ;;  %v5744_v63 = vld [vmem:[#allocation2 + $0x38] sm:$0xf] }
 0x109   : > { %v669_v42 = vor.u32 %v7085_v28, %v666_v12  ;;  %v2196_v29 = vor.u32 %v2195_v9, %v2194_v38  ;;  %v385_v44 = vpack.c.bf16 %v353_v24, %v353_v24  ;;  %v3106_v43 = vpack.c.b16 %v3083_v21, %v3082_v40  ;;  %v4451_v28 = vld [vmem:[#allocation2 + $0x64] sm:$0xff] }
 0x10a   : > { %v2051_v57 = vshrl.u32 %v4105_v13, 16  ;;  %v2056_v51 = vshrl.u32 %v5718_v19, 16  ;;  %v2201_v16 = vor.u32 %v2200_v61, %v2198_v17  ;;  %v2206_v10 = vrot.slane %v2204_v41, 5  ;;  %v472_v41 = vld [vmem:[#allocation2 + $0xb0] sm:$0xf] }
 0x10b   : > { %v670_v50 = vsel %vm4986_vm6, %v662_v60, %v669_v42  ;;  %v5726_v56 = vpop.permute.xlu2 %3128  ;;  %v2197_v36 = vrot.slane %v2196_v29, 4  ;;  %418 = vst.msk [vmem:[#allocation2 + $0xe8] sm:$0xf] %vm280_vm0, %v385_v44  ;;  %2930 = vrot.lane.b32.xlu1 %v2910_v11, %s4696_s20  ;;  %v2059_v0 = vshll.u32 %v5718_v19, 16  ;;  %v3331_v54 = vsel %vm3327_vm12, %v5678_v35, %v5682_v48  ;;  %v5738_v60 = vld [vmem:[#allocation2 + $0x34] sm:$0xf] }
 0x10c   : > { %v2377_v5 = vunpack.c.l.b16 %v670_v50  ;;  %v2777_v58 = vpop.permute.xlu0 %2776  ;;  %v4133_v20 = vrot.slane %v2051_v57, 11  ;;  %v5732_v39 = vrot.slane %v2056_v51, 7  ;;  %v2202_v12 = vrot.slane %v2201_v16, 4  ;;  %v443_v42 = vld [vmem:[#allocation2 + $0x3c] sm:$0xf] }
 0x10d   : > { %v2199_v25 = vsel %vm4931_vm3, %v2197_v36, %v2198_v17  ;;  %v3364_v11 = vsel %vm3360_vm13, %v3331_v54, %v5598_v2  ;;  %v567_v2 = vshrl.u32 %v5738_v60, 16  ;;  %v570_v9 = vshll.u32 %v5738_v60, 16 }
 0x10e   : > { %v2401_v30 = vpack.c.b16 %v2377_v5, %v2376_v46  ;;  %v5746_v38 = vpop.permute.xlu1 %2512  ;;  %v3074_v24 = vunpack.c.l.b16 %v2199_v25  ;;  %v2061_v32 = vor.u32 %v2059_v0, %v5732_v39  ;;  %v2063_v35 = vrot.slane %v5732_v39, 4  ;;  %v436_v5 = vld [vmem:[#allocation2 + $0x20] sm:$0xf] }
 0x10f   : > { %v3397_v48 = vsel %vm3393_vm14, %v3364_v11, %v3117_v27  ;;  %v2207_v8 = vsel %vm4931_vm3, %v2202_v12, %v2206_v10  ;;  %3130 = vrot.lane.b32.xlu2 %v3106_v43, %s4697_s27  ;;  %v579_v29 = vshll.u32 %v5744_v63, 16  ;;  %v892_v61 = vrot.slane %v567_v2, 4 }
 0x110   : > { %v3170_v40 = vsel %vm3146_vm7, %v2401_v30, %v5689_v26  ;;  %4362 = vmatmul.msk.bf16.gmra.mxu0 %vm3426_vm15, %v3397_v48  ;;  %v3075_v21 = vunpack.c.l.b16 %v2207_v8  ;;  %v2062_v27 = vsel %vm4986_vm6, %v4133_v20, %v2061_v32  ;;  %v576_v26 = vshrl.u32 %v5744_v63, 16 }
 0x111   : > { %v3211_v13 = vsel %vm3195_vm8, %v3170_v40, %v2585_v55  ;;  %v2898_v17 = vunpack.c.l.b16 %v2062_v27  ;;  %v893_v50 = vrot.slane %v570_v9, 5  ;;  %v896_v16 = vrot.slane %v579_v29, 5 }
 0x112   : > { %v3244_v46 = vsel %vm3228_vm9, %v3211_v13, %v5630_v4  ;;  %v3102_v44 = vpack.c.b16 %v3075_v21, %v3074_v24  ;;  %v4107_v43 = vld [vmem:[#allocation2 + $0xe8] sm:$0xf]  ;;  %v898_v57 = vrot.slane %v576_v26, 4  ;;  %v902_v10 = vshll.u32 %v443_v42, 16 }
 0x113   : > { %v5771_v55 = vsel %vm3261_vm10, %v3244_v46, %v2777_v58  ;;  %v2065_v4 = vshrl.u32 %v4107_v43, 16  ;;  %v2068_v36 = vshll.u32 %v4107_v43, 16  ;;  %3042 = vrot.lane.b32.xlu1 %v4451_v28, %s4695_s19  ;;  %v894_v58 = vor.u32 %v893_v50, %v892_v61  ;;  %v5785_v11 = vpop.permute.xlu2 %2494 }
 0x114   : > { %3122 = vrot.lane.b32.xlu0 %v3102_v44, %s4697_s27  ;;  %v2593_v20 = vpop.permute.xlu0 %2592  ;;  %v738_v39 = vshrl.u32 %v472_v41, 16  ;;  %v7086_v54 = vshrl.u32 %v5157_v34, 16  ;;  %v7087_v25 = vshrl.u32 %v5167_v45, 16  ;;  %v899_v32 = vor.u32 %v898_v57, %v896_v16 }
 0x115   : > { %v2067_v24 = vrot.slane %v2065_v4, 7  ;;  %v904_v48 = vrot.slane %v902_v10, 5  ;;  %v540_v40 = vshrl.u32 %v436_v5, 16  ;;  %v895_v8 = vrot.slane %v894_v58, 4 }
 0x116   : > { %v745_v30 = vrot.slane %v7086_v54, 7  ;;  %v754_v12 = vrot.slane %v7087_v25, 7  ;;  %v3972_v13 = vrot.slane %v738_v39, 11  ;;  %v7088_v21 = vshll.u32 %v5157_v34, 16  ;;  %v2937_v42 = vpop.permute.xlu1 %2936  ;;  %v4418_v54 = vld [vmem:[#allocation2 + $0x34] sm:$0xff] }
 0x117   : > { %v2070_v46 = vor.u32 %v2068_v36, %v2067_v24  ;;  %v900_v61 = vrot.slane %v899_v32, 4  ;;  %v7089_v41 = vshll.u32 %v5167_v45, 16  ;;  %v3963_v43 = vrot.slane %v540_v40, 11 }
 0x118   : > { %v748_v28 = vor.u32 %v7088_v21, %v745_v30  ;;  %v750_v27 = vrot.slane %v745_v30, 4  ;;  %v897_v50 = vsel %vm4931_vm3, %v895_v8, %v896_v16  ;;  %v7090_v5 = vshrl.u32 %v5253_v31, 16 }
 0x119   : > { %v757_v44 = vor.u32 %v7089_v41, %v754_v12  ;;  %v7091_v34 = vshrl.u32 %v5269_v23, 16  ;;  %v2071_v39 = vsel %vm4986_vm6, %v2063_v35, %v2070_v46  ;;  %v905_v45 = vsel %vm4931_vm3, %v900_v61, %v904_v48 }
 0x11a   : > { %v749_v57 = vsel %vm4986_vm6, %v3972_v13, %v748_v28  ;;  %v547_v10 = vrot.slane %v7090_v5, 7  ;;  %v2528_v30 = vunpack.c.l.b16 %v897_v50  ;;  %v2899_v25 = vunpack.c.l.b16 %v2071_v39  ;;  %v3989_v50 = vld [vmem:[#allocation2 + $0x40] sm:$0xf] }
 0x11b   : > { %v556_v58 = vrot.slane %v7091_v34, 7  ;;  %v758_v16 = vsel %vm4986_vm6, %v750_v27, %v757_v44  ;;  %v2529_v12 = vunpack.c.l.b16 %v905_v45  ;;  %v2384_v24 = vunpack.c.l.b16 %v749_v57  ;;  %2496 = vrot.lane.b32.xlu1 %v4418_v54, %s4692_s11  ;;  %v4108_v27 = vld [vmem:[#allocation2 + $0xec] sm:$0xf]  ;;  %v3990_v54 = vld [vmem:[#allocation2 + $0x44] sm:$0xf]  ;;  %v5822_v57 = vpop.permute.xlu2 %3136 }
 0x11c   : > { %v2385_v32 = vunpack.c.l.b16 %v758_v16  ;;  %v7092_v40 = vshll.u32 %v5253_v31, 16  ;;  %v552_v13 = vrot.slane %v547_v10, 4  ;;  %v2306_v35 = vrot.slane %v2056_v51, 4  ;;  %v3049_v41 = vpop.permute.xlu0 %3048 }
 0x11d   : > { %v559_v21 = vor.u32 %v557_v37, %v556_v58  ;;  %v2918_v28 = vpack.c.b16 %v2899_v25, %v2898_v17  ;;  %v2557_v48 = vpack.c.b16 %v2529_v12, %v2528_v30  ;;  %v2307_v61 = vrot.slane %v2059_v0, 5 }
 0x11e   : > { %v550_v8 = vor.u32 %v7092_v40, %v547_v10  ;;  %v2405_v46 = vpack.c.b16 %v2385_v32, %v2384_v24  ;;  %v2310_v37 = vrot.slane %v2068_v36, 5  ;;  %v2312_v44 = vrot.slane %v2065_v4, 4  ;;  %v3991_v36 = vld [vmem:[#allocation2 + $0x48] sm:$0xf]  ;;  %v2785_v45 = vpop.permute.xlu1 %2784 }
 0x11f   : > { %v560_v23 = vsel %vm4986_vm6, %v552_v13, %v559_v21  ;;  %2946 = vrot.lane.b32.xlu2 %v2918_v28, %s4696_s20  ;;  %2576 = vrot.lane.b32.xlu0 %v2557_v48, %s7073_s18  ;;  %v2308_v0 = vor.u32 %v2307_v61, %v2306_v35  ;;  %v2316_v10 = vshll.u32 %v4108_v27, 16  ;;  %v3310_v4 = vsel %vm3294_vm11, %v5771_v55, %v5668_v1  ;;  %v4459_v24 = vld [vmem:[#allocation2 + $0xe4] sm:$0xff] }
 0x120   : > { %v551_v31 = vsel %vm4986_vm6, %v3963_v43, %v550_v8  ;;  %v3182_v51 = vsel %vm3146_vm7, %v2405_v46, %v5746_v38  ;;  %v2367_v19 = vunpack.c.l.b16 %v560_v23  ;;  %v2313_v5 = vor.u32 %v2312_v44, %v2310_v37  ;;  %v4434_v32 = vld [vmem:[#allocation2 + $0x44] sm:$0xff]  ;;  %v3992_v46 = vld [vmem:[#allocation2 + $0x4c] sm:$0xf] }
 0x121   : > { %v2366_v17 = vunpack.c.l.b16 %v551_v31  ;;  %v3219_v43 = vsel %vm3195_vm8, %v3182_v51, %v2593_v20  ;;  %v2309_v58 = vrot.slane %v2308_v0, 4  ;;  %v3343_v39 = vsel %vm3327_vm12, %v3310_v4, %v2937_v42 }
 0x122   : > { %v1209_v38 = vshrl.u32 %v3989_v50, 16  ;;  %v2314_v30 = vrot.slane %v2313_v5, 4  ;;  %v2318_v16 = vrot.slane %v2316_v10, 5  ;;  %v1214_v25 = vshrl.u32 %v3990_v54, 16  ;;  %v4070_v5 = vld [vmem:[#allocation2 + $0x54] sm:$0xf] }
 0x123   : > { %v2396_v34 = vpack.c.b16 %v2367_v19, %v2366_v17  ;;  %v1217_v12 = vshll.u32 %v3990_v54, 16  ;;  %v2311_v1 = vsel %vm4931_vm3, %v2309_v58, %v2310_v37  ;;  %v1223_v40 = vshrl.u32 %v3991_v36, 16  ;;  %v4069_v19 = vld [vmem:[#allocation2 + $0x50] sm:$0xf]  ;;  %v4071_v10 = vld [vmem:[#allocation2 + $0x58] sm:$0xf] }
 0x124   : > { %v4044_v55 = vrot.slane %v1209_v38, 11  ;;  %v2319_v42 = vsel %vm4931_vm3, %v2314_v30, %v2318_v16  ;;  %v3090_v8 = vunpack.c.l.b16 %v2311_v1  ;;  %v1216_v13 = vrot.slane %v1214_v25, 7 }
 0x125   : > { %v5831_v20 = vsel %vm3146_vm7, %v2396_v34, %v5785_v11  ;;  %v1226_v21 = vshll.u32 %v3991_v36, 16  ;;  %v3091_v35 = vunpack.c.l.b16 %v2319_v42  ;;  %v1225_v28 = vrot.slane %v1223_v40, 7  ;;  %v2865_v11 = vpop.permute.xlu0 %2864 }
 0x126   : > { %v3376_v48 = vsel %vm3360_vm13, %v3343_v39, %v3049_v41  ;;  %v1536_v27 = vrot.slane %v1214_v25, 4  ;;  %v1219_v61 = vor.u32 %v1217_v12, %v1216_v13  ;;  %v1221_v31 = vrot.slane %v1216_v13, 4  ;;  %v5851_v39 = vpop.permute.xlu2 %2846  ;;  %v2945_v1 = vpop.permute.xlu1 %2944 }
 0x127   : > { %v3409_v23 = vsel %vm3393_vm14, %v3376_v48, %v5726_v56  ;;  %v1537_v37 = vrot.slane %v1217_v12, 5  ;;  %3058 = vrot.lane.b32.xlu2 %v4459_v24, %s4695_s19  ;;  %2768 = vrot.lane.b32.xlu0 %v4434_v32, %s4693_s17  ;;  %v3110_v44 = vpack.c.b16 %v3091_v35, %v3090_v8  ;;  %v1228_v50 = vor.u32 %v1226_v21, %v1225_v28  ;;  %v4424_v12 = vld [vmem:[#allocation2 + $0x94] sm:$0xff]  ;;  %v4072_v28 = vld [vmem:[#allocation2 + $0x5c] sm:$0xf] }
 0x128   : > { %v1540_v51 = vrot.slane %v1226_v21, 5  ;;  %v1542_v17 = vrot.slane %v1223_v40, 4  ;;  %v1220_v41 = vsel %vm4986_vm6, %v4044_v55, %v1219_v61  ;;  %4368 = vmatmul.msk.bf16.gmra.mxu2 %vm3426_vm15, %v3409_v23  ;;  %v1546_v54 = vshll.u32 %v3992_v46, 16 }
 0x129   : > { %v1538_v0 = vor.u32 %v1537_v37, %v1536_v27  ;;  %v3252_v56 = vsel %vm3228_vm9, %v3219_v43, %v5697_v15  ;;  %3138 = vrot.lane.b32.xlu1 %v3110_v44, %s4697_s27  ;;  %v1229_v4 = vsel %vm4986_vm6, %v1221_v31, %v1228_v50  ;;  %v2608_v36 = vunpack.c.l.b16 %v1220_v41 }
 0x12a   : > { %v1543_v34 = vor.u32 %v1542_v17, %v1540_v51  ;;  %v3285_v58 = vsel %vm3261_vm10, %v3252_v56, %v2785_v45  ;;  %v2609_v38 = vunpack.c.l.b16 %v1229_v4  ;;  %v1548_v16 = vrot.slane %v1546_v54, 5  ;;  %v5862_v54 = vld [vmem:[#allocation2 + $0x98] sm:$0xf] }
 0x12b   : > { %v1539_v30 = vrot.slane %v1538_v0, 4  ;;  %v1853_v25 = vshrl.u32 %v4069_v19, 16  ;;  %v1858_v15 = vshrl.u32 %v4070_v5, 16  ;;  %v1861_v43 = vshll.u32 %v4070_v5, 16  ;;  %v5860_v0 = vld [vmem:[#allocation2 + $0x94] sm:$0xf] }
 0x12c   : > { %v1544_v24 = vrot.slane %v1543_v34, 4  ;;  %v1867_v32 = vshrl.u32 %v4071_v10, 16  ;;  %v2637_v55 = vpack.c.b16 %v2609_v38, %v2608_v36  ;;  %v1870_v8 = vshll.u32 %v4071_v10, 16  ;;  %v467_v36 = vld [vmem:[#allocation2 + $0x9c] sm:$0xf] }
 0x12d   : > { %v1541_v40 = vsel %vm4931_vm3, %v1539_v30, %v1540_v51  ;;  %v4124_v42 = vrot.slane %v1853_v25, 11  ;;  %v1860_v21 = vrot.slane %v1858_v15, 7  ;;  %v3057_v48 = vpop.permute.xlu0 %3056  ;;  %v2180_v27 = vrot.slane %v1858_v15, 4 }
 0x12e   : > { %v1549_v45 = vsel %vm4931_vm3, %v1544_v24, %v1548_v16  ;;  %v2800_v13 = vunpack.c.l.b16 %v1541_v40  ;;  %v1869_v35 = vrot.slane %v1867_v32, 7  ;;  %v2181_v61 = vrot.slane %v1861_v43, 5  ;;  %v5873_v24 = vpop.permute.xlu2 %3038 }
 0x12f   : > { %v2801_v46 = vunpack.c.l.b16 %v1549_v45  ;;  %v2184_v31 = vrot.slane %v1870_v8, 5  ;;  %2656 = vrot.lane.b32.xlu2 %v2637_v55, %s4698_s28  ;;  %2508 = vrot.lane.b32.xlu0 %v4424_v12, %s4692_s11  ;;  %v1863_v23 = vor.u32 %v1861_v43, %v1860_v21  ;;  %v1865_v37 = vrot.slane %v1860_v21, 4  ;;  %v5878_v55 = vld [vmem:[#allocation2 + $0x54] sm:$0xf] }
 0x130   : > { %v1872_v44 = vor.u32 %v1870_v8, %v1869_v35  ;;  %v2186_v50 = vrot.slane %v1867_v32, 4  ;;  %v2182_v17 = vor.u32 %v2181_v61, %v2180_v27  ;;  %v2190_v19 = vshll.u32 %v4072_v28, 16  ;;  %v2575_v35 = vpop.permute.xlu1 %2574 }
 0x131   : > { %v2829_v51 = vpack.c.b16 %v2801_v46, %v2800_v13  ;;  %v3318_v41 = vsel %vm3294_vm11, %v3285_v58, %v2865_v11  ;;  %v1864_v56 = vsel %vm4986_vm6, %v4124_v42, %v1863_v23  ;;  %v699_v16 = vshrl.u32 %v5860_v0, 16  ;;  %v5886_v13 = vld [vmem:[#allocation2 + $0x58] sm:$0xf] }
 0x132   : > { %v1873_v5 = vsel %vm4986_vm6, %v1865_v37, %v1872_v44  ;;  %v2187_v10 = vor.u32 %v2186_v50, %v2184_v31  ;;  %v3351_v4 = vsel %vm3327_vm12, %v3318_v41, %v2945_v1  ;;  %v2880_v34 = vunpack.c.l.b16 %v1864_v56  ;;  %v4450_v46 = vld [vmem:[#allocation2 + $0x54] sm:$0xff]  ;;  %v451_v44 = vld [vmem:[#allocation2 + $0x5c] sm:$0xf] }
 0x133   : > { %2848 = vrot.lane.b32.xlu1 %v2829_v51, %s4699_s30  ;;  %v2881_v38 = vunpack.c.l.b16 %v1873_v5  ;;  %v2183_v30 = vrot.slane %v2182_v17, 4  ;;  %v2192_v11 = vrot.slane %v2190_v19, 5  ;;  %v7055_v25 = vshll.u32 %v5860_v0, 16  ;;  %v4013_v5 = vld [vmem:[#allocation2 + $0xa0] sm:$0xf] }
 0x134   : > { %v2188_v58 = vrot.slane %v2187_v10, 4  ;;  %v7054_v12 = vshrl.u32 %v5862_v54, 16  ;;  %v7052_v32 = vshll.u32 %v5862_v54, 16  ;;  %v986_v1 = vshll.u32 %v467_v36, 16 }
 0x135   : > { %v2909_v15 = vpack.c.b16 %v2881_v38, %v2880_v34  ;;  %v2185_v43 = vsel %vm4931_vm3, %v2183_v30, %v2184_v31  ;;  %v976_v8 = vrot.slane %v699_v16, 4  ;;  %v977_v45 = vrot.slane %v7055_v25, 5  ;;  %v5888_v21 = vpop.permute.xlu0 %2654  ;;  %v5907_v34 = vld [vmem:[#allocation2 + $0xa4] sm:$0xf]  ;;  %v4096_v25 = vld [vmem:[#allocation2 + $0xbc] sm:$0xf] }
 0x136   : > { %v2193_v40 = vsel %vm4931_vm3, %v2188_v58, %v2192_v11  ;;  %v3072_v42 = vunpack.c.l.b16 %v2185_v43  ;;  %v980_v27 = vrot.slane %v7052_v32, 5  ;;  %v982_v61 = vrot.slane %v7054_v12, 4 }
 0x137   : > { %v3073_v28 = vunpack.c.l.b16 %v2193_v40  ;;  %v988_v31 = vrot.slane %v986_v1, 5  ;;  %2928 = vrot.lane.b32.xlu2 %v2909_v15, %s4696_s20  ;;  %v978_v23 = vor.u32 %v977_v45, %v976_v8  ;;  %v3384_v37 = vsel %vm3360_vm13, %v3351_v4, %v3057_v48  ;;  %v5921_v1 = vld [vmem:[#allocation2 + $0xa8] sm:$0xf] }
 0x138   : > { %v7053_v50 = vshrl.u32 %v5878_v55, 16  ;;  %v7050_v51 = vshll.u32 %v5878_v55, 16  ;;  %v983_v19 = vor.u32 %v982_v61, %v980_v27  ;;  %v3417_v41 = vsel %vm3393_vm14, %v3384_v37, %v5822_v57  ;;  %v4420_v37 = vld [vmem:[#allocation2 + $0x54] sm:$0xff] }
 0x139   : > { %v3101_v17 = vpack.c.b16 %v3073_v28, %v3072_v42  ;;  %v7051_v56 = vshrl.u32 %v5886_v13, 16  ;;  %v979_v10 = vrot.slane %v978_v23, 4  ;;  %4372 = vmatmul.msk.bf16.vlgmr.msra.gmra.mxu3 %vm3426_vm15, %v3417_v41  ;;  %v7049_v36 = vshll.u32 %v5886_v13, 16 }
 0x13a   : > { %v920_v48 = vrot.slane %v7053_v50, 4  ;;  %v921_v4 = vrot.slane %v7050_v51, 5  ;;  %v984_v57 = vrot.slane %v983_v19, 4  ;;  %v930_v30 = vshll.u32 %v451_v44, 16 }
 0x13b   : > { %3120 = vrot.lane.b32.xlu0 %v3101_v17, %s4697_s27  ;;  %3040 = vrot.lane.b32.xlu1 %v4450_v46, %s4695_s19  ;;  %v926_v38 = vrot.slane %v7051_v56, 4  ;;  %v5915_v11 = vsel %vm3195_vm8, %v5831_v20, %v2575_v35  ;;  %v981_v58 = vsel %vm4931_vm3, %v979_v10, %v980_v27  ;;  %v924_v43 = vrot.slane %v7049_v36, 5  ;;  %v444_v46 = vld [vmem:[#allocation2 + $0x40] sm:$0xf]  ;;  %v5926_v27 = vpop.permute.xlu2 %2498 }
 0x13c   : > { %v922_v15 = vor.u32 %v921_v4, %v920_v48  ;;  %v1341_v40 = vshrl.u32 %v4013_v5, 16  ;;  %v989_v42 = vsel %vm4931_vm3, %v984_v57, %v988_v31  ;;  %v2540_v8 = vunpack.c.l.b16 %v981_v58  ;;  %v3997_v4 = vld [vmem:[#allocation2 + $0x60] sm:$0xf] }
 0x13d   : > { %v932_v45 = vrot.slane %v930_v30, 5  ;;  %v1346_v28 = vshrl.u32 %v5907_v34, 16  ;;  %v2541_v20 = vunpack.c.l.b16 %v989_v42  ;;  %v927_v61 = vor.u32 %v926_v38, %v924_v43  ;;  %v2767_v38 = vpop.permute.xlu1 %2766 }
 0x13e   : > { %v923_v35 = vrot.slane %v922_v15, 4  ;;  %v4050_v23 = vrot.slane %v1341_v40, 11  ;;  %v1349_v17 = vshll.u32 %v5907_v34, 16  ;;  %v1355_v19 = vshrl.u32 %v5921_v1, 16 }
 0x13f   : > { %v1348_v44 = vrot.slane %v1346_v28, 7  ;;  %v1358_v41 = vshll.u32 %v5921_v1, 16  ;;  %v2563_v31 = vpack.c.b16 %v2541_v20, %v2540_v8  ;;  %v928_v10 = vrot.slane %v927_v61, 4  ;;  %v5933_v57 = vpop.permute.xlu0 %2926  ;;  %v5942_v8 = vld [vmem:[#allocation2 + $0x64] sm:$0xf] }
 0x140   : > { %v925_v5 = vsel %vm4931_vm3, %v923_v35, %v924_v43  ;;  %v584_v48 = vshrl.u32 %v444_v46, 16  ;;  %v1357_v40 = vrot.slane %v1355_v19, 7  ;;  %v591_v42 = vrot.slane %v589_v3, 7 }
 0x141   : > { %v2532_v30 = vunpack.c.l.b16 %v925_v5  ;;  %v1351_v58 = vor.u32 %v1349_v17, %v1348_v44  ;;  %v1353_v15 = vrot.slane %v1348_v44, 4  ;;  %2588 = vrot.lane.b32.xlu2 %v2563_v31, %s7073_s18  ;;  %v933_v34 = vsel %vm4931_vm3, %v928_v10, %v932_v45  ;;  %v5951_v5 = vld [vmem:[#allocation2 + $0x68] sm:$0xf] }
 0x142   : > { %v3965_v1 = vrot.slane %v584_v48, 11  ;;  %v600_v43 = vrot.slane %v598_v52, 7  ;;  %v2533_v46 = vunpack.c.l.b16 %v933_v34  ;;  %v1360_v35 = vor.u32 %v1358_v41, %v1357_v40 }
 0x143   : > { %2500 = vrot.lane.b32.xlu1 %v4420_v37, %s4692_s11  ;;  %v1352_v20 = vsel %vm4986_vm6, %v4050_v23, %v1351_v58  ;;  %v1253_v61 = vshrl.u32 %v3997_v4, 16  ;;  %v594_v45 = vor.u32 %v592_v7, %v591_v42  ;;  %v596_v31 = vrot.slane %v591_v42, 4  ;;  %v5966_v42 = vpop.permute.xlu2 %2778 }
 0x144   : > { %v2620_v44 = vunpack.c.l.b16 %v1352_v20  ;;  %v603_v3 = vor.u32 %v601_v22, %v600_v43  ;;  %v2559_v52 = vpack.c.b16 %v2533_v46, %v2532_v30  ;;  %v1361_v10 = vsel %vm4986_vm6, %v1353_v15, %v1360_v35  ;;  %v4440_v15 = vld [vmem:[#allocation2 + $0xa4] sm:$0xff] }
 0x145   : > { %v4046_v37 = vrot.slane %v1253_v61, 11  ;;  %v1258_v48 = vshrl.u32 %v5942_v8, 16  ;;  %v2621_v23 = vunpack.c.l.b16 %v1361_v10  ;;  %v595_v4 = vsel %vm4986_vm6, %v3965_v1, %v594_v45  ;;  %v4016_v61 = vld [vmem:[#allocation2 + $0xac] sm:$0xf] }
 0x146   : > { %v604_v6 = vsel %vm4986_vm6, %v596_v31, %v603_v3  ;;  %v1261_v7 = vshll.u32 %v5942_v8, 16  ;;  %2580 = vrot.lane.b32.xlu0 %v2559_v52, %s7073_s18  ;;  %v2370_v59 = vunpack.c.l.b16 %v595_v4  ;;  %v1267_v58 = vshrl.u32 %v5951_v5, 16  ;;  %v2507_v52 = vpop.permute.xlu1 %2506 }
 0x147   : > { %v2371_v22 = vunpack.c.l.b16 %v604_v6  ;;  %v1260_v30 = vrot.slane %v1258_v48, 7  ;;  %v2643_v40 = vpack.c.b16 %v2621_v23, %v2620_v44  ;;  %v1270_v34 = vshll.u32 %v5951_v5, 16  ;;  %v5968_v43 = vpop.permute.xlu0 %2586 }
 0x148   : > { %v1620_v1 = vrot.slane %v1346_v28, 4  ;;  %v1269_v35 = vrot.slane %v1267_v58, 7  ;;  %v3234_v44 = vsel %vm3228_vm9, %v5915_v11, %v5888_v21  ;;  %v1621_v45 = vrot.slane %v1349_v17, 5  ;;  %v460_v28 = vld [vmem:[#allocation2 + $0x80] sm:$0xf] }
 0x149   : > { %v1263_v46 = vor.u32 %v1261_v7, %v1260_v30  ;;  %v1265_v20 = vrot.slane %v1260_v30, 4  ;;  %2668 = vrot.lane.b32.xlu2 %v2643_v40, %s4698_s28  ;;  %v1624_v31 = vrot.slane %v1358_v41, 5  ;;  %v1626_v3 = vrot.slane %v1355_v19, 4  ;;  %v5994_v40 = vld [vmem:[#allocation2 + $0xd4] sm:$0xf] }
 0x14a   : > { %v5978_v10 = vpack.c.b16 %v2371_v22, %v2370_v59  ;;  %v1272_v4 = vor.u32 %v1270_v34, %v1269_v35  ;;  %v5986_v6 = vsel %vm3261_vm10, %v3234_v44, %v2767_v38  ;;  %v1622_v21 = vor.u32 %v1621_v45, %v1620_v1 }
 0x14b   : > { %v1264_v23 = vsel %vm4986_vm6, %v4046_v37, %v1263_v46  ;;  %2780 = vrot.lane.b32.xlu1 %v4440_v15, %s4693_s17  ;;  %v1627_v11 = vor.u32 %v1626_v3, %v1624_v31  ;;  %v1630_v17 = vshll.u32 %v4016_v61, 16  ;;  %v672_v41 = vshrl.u32 %v460_v28, 16  ;;  %v4428_v46 = vld [vmem:[#allocation2 + $0xd4] sm:$0xff] }
 0x14c   : > { %v2612_v30 = vunpack.c.l.b16 %v1264_v23  ;;  %v1273_v19 = vsel %vm4986_vm6, %v1265_v20, %v1272_v4  ;;  %v679_v59 = vrot.slane %v677_v14, 7  ;;  %v7093_v37 = vshrl.u32 %v5407_v62, 16  ;;  %v6000_v23 = vld [vmem:[#allocation2 + $0xd8] sm:$0xf] }
 0x14d   : > { %v2613_v15 = vunpack.c.l.b16 %v1273_v19  ;;  %v1623_v38 = vrot.slane %v1622_v21, 4  ;;  %v1628_v35 = vrot.slane %v1627_v11, 4  ;;  %v1632_v44 = vrot.slane %v1630_v17, 5  ;;  %v483_v21 = vld [vmem:[#allocation2 + $0xdc] sm:$0xf] }
 0x14e   : > { %v688_v22 = vrot.slane %v7093_v37, 7  ;;  %v3969_v1 = vrot.slane %v672_v41, 11  ;;  %v7094_v61 = vshll.u32 %v5401_v18, 16  ;;  %v684_v3 = vrot.slane %v679_v59, 4 }
 0x14f   : > { %v7095_v20 = vshll.u32 %v5407_v62, 16  ;;  %v2639_v14 = vpack.c.b16 %v2613_v15, %v2612_v30  ;;  %v1625_v4 = vsel %vm4931_vm3, %v1623_v38, %v1624_v31  ;;  %v1633_v19 = vsel %vm4931_vm3, %v1628_v35, %v1632_v44  ;;  %v6007_v17 = vpop.permute.xlu0 %2666  ;;  %v6017_v15 = vpop.permute.xlu2 %2858  ;;  %v6019_v38 = vld [vmem:[#allocation2 + $0xb4] sm:$0xf] }
 0x150   : > { %v682_v45 = vor.u32 %v7094_v61, %v679_v59  ;;  %v7048_v11 = vshrl.u32 %v5994_v40, 16  ;;  %v2812_v18 = vunpack.c.l.b16 %v1625_v4  ;;  %v2813_v41 = vunpack.c.l.b16 %v1633_v19  ;;  %v6030_v4 = vpop.permute.xlu1 %3118 }
 0x151   : > { %v691_v28 = vor.u32 %v7095_v20, %v688_v22  ;;  %2660 = vrot.lane.b32.xlu0 %v2639_v14, %s4698_s28  ;;  %2516 = vrot.lane.b32.xlu2 %v4428_v46, %s4692_s11  ;;  %v7045_v37 = vshll.u32 %v5994_v40, 16  ;;  %v7046_v22 = vshrl.u32 %v6000_v23, 16  ;;  %v7047_v44 = vshll.u32 %v6000_v23, 16  ;;  %v4093_v14 = vld [vmem:[#allocation2 + $0xb0] sm:$0xf] }
 0x152   : > { %v683_v62 = vsel %vm4986_vm6, %v3969_v1, %v682_v45  ;;  %v2835_v35 = vpack.c.b16 %v2813_v41, %v2812_v18  ;;  %v1032_v1 = vrot.slane %v7048_v11, 4  ;;  %v1042_v61 = vshll.u32 %v483_v21, 16  ;;  %v4000_v45 = vld [vmem:[#allocation2 + $0x6c] sm:$0xf] }
 0x153   : > { %v692_v59 = vsel %vm4986_vm6, %v684_v3, %v691_v28  ;;  %v2378_v31 = vunpack.c.l.b16 %v683_v62  ;;  %v1033_v46 = vrot.slane %v7045_v37, 5  ;;  %v1038_v20 = vrot.slane %v7046_v22, 4  ;;  %v4436_v62 = vld [vmem:[#allocation2 + $0x64] sm:$0xff]  ;;  %v6042_v22 = vld [vmem:[#allocation2 + $0xb8] sm:$0xf] }
 0x154   : > { %v2379_v30 = vunpack.c.l.b16 %v692_v59  ;;  %v1564_v28 = vrot.slane %v1258_v48, 4  ;;  %2860 = vrot.lane.b32.xlu1 %v2835_v35, %s4699_s30  ;;  %v1036_v19 = vrot.slane %v7047_v44, 5  ;;  %v1044_v21 = vrot.slane %v1042_v61, 5 }
 0x155   : > { %v1565_v18 = vrot.slane %v1261_v7, 5  ;;  %v1568_v41 = vrot.slane %v1270_v34, 5  ;;  %v1570_v48 = vrot.slane %v1267_v58, 4  ;;  %v1985_v44 = vshrl.u32 %v4093_v14, 16 }
 0x156   : > { %v2402_v3 = vpack.c.b16 %v2379_v30, %v2378_v31  ;;  %v1034_v31 = vor.u32 %v1033_v46, %v1032_v1  ;;  %v1574_v30 = vshll.u32 %v4000_v45, 16  ;;  %v1039_v37 = vor.u32 %v1038_v20, %v1036_v19 }
 0x157   : > { %v1566_v35 = vor.u32 %v1565_v18, %v1564_v28  ;;  %v1990_v61 = vshrl.u32 %v6019_v38, 16  ;;  %v1571_v7 = vor.u32 %v1570_v48, %v1568_v41  ;;  %v1993_v34 = vshll.u32 %v6019_v38, 16  ;;  %v6046_v36 = vpop.permute.xlu0 %2514  ;;  %v4029_v18 = vld [vmem:[#allocation2 + $0xe0] sm:$0xf] }
 0x158   : > { %v3173_v59 = vsel %vm3146_vm7, %v2402_v3, %v2507_v52  ;;  %v1035_v8 = vrot.slane %v1034_v31, 4  ;;  %v1576_v11 = vrot.slane %v1574_v30, 5  ;;  %v1040_v52 = vrot.slane %v1039_v37, 4  ;;  %v6063_v30 = vld [vmem:[#allocation2 + $0xe4] sm:$0xf] }
 0x159   : > { %v1567_v1 = vrot.slane %v1566_v35, 4  ;;  %v4130_v3 = vrot.slane %v1985_v44, 11  ;;  %v1992_v5 = vrot.slane %v1990_v61, 7  ;;  %2772 = vrot.lane.b32.xlu0 %v4436_v62, %s4693_s17  ;;  %v1572_v45 = vrot.slane %v1571_v7, 4  ;;  %v6065_v35 = vpop.permute.xlu2 %2938 }
 0x15a   : > { %v1037_v58 = vsel %vm4931_vm3, %v1035_v8, %v1036_v19  ;;  %v1999_v46 = vshrl.u32 %v6042_v22, 16  ;;  %v2002_v20 = vshll.u32 %v6042_v22, 16  ;;  %v1045_v28 = vsel %vm4931_vm3, %v1040_v52, %v1044_v21  ;;  %v6073_v52 = vld [vmem:[#allocation2 + $0xe8] sm:$0xf] }
 0x15b   : > { %v2548_v14 = vunpack.c.l.b16 %v1037_v58  ;;  %v1569_v37 = vsel %vm4931_vm3, %v1567_v1, %v1568_v41  ;;  %v1995_v44 = vor.u32 %v1993_v34, %v1992_v5  ;;  %v2549_v62 = vunpack.c.l.b16 %v1045_v28 }
 0x15c   : > { %v1577_v19 = vsel %vm4931_vm3, %v1572_v45, %v1576_v11  ;;  %v2804_v31 = vunpack.c.l.b16 %v1569_v37  ;;  %v1997_v48 = vrot.slane %v1992_v5, 4  ;;  %v2001_v41 = vrot.slane %v1999_v46, 7  ;;  %v6080_v45 = vpop.permute.xlu1 %2578 }
 0x15d   : > { %v2805_v8 = vunpack.c.l.b16 %v1577_v19  ;;  %v1996_v21 = vsel %vm4986_vm6, %v4130_v3, %v1995_v44  ;;  %v3213_v7 = vsel %vm3195_vm8, %v3173_v59, %v5968_v43  ;;  %v3300_v11 = vsel %vm3294_vm11, %v5986_v6, %v5851_v39 }
 0x15e   : > { %v2567_v1 = vpack.c.b16 %v2549_v62, %v2548_v14  ;;  %v3246_v5 = vsel %vm3228_vm9, %v3213_v7, %v6007_v17  ;;  %v1429_v58 = vshrl.u32 %v4029_v18, 16  ;;  %v2004_v28 = vor.u32 %v2002_v20, %v2001_v41  ;;  %v4077_v14 = vld [vmem:[#allocation2 + $0x70] sm:$0xf]  ;;  %v6108_v7 = vld [vmem:[#allocation2 + $0x78] sm:$0xf] }
 0x15f   : > { %v2831_v3 = vpack.c.b16 %v2805_v8, %v2804_v31  ;;  %v3279_v43 = vsel %vm3261_vm10, %v3246_v5, %v5966_v42  ;;  %v1434_v59 = vshrl.u32 %v6063_v30, 16  ;;  %v2892_v37 = vunpack.c.l.b16 %v1996_v21  ;;  %v6091_v44 = vpop.permute.xlu0 %2594  ;;  %v6099_v31 = vld [vmem:[#allocation2 + $0x74] sm:$0xf] }
 0x160   : > { %2596 = vrot.lane.b32.xlu2 %v2567_v1, %s7073_s18  ;;  %v1437_v39 = vshll.u32 %v6063_v30, 16  ;;  %v1443_v6 = vshrl.u32 %v6073_v52, 16  ;;  %v1446_v17 = vshll.u32 %v6073_v52, 16  ;;  %v2005_v18 = vsel %vm4986_vm6, %v1997_v48, %v2004_v28 }
 0x161   : > { %v4054_v62 = vrot.slane %v1429_v58, 11  ;;  %v1436_v42 = vrot.slane %v1434_v59, 7  ;;  %v3333_v19 = vsel %vm3327_vm12, %v3300_v11, %v5933_v57  ;;  %2852 = vrot.lane.b32.xlu0 %v2831_v3, %s4699_s30  ;;  %v2893_v8 = vunpack.c.l.b16 %v2005_v18  ;;  %v476_v58 = vld [vmem:[#allocation2 + $0xc0] sm:$0xf] }
 0x162   : > { %v1445_v21 = vrot.slane %v1443_v6, 7  ;;  %v3312_v41 = vsel %vm3294_vm11, %v3279_v43, %v6017_v15  ;;  %v3366_v48 = vsel %vm3360_vm13, %v3333_v19, %v5873_v24  ;;  %v1897_v5 = vshrl.u32 %v4077_v14, 16  ;;  %v3051_v43 = vpop.permute.xlu2 %3050 }
 0x163   : > { %v1439_v1 = vor.u32 %v1437_v39, %v1436_v42  ;;  %v1441_v57 = vrot.slane %v1436_v42, 4  ;;  %v3399_v11 = vsel %vm3393_vm14, %v3366_v48, %v6030_v4  ;;  %v2915_v3 = vpack.c.b16 %v2893_v8, %v2892_v37 }
 0x164   : > { %v1448_v28 = vor.u32 %v1446_v17, %v1445_v21  ;;  %4363 = vmatmul.msk.bf16.gmra.mxu0 %vm3426_vm15, %v3399_v11  ;;  %v1902_v15 = vshrl.u32 %v6099_v31, 16  ;;  %v1905_v24 = vshll.u32 %v6099_v31, 16  ;;  %v4126_v42 = vrot.slane %v1897_v5, 11 }
 0x165   : > { %v1440_v18 = vsel %vm4986_vm6, %v4054_v62, %v1439_v1  ;;  %v1911_v19 = vshrl.u32 %v6108_v7, 16  ;;  %v1914_v4 = vshll.u32 %v6108_v7, 16  ;;  %2940 = vrot.lane.b32.xlu1 %v2915_v3, %s4696_s20  ;;  %v760_v21 = vshrl.u32 %v476_v58, 16  ;;  %v6139_v58 = vpop.permute.xlu1 %2658 }
 0x166   : > { %v1449_v37 = vsel %vm4986_vm6, %v1441_v57, %v1448_v28  ;;  %v2628_v14 = vunpack.c.l.b16 %v1440_v18  ;;  %v1904_v8 = vrot.slane %v1902_v15, 7  ;;  %v7096_v62 = vshrl.u32 %v5512_v53, 16 }
 0x167   : > { %v2629_v48 = vunpack.c.l.b16 %v1449_v37  ;;  %v1913_v11 = vrot.slane %v1911_v19, 7  ;;  %v7097_v5 = vshrl.u32 %v5516_v49, 16  ;;  %v3161_v3 = vsel %vm3146_vm7, %v5978_v10, %v5926_v27  ;;  %v4456_v10 = vld [vmem:[#allocation2 + $0xb4] sm:$0xff] }
 0x168   : > { %v767_v1 = vrot.slane %v7096_v62, 7  ;;  %v1907_v57 = vor.u32 %v1905_v24, %v1904_v8  ;;  %v1909_v28 = vrot.slane %v1904_v8, 4  ;;  %v3973_v18 = vrot.slane %v760_v21, 11 }
 0x169   : > { %v776_v51 = vrot.slane %v7097_v5, 7  ;;  %v2647_v37 = vpack.c.b16 %v2629_v48, %v2628_v14  ;;  %v1916_v56 = vor.u32 %v1914_v4, %v1913_v11  ;;  %v7098_v62 = vshll.u32 %v5512_v53, 16  ;;  %v3537_v5 = vpop.f32.mrf.mxu0  ;;  %v6153_v48 = vpop.permute.xlu0 %2674 }
 0x16a   : > { %v772_v50 = vrot.slane %v767_v1, 4  ;;  %v3345_v12 = vsel %vm3327_vm12, %v3312_v41, %v6065_v35  ;;  %v1908_v27 = vsel %vm4986_vm6, %v4126_v42, %v1907_v57  ;;  %v7099_v8 = vshll.u32 %v5516_v49, 16 }
 0x16b   : > { %v770_v32 = vor.u32 %v7098_v62, %v767_v1  ;;  %v2264_v14 = vrot.slane %v1990_v61, 4  ;;  %2676 = vrot.lane.b32.xlu2 %v2647_v37, %s4698_s28  ;;  %v1917_v53 = vsel %vm4986_vm6, %v1909_v28, %v1916_v56  ;;  %v2884_v35 = vunpack.c.l.b16 %v1908_v27  ;;  %v4032_v37 = vld [vmem:[#allocation2 + $0xec] sm:$0xf]  ;;  %v6180_v27 = vld [vmem:[%s7024_s2] ss:$0 sm:$0xff] }
 0x16c   : > { %v779_v21 = vor.u32 %v7099_v8, %v776_v51  ;;  %v2265_v49 = vrot.slane %v1993_v34, 5  ;;  %v2885_v51 = vunpack.c.l.b16 %v1917_v53  ;;  %v2268_v11 = vrot.slane %v2002_v20, 5  ;;  %v3131_v20 = vpop.permute.xlu2 %3130 }
 0x16d   : > { %v771_v41 = vsel %vm4986_vm6, %v3973_v18, %v770_v32  ;;  %v2270_v56 = vrot.slane %v1999_v46, 4  ;;  %v2274_v28 = vshll.u32 %v4096_v25, 16  ;;  %3052 = vrot.lane.b32.xlu1 %v4456_v10, %s4695_s19  ;;  %v3378_v38 = vsel %vm3360_vm13, %v3345_v12, %v3051_v43  ;;  %v4444_v46 = vld [vmem:[#allocation2 + $0xe4] sm:$0xff]  ;;  %v2771_v10 = vpop.permute.xlu1 %2770 }
 0x16e   : > { %v780_v42 = vsel %vm4986_vm6, %v772_v50, %v779_v21  ;;  %v2386_v61 = vunpack.c.l.b16 %v771_v41  ;;  %v2266_v57 = vor.u32 %v2265_v49, %v2264_v14  ;;  %v2911_v32 = vpack.c.b16 %v2885_v51, %v2884_v35  ;;  %v354_v43 = vld [vmem:[%s4864_s16 + $0xe0] sm:$0xff]  ;;  %v355_v35 = vld [vmem:[%s4864_s16 + $0xe8] sm:$0xff] }
 0x16f   : > { %v2387_v1 = vunpack.c.l.b16 %v780_v42  ;;  %v1676_v50 = vrot.slane %v1434_v59, 4  ;;  %v1677_v34 = vrot.slane %v1437_v39, 5  ;;  %v2271_v18 = vor.u32 %v2270_v56, %v2268_v11  ;;  %v4109_v42 = vld [vmem:[#allocation2 + $0xf0] sm:$0xf] }
 0x170   : > { %v2267_v25 = vrot.slane %v2266_v57, 4  ;;  %v2276_v62 = vrot.slane %v2274_v28, 5  ;;  %2932 = vrot.lane.b32.xlu0 %v2911_v32, %s4696_s20  ;;  %v1680_v59 = vrot.slane %v1446_v17, 5  ;;  %v1682_v30 = vrot.slane %v1443_v6, 4  ;;  %v6204_v28 = vld [vmem:[#allocation2 + $0xa4] sm:$0xf] }
 0x171   : > { %v2406_v22 = vpack.c.b16 %v2387_v1, %v2386_v61  ;;  %v1678_v12 = vor.u32 %v1677_v34, %v1676_v50  ;;  %v1686_v39 = vshll.u32 %v4032_v37, 16  ;;  %v3205_v8 = vsel %vm3195_vm8, %v3161_v3, %v6080_v45  ;;  %v3539_v61 = vpop.f32.mrf.mxu0  ;;  %v6206_v37 = vld [vmem:[#allocation2 + $0xa8] sm:$0xf]  ;;  %v6208_v32 = vpop.permute.xlu0 %2786 }
 0x172   : > { %v2269_v21 = vsel %vm4931_vm3, %v2267_v25, %v2268_v11  ;;  %v2272_v14 = vrot.slane %v2271_v18, 4  ;;  %v3411_v53 = vsel %vm3393_vm14, %v3378_v38, %v3131_v20  ;;  %v1683_v6 = vor.u32 %v1682_v30, %v1680_v59  ;;  %v4452_v11 = vld [vmem:[#allocation2 + $0x74] sm:$0xff]  ;;  %v471_v20 = vld [vmem:[#allocation2 + $0xac] sm:$0xf] }
 0x173   : > { %v3185_v17 = vsel %vm3146_vm7, %v2406_v22, %v6046_v36  ;;  %v3084_v41 = vunpack.c.l.b16 %v2269_v21  ;;  %v1679_v52 = vrot.slane %v1678_v12, 4  ;;  %4369 = vmatmul.msk.bf16.gmra.mxu2 %vm3426_vm15, %v3411_v53  ;;  %2788 = vrot.lane.b32.xlu2 %v4444_v46, %s4693_s17  ;;  %v1688_v3 = vrot.slane %v1686_v39, 5 }
 0x174   : > { %v2277_v45 = vsel %vm4931_vm3, %v2272_v14, %v2276_v62  ;;  %v3538_v49 = vadd.f32 %v6180_v27, %v3537_v5  ;;  %v386_v51 = vpack.c.bf16 %v354_v43, %v354_v43  ;;  %v1684_v57 = vrot.slane %v1683_v6, 4  ;;  %v4112_v62 = vld [vmem:[#allocation2 + $0xfc] sm:$0xf]  ;;  %v6236_v14 = vld [vmem:[#allocation2 + $0xb4] sm:$0xf] }
 0x175   : > { %v3085_v1 = vunpack.c.l.b16 %v2277_v45  ;;  %v1681_v36 = vsel %vm4931_vm3, %v1679_v52, %v1680_v59  ;;  %v387_v56 = vpack.c.bf16 %v355_v35, %v355_v35  ;;  %v3221_v5 = vsel %vm3195_vm8, %v3185_v17, %v6091_v44  ;;  %v6234_v21 = vpop.permute.xlu1 %2850 }
 0x176   : > { %v3238_v38 = vsel %vm3228_vm9, %v3205_v8, %v6139_v58  ;;  %v2820_v50 = vunpack.c.l.b16 %v1681_v36  ;;  %v3617_v34 = vmax.f32 %v3538_v49, 0.0  ;;  %419 = vst.msk [vmem:[#allocation2 + $0xf4] sm:$0xf] %vm280_vm0, %v386_v51  ;;  %v1689_v46 = vsel %vm4931_vm3, %v1684_v57, %v1688_v3  ;;  %v3567_v49 = vpop.f32.mrf.mxu2 }
 0x177   : > { %v3107_v22 = vpack.c.b16 %v3085_v1, %v3084_v41  ;;  %420 = vst.msk [vmem:[#allocation2 + $0xf8] sm:$0xf] %vm280_vm0, %v387_v56  ;;  %v2073_v25 = vshrl.u32 %v4109_v42, 16  ;;  %v3540_v18 = vadd.f32 %v6180_v27, %v3539_v61  ;;  %v2821_v12 = vunpack.c.l.b16 %v1689_v46  ;;  %v4017_v41 = vld [vmem:[#allocation2 + $0xb0] sm:$0xf] }
 0x178   : > { %3649 = vst [vmem:[%s6221_s8] sm:$0xff] %v3617_v34  ;;  %v6226_v44 = vsel %vm3228_vm9, %v3221_v5, %v6153_v48  ;;  %v7068_v58 = vshrl.u32 %v6204_v28, 16  ;;  %v7057_v59 = vshll.u32 %v6204_v28, 16  ;;  %3044 = vrot.lane.b32.xlu0 %v4452_v11, %s4695_s19  ;;  %v7067_v39 = vshrl.u32 %v6206_v37, 16 }
 0x179   : > { %3132 = vrot.lane.b32.xlu1 %v3107_v22, %s4697_s27  ;;  %v3618_v30 = vmax.f32 %v3540_v18, 0.0  ;;  %v7056_v43 = vshll.u32 %v6206_v37, 16  ;;  %v1000_v8 = vshll.u32 %v471_v20, 16  ;;  %v2839_v48 = vpack.c.b16 %v2821_v12, %v2820_v50  ;;  %v6258_v12 = vpop.permute.xlu0 %2866 }
 0x17a   : > { %v990_v53 = vrot.slane %v7068_v58, 4  ;;  %v991_v35 = vrot.slane %v7057_v59, 5  ;;  %v2330_v17 = vshll.u32 %v4112_v62, 16  ;;  %v6243_v52 = vsel %vm3261_vm10, %v3238_v38, %v2771_v10 }
 0x17b   : > { %3650 = vst [vmem:[%s6221_s8 + $0x8] sm:$0xff] %v3618_v30  ;;  %v6246_v6 = vadd.f32 %v3618_v30, %v3617_v34  ;;  %v994_v45 = vrot.slane %v7056_v43, 5  ;;  %v996_v3 = vrot.slane %v7067_v39, 4  ;;  %2868 = vrot.lane.b32.xlu2 %v2839_v48, %s4699_s30  ;;  %v4134_v51 = vrot.slane %v2073_v25, 11 }
 0x17c   : > { %v992_v42 = vor.u32 %v991_v35, %v990_v53  ;;  %v1002_v61 = vrot.slane %v1000_v8, 5  ;;  %v6253_v11 = vrot.slane %v2330_v17, 5  ;;  %v1363_v36 = vshrl.u32 %v4017_v41, 16  ;;  %v6262_v35 = vld [vmem:[#allocation2 + $0xb8] sm:$0xf] }
 0x17d   : > { %v4110_v1 = vld [vmem:[#allocation2 + $0xf4] sm:$0xf]  ;;  %v997_v10 = vor.u32 %v996_v3, %v994_v45  ;;  %v1368_v57 = vshrl.u32 %v6236_v14, 16  ;;  %v1371_v56 = vshll.u32 %v6236_v14, 16  ;;  %v3568_v22 = vadd.f32 %v6180_v27, %v3567_v49 }
 0x17e   : > { %v4460_v5 = vld [vmem:[#allocation2 + $0xf4] sm:$0xff]  ;;  %v2078_v50 = vshrl.u32 %v4110_v1, 16  ;;  %v2081_v34 = vshll.u32 %v4110_v1, 16  ;;  %v993_v20 = vrot.slane %v992_v42, 4  ;;  %v4051_v62 = vrot.slane %v1363_v36, 11  ;;  %v2931_v42 = vpop.permute.xlu1 %2930  ;;  %v6267_v36 = vpop.permute.xlu2 %2946 }
 0x17f   : > { %v4111_v38 = vld [vmem:[#allocation2 + $0xf8] sm:$0xf]  ;;  %v998_v18 = vrot.slane %v997_v10, 4  ;;  %v3304_v7 = vsel %vm3294_vm11, %v6243_v52, %v6234_v21  ;;  %v7106_v47 = vshll.u32 %v5886_v13, 16 }
 0x180   : > { %v2087_v46 = vshrl.u32 %v4111_v38, 16  ;;  %v2090_v25 = vshll.u32 %v4111_v38, 16  ;;  %v2080_v30 = vrot.slane %v2078_v50, 7  ;;  %v995_v8 = vsel %vm4931_vm3, %v993_v20, %v994_v45  ;;  %3060 = vrot.lane.b32.xlu0 %v4460_v5, %s4695_s19 }
 0x181   : > { %v2320_v48 = vrot.slane %v2078_v50, 4  ;;  %v2321_v53 = vrot.slane %v2081_v34, 5  ;;  %v1003_v41 = vsel %vm4931_vm3, %v998_v18, %v1002_v61  ;;  %v2542_v3 = vunpack.c.l.b16 %v995_v8 }
 0x182   : > { %v2089_v17 = vrot.slane %v2087_v46, 7  ;;  %v2324_v49 = vrot.slane %v2090_v25, 5  ;;  %v2083_v1 = vor.u32 %v2081_v34, %v2080_v30  ;;  %v2085_v10 = vrot.slane %v2080_v30, 4 }
 0x183   : > { %v2543_v38 = vunpack.c.l.b16 %v1003_v41  ;;  %v2322_v43 = vor.u32 %v2321_v53, %v2320_v48  ;;  %v2326_v50 = vrot.slane %v2087_v46, 4  ;;  %v1370_v20 = vrot.slane %v1368_v57, 7 }
 0x184   : > { %v2092_v45 = vor.u32 %v2090_v25, %v2089_v17  ;;  %v1377_v5 = vshrl.u32 %v6262_v35, 16  ;;  %v2084_v59 = vsel %vm4986_vm6, %v4134_v51, %v2083_v1  ;;  %v1380_v8 = vshll.u32 %v6262_v35, 16 }
 0x185   : > { %v2564_v61 = vpack.c.b16 %v2543_v38, %v2542_v3  ;;  %v2323_v18 = vrot.slane %v2322_v43, 4  ;;  %v2900_v30 = vunpack.c.l.b16 %v2084_v59  ;;  %v2327_v41 = vor.u32 %v2326_v50, %v2324_v49  ;;  %v4080_v59 = vld [vmem:[#allocation2 + $0x7c] sm:$0xf] }
 0x186   : > { %v2093_v34 = vsel %vm4986_vm6, %v2085_v10, %v2092_v45  ;;  %v1373_v46 = vor.u32 %v1371_v56, %v1370_v20  ;;  %v1375_v53 = vrot.slane %v1370_v20, 4  ;;  %v1379_v51 = vrot.slane %v1377_v5, 7 }
 0x187   : > { %v2901_v25 = vunpack.c.l.b16 %v2093_v34  ;;  %v2325_v48 = vsel %vm4931_vm3, %v2323_v18, %v2324_v49  ;;  %v2328_v43 = vrot.slane %v2327_v41, 4  ;;  %v3629_v1 = vmax.f32 %v3568_v22, 0.0  ;;  %v4097_v18 = vld [vmem:[#allocation2 + $0xc0] sm:$0xf]  ;;  %v6300_v34 = vpop.permute.xlu0 %3122 }
 0x188   : > { %v3092_v17 = vunpack.c.l.b16 %v2325_v48  ;;  %v1374_v3 = vsel %vm4986_vm6, %v4051_v62, %v1373_v46  ;;  %v1382_v38 = vor.u32 %v1380_v8, %v1379_v51  ;;  %v2208_v50 = vrot.slane %v1902_v15, 4  ;;  %2590 = vrot.lane.b32.xlu0 %v2564_v61, %s7073_s18  ;;  %v3043_v15 = vpop.permute.xlu1 %3042  ;;  %v6315_v46 = vld [vmem:[#allocation2 + $0xc8] sm:$0xf]  ;;  %v6317_v48 = vpop.permute.xlu2 %3058 }
 0x189   : > { %v2919_v10 = vpack.c.b16 %v2901_v25, %v2900_v30  ;;  %v2622_v45 = vunpack.c.l.b16 %v1374_v3  ;;  %v2333_v49 = vsel %vm4931_vm3, %v2328_v43, %v6253_v11  ;;  %3661 = vst [vmem:[%s6221_s8 + $0x60] sm:$0xff] %v3629_v1  ;;  %v2209_v62 = vrot.slane %v1905_v24, 5 }
 0x18a   : > { %v2212_v22 = vrot.slane %v1914_v4, 5  ;;  %v2214_v20 = vrot.slane %v1911_v19, 4  ;;  %v3093_v61 = vunpack.c.l.b16 %v2333_v49  ;;  %v6306_v11 = vsel %vm3261_vm10, %v6226_v44, %v6208_v32  ;;  %v6310_v4 = vld [vmem:[#allocation2 + $0xc4] sm:$0xf] }
 0x18b   : > { %2948 = vrot.lane.b32.xlu1 %v2919_v10, %s4696_s20  ;;  %v1383_v31 = vsel %vm4986_vm6, %v1375_v53, %v1382_v38  ;;  %v2218_v24 = vshll.u32 %v4080_v59, 16  ;;  %v2210_v30 = vor.u32 %v2209_v62, %v2208_v50  ;;  %v3337_v44 = vsel %vm3327_vm12, %v3304_v7, %v2931_v42  ;;  %v4429_v53 = vld [vmem:[#allocation2 + $0xe4] sm:$0xff]  ;;  %v4020_v50 = vld [vmem:[#allocation2 + $0xbc] sm:$0xf] }
 0x18c   : > { %v2623_v19 = vunpack.c.l.b16 %v1383_v31  ;;  %v2215_v41 = vor.u32 %v2214_v20, %v2212_v22  ;;  %v3111_v25 = vpack.c.b16 %v3093_v61, %v3092_v17  ;;  %v2007_v51 = vshrl.u32 %v4097_v18, 16  ;;  %v3569_v31 = vpop.f32.mrf.mxu2 }
 0x18d   : > { %v2220_v32 = vrot.slane %v2218_v24, 5  ;;  %v2211_v3 = vrot.slane %v2210_v30, 4  ;;  %v2012_v59 = vshrl.u32 %v6310_v4, 16  ;;  %v2015_v52 = vshll.u32 %v6310_v4, 16 }
 0x18e   : > { %v6320_v43 = vpack.c.b16 %v2623_v19, %v2622_v45  ;;  %v2216_v1 = vrot.slane %v2215_v41, 4  ;;  %v4131_v21 = vrot.slane %v2007_v51, 11  ;;  %v2021_v10 = vshrl.u32 %v6315_v46, 16 }
 0x18f   : > { %v2024_v17 = vshll.u32 %v6315_v46, 16  ;;  %v2213_v38 = vsel %vm4931_vm3, %v2211_v3, %v2212_v22  ;;  %v2014_v45 = vrot.slane %v2012_v59, 7  ;;  %v1634_v49 = vrot.slane %v1368_v57, 4  ;;  %v6352_v3 = vld [vmem:[#allocation2 + $0xf4] sm:$0xf] }
 0x190   : > { %v2221_v42 = vsel %vm4931_vm3, %v2216_v1, %v2220_v32  ;;  %v3076_v62 = vunpack.c.l.b16 %v2213_v38  ;;  %v2023_v18 = vrot.slane %v2021_v10, 7  ;;  %v1635_v61 = vrot.slane %v1371_v56, 5  ;;  %2518 = vrot.lane.b32.xlu0 %v4429_v53, %s4692_s11 }
 0x191   : > { %v3077_v20 = vunpack.c.l.b16 %v2221_v42  ;;  %v2017_v22 = vor.u32 %v2015_v52, %v2014_v45  ;;  %v2019_v24 = vrot.slane %v2014_v45, 4  ;;  %v1638_v7 = vrot.slane %v1380_v8, 5  ;;  %v4033_v8 = vld [vmem:[#allocation2 + $0xf0] sm:$0xf]  ;;  %v6354_v35 = vpop.permute.xlu0 %2576  ;;  %v6361_v42 = vld [vmem:[#allocation2 + $0xf8] sm:$0xf] }
 0x192   : > { %v1640_v57 = vrot.slane %v1377_v5, 4  ;;  %v2026_v14 = vor.u32 %v2024_v17, %v2023_v18  ;;  %v1636_v56 = vor.u32 %v1635_v61, %v1634_v49  ;;  %v1644_v30 = vshll.u32 %v4020_v50, 16  ;;  %v6356_v5 = vpop.permute.xlu1 %2496  ;;  %v6365_v49 = vpop.permute.xlu2 %2656 }
 0x193   : > { %3140 = vrot.lane.b32.xlu1 %v3111_v25, %s4697_s27  ;;  %v3103_v19 = vpack.c.b16 %v3077_v20, %v3076_v62  ;;  %v2018_v41 = vsel %vm4986_vm6, %v4131_v21, %v2017_v22  ;;  %v3570_v51 = vadd.f32 %v6180_v27, %v3569_v31  ;;  %v3370_v53 = vsel %vm3360_vm13, %v3337_v44, %v3043_v15  ;;  %v440_v31 = vld [vmem:[#allocation2 + $0x30] sm:$0xf] }
 0x194   : > { %v1641_v32 = vor.u32 %v1640_v57, %v1638_v7  ;;  %v2027_v25 = vsel %vm4986_vm6, %v2019_v24, %v2026_v14  ;;  %v2894_v1 = vunpack.c.l.b16 %v2018_v41  ;;  %v1637_v38 = vrot.slane %v1636_v56, 4  ;;  %v356_v57 = vld [vmem:[%s4864_s16 + $0xf0] sm:$0xff]  ;;  %v4425_v14 = vld [vmem:[#allocation2 + $0xa4] sm:$0xff] }
 0x195   : > { %3124 = vrot.lane.b32.xlu2 %v3103_v19, %s4697_s27  ;;  %v1646_v21 = vrot.slane %v1644_v30, 5  ;;  %v2895_v45 = vunpack.c.l.b16 %v2027_v25  ;;  %v3630_v44 = vmax.f32 %v3570_v51, 0.0  ;;  %v3403_v50 = vsel %vm3393_vm14, %v3370_v53, %v6300_v34  ;;  %v357_v53 = vld [vmem:[%s4864_s16 + $0xf8] sm:$0xff] }
 0x196   : > { %v1642_v15 = vrot.slane %v1641_v32, 4  ;;  %v1639_v62 = vsel %vm4931_vm3, %v1637_v38, %v1638_v7  ;;  %4365 = vmatmul.msk.bf16.vlgmr.msra.gmra.mxu1 %vm3426_vm15, %v3403_v50  ;;  %v1451_v20 = vshrl.u32 %v4033_v8, 16  ;;  %v1456_v18 = vshrl.u32 %v6352_v3, 16  ;;  %v3542_v50 = vpop.f32.mrf.mxu0 }
 0x197   : > { %v1459_v61 = vshll.u32 %v6352_v3, 16  ;;  %v3320_v22 = vsel %vm3294_vm11, %v6306_v11, %v6258_v12  ;;  %v2916_v24 = vpack.c.b16 %v2895_v45, %v2894_v1  ;;  %3662 = vst [vmem:[%s6221_s8 + $0x68] sm:$0xff] %v3630_v44  ;;  %v1465_v7 = vshrl.u32 %v6361_v42, 16  ;;  %v4113_v44 = vld [vmem:[#allocation2 + $0x100] sm:$0xf] }
 0x198   : > { %v1647_v34 = vsel %vm4931_vm3, %v1642_v15, %v1646_v21  ;;  %v2814_v19 = vunpack.c.l.b16 %v1639_v62  ;;  %v4055_v56 = vrot.slane %v1451_v20, 11  ;;  %v1458_v30 = vrot.slane %v1456_v18, 7  ;;  %v4445_v20 = vld [vmem:[#allocation2 + $0xf4] sm:$0xff] }
 0x199   : > { %v1468_v41 = vshll.u32 %v6361_v42, 16  ;;  %2942 = vrot.lane.b32.xlu0 %v2916_v24, %s4696_s20  ;;  %v1467_v12 = vrot.slane %v1465_v7, 7  ;;  %v562_v11 = vshrl.u32 %v440_v31, 16  ;;  %v569_v32 = vrot.slane %v567_v2, 7  ;;  %v6411_v24 = vpop.permute.xlu0 %2768 }
 0x19a   : > { %v578_v51 = vrot.slane %v576_v26, 7  ;;  %v2815_v8 = vunpack.c.l.b16 %v1647_v34  ;;  %v1461_v25 = vor.u32 %v1459_v61, %v1458_v30  ;;  %v1463_v1 = vrot.slane %v1458_v30, 4  ;;  %v6430_v30 = vpop.permute.xlu2 %2928 }
 0x19b   : > { %2670 = vrot.lane.b32.xlu1 %v6320_v43, %s4698_s28  ;;  %v388_v38 = vpack.c.bf16 %v356_v57, %v356_v57  ;;  %v1470_v21 = vor.u32 %v1468_v41, %v1467_v12  ;;  %v3964_v45 = vrot.slane %v562_v11, 11  ;;  %v572_v2 = vor.u32 %v570_v9, %v569_v32  ;;  %v4100_v9 = vld [vmem:[#allocation2 + $0xcc] sm:$0xf]  ;;  %v6413_v63 = vpop.permute.xlu1 %3138  ;;  %v4441_v11 = vld [vmem:[#allocation2 + $0xb4] sm:$0xff] }
 0x19c   : > { %v574_v15 = vrot.slane %v569_v32, 4  ;;  %v581_v26 = vor.u32 %v579_v29, %v578_v51  ;;  %v389_v43 = vpack.c.bf16 %v357_v53, %v357_v53  ;;  %v6405_v62 = vsel %vm3327_vm12, %v3320_v22, %v6267_v36  ;;  %v6415_v29 = vld [vmem:[#allocation2 + $0xe4] sm:$0xf]  ;;  %v6433_v53 = vld [vmem:[#allocation2 + $0xe8] sm:$0xf] }
 0x19d   : > { %2510 = vrot.lane.b32.xlu2 %v4425_v14, %s4692_s11  ;;  %421 = vst.msk [vmem:[#allocation2 + $0x104] sm:$0xf] %vm280_vm0, %v388_v38  ;;  %v1462_v60 = vsel %vm4986_vm6, %v4055_v56, %v1461_v25  ;;  %v2278_v31 = vrot.slane %v2012_v59, 4  ;;  %v2836_v34 = vpack.c.b16 %v2815_v8, %v2814_v19  ;;  %v1471_v57 = vsel %vm4986_vm6, %v1463_v1, %v1470_v21 }
 0x19e   : > { %v573_v36 = vsel %vm4986_vm6, %v3964_v45, %v572_v2  ;;  %422 = vst.msk [vmem:[#allocation2 + $0x108] sm:$0xf] %vm280_vm0, %v389_v43  ;;  %v2095_v22 = vshrl.u32 %v4113_v44, 16  ;;  %v582_v14 = vsel %vm4986_vm6, %v574_v15, %v581_v26  ;;  %v2279_v59 = vrot.slane %v2015_v52, 5 }
 0x19f   : > { %v2282_v56 = vrot.slane %v2024_v17, 5  ;;  %v2284_v19 = vrot.slane %v2021_v10, 4  ;;  %v2630_v12 = vunpack.c.l.b16 %v1462_v60  ;;  %v2288_v32 = vshll.u32 %v4100_v9, 16 }
 0x1a0   : > { %v3543_v51 = vadd.f32 %v6180_v27, %v3542_v50  ;;  %v7066_v8 = vshrl.u32 %v6415_v29, 16  ;;  %v2631_v4 = vunpack.c.l.b16 %v1471_v57  ;;  %v2280_v52 = vor.u32 %v2279_v59, %v2278_v31 }
 0x1a1   : > { %2790 = vrot.lane.b32.xlu0 %v4445_v20, %s4693_s17  ;;  %v2285_v17 = vor.u32 %v2284_v19, %v2282_v56  ;;  %v7064_v46 = vshll.u32 %v6415_v29, 16  ;;  %v2368_v10 = vunpack.c.l.b16 %v573_v36  ;;  %v2369_v25 = vunpack.c.l.b16 %v582_v14  ;;  %v487_v19 = vld [vmem:[#allocation2 + $0xec] sm:$0xf] }
 0x1a2   : > { %v2290_v1 = vrot.slane %v2288_v32, 5  ;;  %v3619_v38 = vmax.f32 %v3543_v51, 0.0  ;;  %v2281_v45 = vrot.slane %v2280_v52, 4  ;;  %v7063_v15 = vshll.u32 %v6433_v53, 16  ;;  %v6464_v32 = vpop.permute.xlu0 %2508 }
 0x1a3   : > { %2862 = vrot.lane.b32.xlu1 %v2836_v34, %s4699_s30  ;;  %v2286_v2 = vrot.slane %v2285_v17, 4  ;;  %v1046_v44 = vrot.slane %v7066_v8, 4  ;;  %v7065_v20 = vshrl.u32 %v6433_v53, 16  ;;  %v2648_v60 = vpack.c.b16 %v2631_v4, %v2630_v12 }
 0x1a4   : > { %v6439_v21 = vld [vmem:[#allocation2 + $0x104] sm:$0xf]  ;;  %3651 = vst [vmem:[%s6221_s8 + $0x10] sm:$0xff] %v3619_v38  ;;  %v3683_v50 = vadd.f32 %v6246_v6, %v3619_v38  ;;  %v4135_v31 = vrot.slane %v2095_v22, 11  ;;  %v2283_v34 = vsel %vm4931_vm3, %v2281_v45, %v2282_v56  ;;  %v1047_v57 = vrot.slane %v7064_v46, 5  ;;  %v3544_v38 = vpop.f32.mrf.mxu0 }
 0x1a5   : > { %2782 = vrot.lane.b32.xlu2 %v4441_v11, %s4693_s17  ;;  %v2100_v26 = vshrl.u32 %v6439_v21, 16  ;;  %v2103_v43 = vshll.u32 %v6439_v21, 16  ;;  %v6450_v9 = vld [vmem:[#allocation2 + $0x108] sm:$0xf]  ;;  %v2291_v6 = vsel %vm4931_vm3, %v2286_v2, %v2290_v1  ;;  %v2397_v12 = vpack.c.b16 %v2369_v25, %v2368_v10  ;;  %v2849_v51 = vpop.permute.xlu1 %2848 }
 0x1a6   : > { %v2109_v14 = vshrl.u32 %v6450_v9, 16  ;;  %v2112_v59 = vshll.u32 %v6450_v9, 16  ;;  %v3086_v11 = vunpack.c.l.b16 %v2283_v34  ;;  %v1048_v22 = vor.u32 %v1047_v57, %v1046_v44  ;;  %v6476_v44 = vpop.permute.xlu2 %2588 }
 0x1a7   : > { %v2102_v36 = vrot.slane %v2100_v26, 7  ;;  %v1050_v56 = vrot.slane %v7063_v15, 5  ;;  %v1052_v1 = vrot.slane %v7065_v20, 4  ;;  %v3087_v10 = vunpack.c.l.b16 %v2291_v6 }
 0x1a8   : > { %v2111_v17 = vrot.slane %v2109_v14, 7  ;;  %v1049_v25 = vrot.slane %v1048_v22, 4  ;;  %v1056_v45 = vshll.u32 %v487_v19, 16  ;;  %v3386_v2 = vsel %vm3360_vm13, %v6405_v62, %v6317_v48 }
 0x1a9   : > { %v2105_v4 = vor.u32 %v2103_v43, %v2102_v36  ;;  %v2107_v52 = vrot.slane %v2102_v36, 4  ;;  %v1053_v36 = vor.u32 %v1052_v1, %v1050_v56  ;;  %v3419_v6 = vsel %vm3393_vm14, %v3386_v2, %v6413_v63 }
 0x1aa   : > { %v2114_v57 = vor.u32 %v2112_v59, %v2111_v17  ;;  %v1051_v19 = vsel %vm4931_vm3, %v1049_v25, %v1050_v56  ;;  %v1058_v48 = vrot.slane %v1056_v45, 5  ;;  %4373 = vmatmul.msk.bf16.gmra.mxu3 %vm3426_vm15, %v3419_v6  ;;  %v3545_v62 = vadd.f32 %v6180_v27, %v3544_v38  ;;  %v6494_v25 = vld [vmem:[#allocation2 + $0xf4] sm:$0xf] }
 0x1ab   : > { %2678 = vrot.lane.b32.xlu1 %v2648_v60, %s4698_s28  ;;  %v2106_v34 = vsel %vm4986_vm6, %v4135_v31, %v2105_v4  ;;  %v3158_v60 = vsel %vm3146_vm7, %v2397_v12, %v6356_v5  ;;  %v1054_v4 = vrot.slane %v1053_v36, 4  ;;  %v2550_v1 = vunpack.c.l.b16 %v1051_v19  ;;  %v6501_v12 = vld [vmem:[#allocation2 + $0xf8] sm:$0xf] }
 0x1ac   : > { %v2902_v22 = vunpack.c.l.b16 %v2106_v34  ;;  %v2115_v31 = vsel %vm4986_vm6, %v2107_v52, %v2114_v57  ;;  %v3620_v63 = vmax.f32 %v3545_v62, 0.0  ;;  %v3108_v2 = vpack.c.b16 %v3087_v10, %v3086_v11  ;;  %v491_v57 = vld [vmem:[#allocation2 + $0xfc] sm:$0xf] }
 0x1ad   : > { %v2903_v17 = vunpack.c.l.b16 %v2115_v31  ;;  %v1059_v56 = vsel %vm4931_vm3, %v1054_v4, %v1058_v48  ;;  %v3203_v45 = vsel %vm3195_vm8, %v3158_v60, %v6354_v35  ;;  %v7062_v11 = vshrl.u32 %v6494_v25, 16  ;;  %v3121_v10 = vpop.permute.xlu0 %3120  ;;  %v3041_v36 = vpop.permute.xlu1 %3040  ;;  %v4461_v4 = vld [vmem:[#allocation2 + $0x104] sm:$0xff] }
 0x1ae   : > { %v2551_v34 = vunpack.c.l.b16 %v1059_v56  ;;  %3652 = vst [vmem:[%s6221_s8 + $0x18] sm:$0xff] %v3620_v63  ;;  %v6499_v5 = vadd.f32 %v3683_v50, %v3620_v63  ;;  %v3236_v35 = vsel %vm3228_vm9, %v3203_v45, %v6365_v49  ;;  %v7060_v50 = vshll.u32 %v6494_v25, 16  ;;  %v6513_v19 = vpop.permute.xlu2 %2668  ;;  %v4430_v49 = vld [vmem:[#allocation2 + $0xf4] sm:$0xff]  ;;  %v4457_v63 = vld [vmem:[#allocation2 + $0xc4] sm:$0xff]  ;;  %v4036_v56 = vld [vmem:[#allocation2 + $0xfc] sm:$0xf] }
 0x1af   : > { %v2920_v38 = vpack.c.b16 %v2903_v17, %v2902_v22  ;;  %v3269_v6 = vsel %vm3261_vm10, %v3236_v35, %v6411_v24  ;;  %v7061_v22 = vshrl.u32 %v6501_v12, 16  ;;  %v7058_v62 = vshll.u32 %v6501_v12, 16 }
 0x1b0   : > { %v2568_v52 = vpack.c.b16 %v2551_v34, %v2550_v1  ;;  %v3302_v48 = vsel %vm3294_vm11, %v3269_v6, %v2849_v51  ;;  %v1060_v60 = vrot.slane %v7062_v11, 4  ;;  %v1070_v31 = vshll.u32 %v491_v57, 16  ;;  %v6530_v57 = vld [vmem:[#allocation2 + $0x104] sm:$0xf] }
 0x1b1   : > { %2950 = vrot.lane.b32.xlu0 %v2920_v38, %s4696_s20  ;;  %v1061_v24 = vrot.slane %v7060_v50, 5  ;;  %v1064_v17 = vrot.slane %v7058_v62, 5  ;;  %v1066_v1 = vrot.slane %v7061_v22, 4  ;;  %v3335_v51 = vsel %vm3327_vm12, %v3302_v48, %v6430_v30 }
 0x1b2   : > { %2598 = vrot.lane.b32.xlu2 %v2568_v52, %s7073_s18  ;;  %v1690_v45 = vrot.slane %v1456_v18, 4  ;;  %v1072_v34 = vrot.slane %v1070_v31, 5  ;;  %v3368_v52 = vsel %vm3360_vm13, %v3335_v51, %v3041_v36  ;;  %v1691_v6 = vrot.slane %v1459_v61, 5  ;;  %v6545_v61 = vld [vmem:[#allocation2 + $0x108] sm:$0xf] }
 0x1b3   : > { %3134 = vrot.lane.b32.xlu1 %v3108_v2, %s4697_s27  ;;  %v1062_v2 = vor.u32 %v1061_v24, %v1060_v60  ;;  %v1067_v38 = vor.u32 %v1066_v1, %v1064_v17  ;;  %v1694_v60 = vrot.slane %v1468_v41, 5  ;;  %v1696_v30 = vrot.slane %v1465_v7, 4  ;;  %v4040_v41 = vld [vmem:[#allocation2 + $0x10c] sm:$0xf] }
 0x1b4   : > { %v1700_v48 = vshll.u32 %v4036_v56, 16  ;;  %v3401_v36 = vsel %vm3393_vm14, %v3368_v52, %v3121_v10  ;;  %v1478_v42 = vshrl.u32 %v6530_v57, 16  ;;  %v1481_v56 = vshll.u32 %v6530_v57, 16  ;;  %v6688_v57 = vld [vmem:[%s7024_s2] ss:$0 sm:$0xff] }
 0x1b5   : > { %v1063_v35 = vrot.slane %v1062_v2, 4  ;;  %v1068_v18 = vrot.slane %v1067_v38, 4  ;;  %v1697_v3 = vor.u32 %v1696_v30, %v1694_v60  ;;  %4364 = vmatmul.msk.bf16.gmra.mxu0 %vm3426_vm15, %v3401_v36  ;;  %v6550_v24 = vpop.permute.xlu1 %2500  ;;  %v1487_v38 = vshrl.u32 %v6545_v61, 16  ;;  %v3572_v30 = vpop.f32.mrf.mxu2 }
 0x1b6   : > { %v1702_v1 = vrot.slane %v1700_v48, 5  ;;  %v1490_v52 = vshll.u32 %v6545_v61, 16  ;;  %v1705_v36 = vrot.slane %v1481_v56, 5  ;;  %v6582_v62 = vrot.slane %v699_v16, 7 }
 0x1b7   : > { %v1065_v31 = vsel %vm4931_vm3, %v1063_v35, %v1064_v17  ;;  %v1073_v10 = vsel %vm4931_vm3, %v1068_v18, %v1072_v34  ;;  %v4446_v17 = vld [vmem:[#allocation2 + $0x104] sm:$0xff]  ;;  %v1698_v51 = vrot.slane %v1697_v3, 4  ;;  %v1704_v35 = vrot.slane %v1478_v42, 4 }
 0x1b8   : > { %v6548_v7 = vpop.permute.xlu0 %2580  ;;  %v7101_v22 = vshrl.u32 %v5862_v54, 16  ;;  %v2334_v8 = vrot.slane %v2100_v26, 4 }
 0x1b9   : > { %2520 = vrot.lane.b32.xlu0 %v4430_v49, %s4692_s11  ;;  %v1692_v49 = vor.u32 %v1691_v6, %v1690_v45  ;;  %v6555_v45 = vpop.permute.xlu2 %2516  ;;  %v1714_v6 = vshll.u32 %v4040_v41, 16  ;;  %v1703_v48 = vsel %vm4931_vm3, %v1698_v51, %v1702_v1  ;;  %v1710_v41 = vrot.slane %v1487_v38, 4  ;;  %v6575_v1 = vld [vmem:[#allocation2 + $0x114] sm:$0xf] }
 0x1ba   : > { %3054 = vrot.lane.b32.xlu2 %v4457_v63, %s4695_s19  ;;  %v2553_v63 = vunpack.c.l.b16 %v1073_v10  ;;  %v2823_v3 = vunpack.c.l.b16 %v1703_v48  ;;  %v1708_v10 = vrot.slane %v1490_v52, 5  ;;  %v710_v11 = vrot.slane %v7101_v22, 7 }
 0x1bb   : > { %3062 = vrot.lane.b32.xlu1 %v4461_v4, %s4695_s19  ;;  %v2552_v4 = vunpack.c.l.b16 %v1065_v31  ;;  %v1693_v2 = vrot.slane %v1692_v49, 4  ;;  %v464_v31 = vld [vmem:[#allocation2 + $0x90] sm:$0xf]  ;;  %v1716_v51 = vrot.slane %v1714_v6, 5  ;;  %v4462_v6 = vld [vmem:[#allocation2 + $0x114] sm:$0xff] }
 0x1bc   : > { %v694_v48 = vshrl.u32 %v464_v31, 16  ;;  %v7070_v31 = vshll.u32 %v6575_v1, 16 }
 0x1bd   : > { %v2569_v34 = vpack.c.b16 %v2553_v63, %v2552_v4  ;;  %v1695_v18 = vsel %vm4931_vm3, %v1693_v2, %v1694_v60  ;;  %v1706_v4 = vor.u32 %v1705_v36, %v1704_v35  ;;  %v6573_v60 = vadd.f32 %v6180_v27, %v3572_v30  ;;  %v3574_v39 = vpop.f32.mrf.mxu2 }
 0x1be   : > { %v2822_v49 = vunpack.c.l.b16 %v1695_v18  ;;  %v1711_v2 = vor.u32 %v1710_v41, %v1708_v10  ;;  %v6578_v18 = vld [vmem:[#allocation2 + $0x118] sm:$0xf]  ;;  %v7069_v36 = vshrl.u32 %v6575_v1, 16  ;;  %v6597_v41 = vpop.permute.xlu1 %2780  ;;  %v6635_v21 = vadd.f32 %v6180_v27, %v3574_v39 }
 0x1bf   : > { %v7059_v35 = vmax.f32 %v6573_v60, 0.0  ;;  %v7072_v16 = vshrl.u32 %v6578_v18, 16  ;;  %v7104_v39 = vshrl.u32 %v5886_v13, 16  ;;  %v7107_v13 = vshrl.u32 %v6575_v1, 16 }
 0x1c0   : > { %v2840_v63 = vpack.c.b16 %v2823_v3, %v2822_v49  ;;  %v1712_v30 = vrot.slane %v1711_v2, 4  ;;  %v7071_v49 = vshll.u32 %v6578_v18, 16  ;;  %v448_v2 = vld [vmem:[#allocation2 + $0x50] sm:$0xf]  ;;  %v2348_v20 = vrot.slane %v7069_v36, 4 }
 0x1c1   : > { %2792 = vrot.lane.b32.xlu0 %v4446_v17, %s4693_s17  ;;  %v1707_v17 = vrot.slane %v1706_v4, 4  ;;  %3663 = vst [vmem:[%s6221_s8 + $0x70] sm:$0xff] %v7059_v35  ;;  %v7100_v35 = vshll.u32 %v5860_v0, 16  ;;  %v6610_v46 = vpop.permute.xlu2 %2596  ;;  %v2354_v0 = vrot.slane %v7072_v16, 4  ;;  %v606_v22 = vshrl.u32 %v448_v2, 16  ;;  %s3807_s17 = scalar_lea.sflag [#allocation5], %s6169_s12 }
 0x1c2   : > { %2870 = vrot.lane.b32.xlu2 %v2840_v63, %s4699_s30  ;;  %v1717_v4 = vsel %vm4931_vm3, %v1712_v30, %v1716_v51  ;;  %v2349_v51 = vrot.slane %v7070_v31, 5  ;;  %v3592_v30 = vpop.f32.mrf.mxu3  ;;  %v2335_v31 = vrot.slane %v2103_v43, 5  ;;  %v2340_v2 = vrot.slane %v2109_v14, 4  ;;  %v4037_v16 = vld [vmem:[#allocation2 + $0x100] sm:$0xf] }
 0x1c3   : > { %2600 = vrot.lane.b32.xlu1 %v2569_v34, %s7073_s18  ;;  %v1709_v34 = vsel %vm4931_vm3, %v1707_v17, %v1708_v10  ;;  %v6595_v3 = vpop.permute.xlu0 %2660  ;;  %v4120_v10 = vld [vmem:[#allocation2 + $0x11c] sm:$0xf]  ;;  %v6601_v17 = vrot.slane %v694_v48, 11  ;;  %v6606_v50 = vor.u32 %v7100_v35, %v6582_v62  ;;  %v2825_v15 = vunpack.c.l.b16 %v1717_v4  ;;  %v4116_v35 = vld [vmem:[#allocation2 + $0x10c] sm:$0xf]  ;;  %s4599_s18 = scalar_lea.hbm %s7027_s5, 512 }
 0x1c4   : > { %v2824_v63 = vunpack.c.l.b16 %v1709_v34  ;;  %v2352_v48 = vrot.slane %v7071_v49, 5  ;;  %v2358_v4 = vshll.u32 %v4120_v10, 16  ;;  %v2350_v58 = vor.u32 %v2349_v51, %v2348_v20 }
 0x1c5   : > { %v2338_v49 = vrot.slane %v2112_v59, 5  ;;  %v2344_v26 = vshll.u32 %v4116_v35, 16  ;;  %v2336_v51 = vor.u32 %v2335_v31, %v2334_v8  ;;  %v706_v43 = vrot.slane %v6582_v62, 4 }
 0x1c6   : > { %v2841_v34 = vpack.c.b16 %v2825_v15, %v2824_v63  ;;  %v2355_v36 = vor.u32 %v2354_v0, %v2352_v48  ;;  %v7102_v15 = vshrl.u32 %v5878_v55, 16  ;;  %v2351_v10 = vrot.slane %v2350_v58, 4  ;;  %v6649_v35 = vpop.permute.xlu1 %2860 }
 0x1c7   : > { %v7103_v59 = vshll.u32 %v5862_v54, 16  ;;  %v2337_v14 = vrot.slane %v2336_v51, 4  ;;  %v3632_v8 = vmax.f32 %v6635_v21, 0.0 }
 0x1c8   : > { %v6630_v63 = vrot.slane %v7102_v15, 7  ;;  %v2356_v20 = vrot.slane %v2355_v36, 4  ;;  %v2346_v15 = vrot.slane %v2344_v26, 5  ;;  %v2353_v9 = vsel %vm4931_vm3, %v2351_v10, %v2352_v48 }
 0x1c9   : > { %3064 = vrot.lane.b32.xlu0 %v4462_v6, %s4695_s19  ;;  %v2360_v6 = vrot.slane %v2358_v4, 5  ;;  %v713_v0 = vor.u32 %v7103_v59, %v710_v11  ;;  %v622_v36 = vrot.slane %v7104_v39, 7  ;;  %v3096_v62 = vunpack.c.l.b16 %v2353_v9  ;;  %3664 = vst [vmem:[%s6221_s8 + $0x78] sm:$0xff] %v3632_v8 }
 0x1ca   : > { %v3966_v4 = vrot.slane %v606_v22, 11  ;;  %v7105_v48 = vshll.u32 %v5878_v55, 16  ;;  %v1473_v26 = vshrl.u32 %v4037_v16, 16  ;;  %v1480_v59 = vrot.slane %v1478_v42, 7  ;;  %v4117_v22 = vld [vmem:[#allocation2 + $0x110] sm:$0xf]  ;;  %v3594_v16 = vpop.f32.mrf.mxu3 }
 0x1cb   : > { %2872 = vrot.lane.b32.xlu1 %v2841_v34, %s4699_s30  ;;  %v2341_v34 = vor.u32 %v2340_v2, %v2338_v49  ;;  %v2361_v58 = vsel %vm4931_vm3, %v2356_v20, %v2360_v6  ;;  %v6647_v11 = vpop.permute.xlu0 %2772  ;;  %v2339_v6 = vsel %vm4931_vm3, %v2337_v14, %v2338_v49  ;;  %v1489_v49 = vrot.slane %v1487_v38, 7  ;;  %s4479_s30 = sshll.u32 %s4681_s24, 8 }
 0x1cc   : > { %v3097_v31 = vunpack.c.l.b16 %v2361_v58  ;;  %v616_v2 = vor.u32 %v7105_v48, %v6630_v63  ;;  %v3094_v51 = vunpack.c.l.b16 %v2339_v6  ;;  %v4056_v9 = vrot.slane %v1473_v26, 11  ;;  %s3825_s11 = scalar_lea.hbm %s7027_s5, %s4479_s30 }
 0x1cd   : > { %v2342_v54 = vrot.slane %v2341_v34, 4  ;;  %v6663_v34 = vpop.permute.xlu2 %2676  ;;  %v6668_v58 = vadd.f32 %v6180_v27, %v3592_v30  ;;  %v618_v14 = vrot.slane %v6630_v63, 4  ;;  %v1483_v42 = vor.u32 %v1481_v56, %v1480_v59  ;;  %s3828_s16 = sshll.u32 %s3825_s11, 4  ;;  %s3829_s16 = int_to_ptr.hbm [resolvable:$true] %s3828_s16 }
 0x1ce   : > { %v3113_v10 = vpack.c.b16 %v3097_v31, %v3096_v62  ;;  %v1485_v39 = vrot.slane %v1480_v59, 4  ;;  %v1492_v38 = vor.u32 %v1490_v52, %v1489_v49  ;;  %v2117_v30 = vshrl.u32 %v4117_v22, 16  ;;  %s4593_s19 = sshra.s32 %s3829_s16, 4  ;;  %s4594_s19 = int_to_ptr.hbm [resolvable:$true] %s4593_s19 }
 0x1cf   : > { %v2347_v20 = vsel %vm4931_vm3, %v2342_v54, %v2346_v15  ;;  %v625_v15 = vor.u32 %v7106_v47, %v622_v36  ;;  %v3639_v27 = vmax.f32 %v6668_v58, 0.0  ;;  %v1484_v63 = vsel %vm4986_vm6, %v4056_v9, %v1483_v42  ;;  %p4600_p1 = scmp.lt.s32.totalorder %s4594_s19, %s7027_s5 }
 0x1d0   : > { %v3095_v55 = vunpack.c.l.b16 %v2347_v20  ;;  %v2124_v36 = vrot.slane %v7107_v13, 7  ;;  %v7108_v31 = vshrl.u32 %v6578_v18, 16  ;;  %v6691_v61 = vadd.f32 %v6688_v57, %v3594_v16 }
 0x1d1   : > { %v705_v56 = vsel %vm4986_vm6, %v6601_v17, %v6606_v50  ;;  %v714_v52 = vsel %vm4986_vm6, %v706_v43, %v713_v0  ;;  %v1493_v48 = vsel %vm4986_vm6, %v1485_v39, %v1492_v38  ;;  %v2632_v6 = vunpack.c.l.b16 %v1484_v63  ;;  %3671 = vst [vmem:[%s6221_s8 + $0xb0] sm:$0xff] %v3639_v27 }
 0x1d2   : > { %v3112_v62 = vpack.c.b16 %v3095_v55, %v3094_v51  ;;  %v2133_v54 = vrot.slane %v7108_v31, 7  ;;  %v2633_v26 = vunpack.c.l.b16 %v1493_v48  ;;  %v7109_v20 = vshll.u32 %v6575_v1, 16 }
 0x1d3   : > { %3144 = vrot.lane.b32.xlu1 %v3113_v10, %s4697_s27  ;;  %v4136_v10 = vrot.slane %v2117_v30, 11  ;;  %v2129_v59 = vrot.slane %v2124_v36, 4  ;;  %v7110_v50 = vshll.u32 %v6578_v18, 16  ;;  %v3640_v43 = vmax.f32 %v6691_v61, 0.0  ;;  %v2853_v49 = vpop.permute.xlu0 %2852 }
 0x1d4   : > { %3142 = vrot.lane.b32.xlu2 %v3112_v62, %s4697_s27  ;;  %v2127_v51 = vor.u32 %v7109_v20, %v2124_v36  ;;  %v2380_v0 = vunpack.c.l.b16 %v705_v56  ;;  %v2381_v22 = vunpack.c.l.b16 %v714_v52  ;;  %v617_v55 = vsel %vm4986_vm6, %v3966_v4, %v616_v2  ;;  %v480_v2 = vld [vmem:[#allocation2 + $0xd0] sm:$0xf] }
 0x1d5   : > { %v2136_v17 = vor.u32 %v7110_v50, %v2133_v54  ;;  %v626_v9 = vsel %vm4986_vm6, %v618_v14, %v625_v15  ;;  %v2649_v47 = vpack.c.b16 %v2633_v26, %v2632_v6  ;;  %3672 = vst [vmem:[%s6221_s8 + $0xb8] sm:$0xff] %v3640_v43  ;;  %v2372_v42 = vunpack.c.l.b16 %v617_v55  ;;  %v6721_v62 = vpop.permute.xlu2 %2788 }
 0x1d6   : > { %v2128_v1 = vsel %vm4986_vm6, %v4136_v10, %v2127_v51  ;;  %v2373_v39 = vunpack.c.l.b16 %v626_v9  ;;  %v2403_v4 = vpack.c.b16 %v2381_v22, %v2380_v0  ;;  %v782_v38 = vshrl.u32 %v480_v2, 16 }
 0x1d7   : > { %v2941_v16 = vpop.permute.xlu1 %2940  ;;  %v2137_v18 = vsel %vm4986_vm6, %v2129_v59, %v2136_v17  ;;  %v2904_v14 = vunpack.c.l.b16 %v2128_v1  ;;  %v7111_v13 = vshrl.u32 %v5994_v40, 16  ;;  %v7112_v31 = vshrl.u32 %v6000_v23, 16 }
 0x1d8   : > { %v2905_v15 = vunpack.c.l.b16 %v2137_v18  ;;  %v2399_v30 = vpack.c.b16 %v2373_v39, %v2372_v42  ;;  %v3176_v63 = vsel %vm3146_vm7, %v2403_v4, %v6464_v32  ;;  %v3974_v20 = vrot.slane %v782_v38, 11 }
 0x1d9   : > { %v789_v36 = vrot.slane %v7111_v13, 7  ;;  %v798_v54 = vrot.slane %v7112_v31, 7  ;;  %v3215_v10 = vsel %vm3195_vm8, %v3176_v63, %v6476_v44  ;;  %v7113_v51 = vshll.u32 %v5994_v40, 16 }
 0x1da   : > { %v2921_v52 = vpack.c.b16 %v2905_v15, %v2904_v14  ;;  %v3164_v32 = vsel %vm3146_vm7, %v2399_v30, %v6550_v24  ;;  %v7114_v17 = vshll.u32 %v6000_v23, 16  ;;  %v3248_v44 = vsel %vm3228_vm9, %v3215_v10, %v6513_v19  ;;  %v468_v10 = vld [vmem:[#allocation2 + $0xa0] sm:$0xf] }
 0x1db   : > { %v792_v59 = vor.u32 %v7113_v51, %v789_v36  ;;  %v794_v50 = vrot.slane %v789_v36, 4  ;;  %v3207_v9 = vsel %vm3195_vm8, %v3164_v32, %v6548_v7  ;;  %v3281_v23 = vsel %vm3261_vm10, %v3248_v44, %v6597_v41 }
 0x1dc   : > { %2680 = vrot.lane.b32.xlu2 %v2649_v47, %s4698_s28  ;;  %v801_v0 = vor.u32 %v7114_v17, %v798_v54  ;;  %v3240_v40 = vsel %vm3228_vm9, %v3207_v9, %v6595_v3  ;;  %v3314_v19 = vsel %vm3294_vm11, %v3281_v23, %v6649_v35  ;;  %v7115_v51 = vshrl.u32 %v6204_v28, 16 }
 0x1dd   : > { %v2869_v55 = vpop.permute.xlu2 %2868  ;;  %v793_v47 = vsel %vm4986_vm6, %v3974_v20, %v792_v59  ;;  %v3273_v7 = vsel %vm3261_vm10, %v3240_v40, %v6647_v11  ;;  %v3347_v3 = vsel %vm3327_vm12, %v3314_v19, %v2941_v16  ;;  %v716_v17 = vshrl.u32 %v468_v10, 16 }
 0x1de   : > { %v802_v1 = vsel %vm4986_vm6, %v794_v50, %v801_v0  ;;  %v2388_v14 = vunpack.c.l.b16 %v793_v47  ;;  %v723_v59 = vrot.slane %v7115_v51, 7  ;;  %v7116_v0 = vshrl.u32 %v6206_v37, 16 }
 0x1df   : > { %v3053_v56 = vpop.permute.xlu1 %3052  ;;  %v2389_v15 = vunpack.c.l.b16 %v802_v1  ;;  %v7117_v9 = vshll.u32 %v6204_v28, 16  ;;  %v3971_v40 = vrot.slane %v716_v17, 11  ;;  %v7118_v47 = vshll.u32 %v6206_v37, 16 }
 0x1e0   : > { %v3380_v42 = vsel %vm3360_vm13, %v3347_v3, %v3053_v56  ;;  %v728_v23 = vrot.slane %v723_v59, 4  ;;  %v7119_v37 = vshrl.u32 %v6415_v29, 16 }
 0x1e1   : > { %v3547_v48 = vpop.f32.mrf.mxu0  ;;  %v2407_v63 = vpack.c.b16 %v2389_v15, %v2388_v14  ;;  %v726_v44 = vor.u32 %v7117_v9, %v723_v59  ;;  %v7120_v14 = vshrl.u32 %v6433_v53, 16 }
 0x1e2   : > { %v2933_v6 = vpop.permute.xlu0 %2932  ;;  %v3548_v26 = vadd.f32 %v6688_v57, %v3547_v48 }
 0x1e3   : > { %v3188_v36 = vsel %vm3146_vm7, %v2407_v63, %v6555_v45  ;;  %v820_v15 = vrot.slane %v7120_v14, 7 }
 0x1e4   : > { %v3621_v22 = vmax.f32 %v3548_v26, 0.0  ;;  %2952 = vrot.lane.b32.xlu2 %v2921_v52, %s4696_s20  ;;  %v3223_v54 = vsel %vm3195_vm8, %v3188_v36, %v6610_v46  ;;  %s4595_s20 = scalar_lea.hbm %s4594_s19, 256 }
 0x1e5   : > { %v3256_v48 = vsel %vm3228_vm9, %v3223_v54, %v6663_v34  ;;  %p4596_p12 = scmp.ne.s32.totalorder %s4594_s19, %s4595_s20  ;;  %p4601_p2 = scmp.lt.s32.totalorder %s4599_s18, %s4595_s20 }
 0x1e6   : > { %3653 = vst [vmem:[%s6221_s8 + $0x20] sm:$0xff] %v3621_v22  ;;  %v3685_v24 = vadd.f32 %v6499_v5, %v3621_v22  ;;  %v3306_v5 = vsel %vm3294_vm11, %v3273_v7, %v2853_v49  ;;  %v3289_v45 = vsel %vm3261_vm10, %v3256_v48, %v6721_v62  ;;  %v732_v22 = vrot.slane %v7116_v0, 7 }
 0x1e7   : > { %v3339_v41 = vsel %vm3327_vm12, %v3306_v5, %v2933_v6  ;;  %v3322_v32 = vsel %vm3294_vm11, %v3289_v45, %v2869_v55  ;;  %v727_v5 = vsel %vm4986_vm6, %v3971_v40, %v726_v44  ;;  %p4597_p13 = pnand %p4596_p12, %p4777_p4  ;;  %p4602_p3 = por %p4601_p2, %p4600_p1 }
 0x1e8   : > { %v735_v1 = vor.u32 %v7118_v47, %v732_v22 }
 0x1e9   : > { %v3549_v18 = vpop.f32.mrf.mxu0  ;;  %p4598_p0 = pneg %p4597_p13 }
 0x1ea   : > { %v3045_v39 = vpop.permute.xlu0 %3044  ;;  %v3550_v2 = vadd.f32 %v6688_v57, %v3549_v18  ;;  %v736_v28 = vsel %vm4986_vm6, %v728_v23, %v735_v1  ;;  %v2382_v18 = vunpack.c.l.b16 %v727_v5  ;;  %v7123_v23 = vshrl.u32 %v6494_v25, 16 }
 0x1eb   : > { %v3133_v4 = vpop.permute.xlu1 %3132  ;;  %v3372_v11 = vsel %vm3360_vm13, %v3339_v41, %v3045_v39  ;;  %v2383_v41 = vunpack.c.l.b16 %v736_v28  ;;  %v7124_v5 = vshrl.u32 %v6501_v12, 16  ;;  %p4603_p5 = pnand %p4602_p3, %p4598_p0 }
 0x1ec   : > { %v3413_v35 = vsel %vm3393_vm14, %v3380_v42, %v3133_v4  ;;  %v3622_v49 = vmax.f32 %v3550_v2, 0.0  ;;  %v484_v42 = vld [vmem:[#allocation2 + $0xe0] sm:$0xf]  ;;  %v811_v2 = vrot.slane %v7119_v37, 7  ;;  %v833_v47 = vrot.slane %v7123_v23, 7 }
 0x1ed   : > { %4370 = vmatmul.msk.bf16.gmra.mxu2 %vm3426_vm15, %v3413_v35  ;;  %v804_v4 = vshrl.u32 %v484_v42, 16  ;;  %v842_v28 = vrot.slane %v7124_v5, 7 }
 0x1ee   : > { %3654 = vst [vmem:[%s6221_s8 + $0x28] sm:$0xff] %v3622_v49  ;;  %v6768_v30 = vadd.f32 %v3685_v24, %v3622_v49  ;;  %v816_v63 = vrot.slane %v811_v2, 4  ;;  %v838_v14 = vrot.slane %v833_v47, 4 }
 0x1ef   : > { %v3125_v16 = vpop.permute.xlu2 %3124  ;;  %v3975_v49 = vrot.slane %v804_v4, 11  ;;  %v7125_v4 = vshll.u32 %v6494_v25, 16 }
 0x1f0   : > { %v3405_v38 = vsel %vm3393_vm14, %v3372_v11, %v3125_v16  ;;  %v2404_v11 = vpack.c.b16 %v2383_v41, %v2382_v18  ;;  %v7121_v16 = vshll.u32 %v6415_v29, 16 }
 0x1f1   : > { %4366 = vmatmul.msk.bf16.gmra.mxu1 %vm3426_vm15, %v3405_v38  ;;  %v836_v37 = vor.u32 %v7125_v4, %v833_v47 }
 0x1f2   : > { %v3061_v13 = vpop.permute.xlu0 %3060  ;;  %v814_v38 = vor.u32 %v7121_v16, %v811_v2 }
 0x1f4   : > { %v815_v29 = vsel %vm4986_vm6, %v3975_v49, %v814_v38 }
 0x1f6   : > { %v3577_v31 = vpop.f32.mrf.mxu2 }
 0x1f7   : > { %v6776_v56 = vadd.f32 %v6688_v57, %v3577_v31  ;;  %v2511_v50 = vpop.permute.xlu2 %2510 }
 0x1f8   : > { %v3179_v54 = vsel %vm3146_vm7, %v2404_v11, %v2511_v50 }
 0x1f9   : > { %v3633_v52 = vmax.f32 %v6776_v56, 0.0 }
 0x1fa   : > { %v2591_v26 = vpop.permute.xlu0 %2590 }
 0x1fb   : > { %3665 = vst [vmem:[%s6221_s8 + $0x80] sm:$0xff] %v3633_v52 }
 0x1fd   : > { %v2949_v6 = vpop.permute.xlu1 %2948 }
 0x1fe   : > { %v3579_v20 = vpop.f32.mrf.mxu2  ;;  %v3355_v34 = vsel %vm3327_vm12, %v3322_v32, %v2949_v6  ;;  %v2390_v32 = vunpack.c.l.b16 %v815_v29 }
 0x1ff   : > { %v6787_v46 = vadd.f32 %v6688_v57, %v3579_v20  ;;  %v3388_v55 = vsel %vm3360_vm13, %v3355_v34, %v3061_v13  ;;  %v2783_v3 = vpop.permute.xlu2 %2782  ;;  %v7122_v13 = vshll.u32 %v6433_v53, 16  ;;  %v3217_v20 = vsel %vm3195_vm8, %v3179_v54, %v2591_v26 }
 0x201   : > { %v3634_v62 = vmax.f32 %v6787_v46, 0.0  ;;  %v823_v36 = vor.u32 %v7122_v13, %v820_v15  ;;  %v7126_v15 = vshll.u32 %v6501_v12, 16  ;;  %v4700_v46 = vmov 0.0  }
 0x202   : > { %v2519_v19 = vpop.permute.xlu0 %2518  ;;  %423 = vst [vmem:[#allocation3] sm:$0x1] %v4700_v46 }
 0x203   : > { %3666 = vst [vmem:[%s6221_s8 + $0x88] sm:$0xff] %v3634_v62  ;;  %v824_v53 = vsel %vm4986_vm6, %v816_v63, %v823_v36  ;;  %v845_v11 = vor.u32 %v7126_v15, %v842_v28 }
 0x204   : > { %v2391_v51 = vunpack.c.l.b16 %v824_v53 }
 0x205   : > { %v3141_v24 = vpop.permute.xlu1 %3140  ;;  %v846_v25 = vsel %vm4986_vm6, %v838_v14, %v845_v11 }
 0x206   : > { %v3421_v7 = vsel %vm3393_vm14, %v3388_v55, %v3141_v24  ;;  %v2408_v22 = vpack.c.b16 %v2391_v51, %v2390_v32  ;;  %v488_v55 = vld [vmem:[#allocation2 + $0xf0] sm:$0xf] }
 0x207   : > { %4374 = vmatmul.msk.bf16.gmra.mxu3 %vm3426_vm15, %v3421_v7  ;;  %v826_v7 = vshrl.u32 %v488_v55, 16 }
 0x208   : > { %v3191_v1 = vsel %vm3146_vm7, %v2408_v22, %v2519_v19 }
 0x209   : > { %v3976_v19 = vrot.slane %v826_v7, 11 }
 0x20b   : > { %v2943_v35 = vpop.permute.xlu0 %2942  ;;  %v837_v16 = vsel %vm4986_vm6, %v3976_v19, %v836_v37 }
 0x20c   : > { %v2599_v48 = vpop.permute.xlu2 %2598  ;;  %v2392_v36 = vunpack.c.l.b16 %v837_v16 }
 0x20d   : > { %v2671_v39 = vpop.permute.xlu1 %2670  ;;  %v3225_v41 = vsel %vm3195_vm8, %v3191_v1, %v2599_v48 }
 0x20e   : > { %v3250_v59 = vsel %vm3228_vm9, %v3217_v20, %v2671_v39 }
 0x20f   : > { %v3283_v26 = vsel %vm3261_vm10, %v3250_v59, %v2783_v3 }
 0x213   : > { %v3557_v31 = vpop.f32.mrf.mxu1  ;;  %v2791_v50 = vpop.permute.xlu0 %2790 }
 0x214   : > { %v6820_v45 = vadd.f32 %v6688_v57, %v3557_v31  ;;  %v3055_v44 = vpop.permute.xlu2 %3054  ;;  %v2393_v31 = vunpack.c.l.b16 %v846_v25 }
 0x215   : > { %v2863_v6 = vpop.permute.xlu1 %2862 }
 0x216   : > { %v3625_v10 = vmax.f32 %v6820_v45, 0.0  ;;  %v3316_v9 = vsel %vm3294_vm11, %v3283_v26, %v2863_v6  ;;  %v2409_v29 = vpack.c.b16 %v2393_v31, %v2392_v36  ;;  %v4577_v36 = vld [vmem:[%s6221_s8 + $0x60] sm:$0xff] }
 0x217   : > { %v3349_v40 = vsel %vm3327_vm12, %v3316_v9, %v2943_v35 }
 0x218   : > { %3657 = vst [vmem:[%s6221_s8 + $0x40] sm:$0xff] %v3625_v10  ;;  %v3382_v3 = vsel %vm3360_vm13, %v3349_v40, %v3055_v44 }
 0x21b   : > { %v3559_v34 = vpop.f32.mrf.mxu1 }
 0x21c   : > { %v6833_v0 = vadd.f32 %v6688_v57, %v3559_v34  ;;  %v2871_v35 = vpop.permute.xlu2 %2870 }
 0x21d   : > { %v2679_v17 = vpop.permute.xlu1 %2678 }
 0x21e   : > { %v3626_v24 = vmax.f32 %v6833_v0, 0.0  ;;  %v3258_v2 = vsel %vm3228_vm9, %v3225_v41, %v2679_v17 }
 0x21f   : > { %v3291_v49 = vsel %vm3261_vm10, %v3258_v2, %v2791_v50 }
 0x220   : > { %3658 = vst [vmem:[%s6221_s8 + $0x48] sm:$0xff] %v3626_v24  ;;  %v3324_v38 = vsel %vm3294_vm11, %v3291_v49, %v2871_v35 }
 0x223   : > { %v2951_v42 = vpop.permute.xlu0 %2950 }
 0x224   : > { %v3357_v13 = vsel %vm3327_vm12, %v3324_v38, %v2951_v42 }
 0x225   : > { %v3135_v18 = vpop.permute.xlu1 %3134 }
 0x226   : > { %v3415_v39 = vsel %vm3393_vm14, %v3382_v3, %v3135_v18 }
 0x227   : > { %4371 = vmatmul.msk.bf16.gmra.mxu2 %vm3426_vm15, %v3415_v39 }
 0x22b   : > { %v2521_v54 = vpop.permute.xlu0 %2520 }
 0x22c   : > { %v3194_v51 = vsel %vm3146_vm7, %v2409_v29, %v2521_v54  ;;  %v4578_v54 = vld [vmem:[%s6221_s8 + $0x68] sm:$0xff] }
 0x22d   : > { %v3063_v63 = vpop.permute.xlu1 %3062  ;;  %v3597_v48 = vpop.f32.mrf.mxu3 }
 0x22e   : > { %v3390_v12 = vsel %vm3360_vm13, %v3357_v13, %v3063_v63  ;;  %v6865_v6 = vadd.f32 %v6688_v57, %v3597_v48  ;;  %v3143_v20 = vpop.permute.xlu2 %3142  ;;  %v7127_v48 = vmax.f32 %v6573_v60, 0.0 }
 0x22f   : > { %v3423_v33 = vsel %vm3393_vm14, %v3390_v12, %v3143_v20 }
 0x230   : > { %v3641_v53 = vmax.f32 %v6865_v6, 0.0  ;;  %4375 = vmatmul.msk.bf16.gmra.mxu3 %vm3426_vm15, %v3423_v33  ;;  %v4476_v6 = vld [vmem:[%s7025_s3 + $0x28] sm:$0xff] }
 0x232   : > { %3673 = vst [vmem:[%s6221_s8 + $0xc0] sm:$0xff] %v3641_v53  ;;  %v3552_v22 = vpop.f32.mrf.mxu0 }
 0x233   : > { %v2793_v50 = vpop.permute.xlu0 %2792  ;;  %v3553_v44 = vadd.f32 %v6688_v57, %v3552_v22 }
 0x235   : > { %v2601_v32 = vpop.permute.xlu1 %2600  ;;  %v3599_v59 = vpop.f32.mrf.mxu3  ;;  %v3623_v40 = vmax.f32 %v3553_v44, 0.0 }
 0x236   : > { %v6875_v34 = vadd.f32 %v6688_v57, %v3599_v59  ;;  %v3227_v17 = vsel %vm3195_vm8, %v3194_v51, %v2601_v32  ;;  %v2681_v26 = vpop.permute.xlu2 %2680 }
 0x237   : > { %v3260_v55 = vsel %vm3228_vm9, %v3227_v17, %v2681_v26  ;;  %3655 = vst [vmem:[%s6221_s8 + $0x30] sm:$0xff] %v3623_v40  ;;  %v3687_v47 = vadd.f32 %v6768_v30, %v3623_v40 }
 0x238   : > { %v3642_v9 = vmax.f32 %v6875_v34, 0.0  ;;  %v3293_v1 = vsel %vm3261_vm10, %v3260_v55, %v2793_v50  ;;  %v4474_v34 = vld [vmem:[%s7025_s3 + $0x18] sm:$0xff] }
 0x23a   : > { %3674 = vst [vmem:[%s6221_s8 + $0xc8] sm:$0xff] %v3642_v9  ;;  %v3554_v28 = vpop.f32.mrf.mxu0 }
 0x23b   : > { %v3555_v3 = vadd.f32 %v6688_v57, %v3554_v28  ;;  %v3065_v41 = vpop.permute.xlu0 %3064 }
 0x23d   : > { %v2873_v23 = vpop.permute.xlu1 %2872  ;;  %v3624_v42 = vmax.f32 %v3555_v3, 0.0  ;;  %v4478_v3 = vld [vmem:[%s7025_s3 + $0x38] sm:$0xff] }
 0x23e   : > { %v3326_v7 = vsel %vm3294_vm11, %v3293_v1, %v2873_v23  ;;  %v2953_v5 = vpop.permute.xlu2 %2952  ;;  %3792 = vmatpush.bf16.msrb.mxu1 %v4478_v3 }
 0x23f   : > { %v3359_v18 = vsel %vm3327_vm12, %v3326_v7, %v2953_v5  ;;  %3656 = vst [vmem:[%s6221_s8 + $0x38] sm:$0xff] %v3624_v42  ;;  %v3688_v37 = vadd.f32 %v3687_v47, %v3624_v42 }
 0x240   : > { %v3392_v39 = vsel %vm3360_vm13, %v3359_v18, %v3065_v41 }
 0x241   : > { %v3689_v2 = vadd.f32 %v3688_v37, %v3625_v10 }
 0x243   : > { %v3690_v19 = vadd.f32 %v3689_v2, %v3626_v24 }
 0x245   : > { %v3145_v4 = vpop.permute.xlu1 %3144 }
 0x246   : > { %v3425_v30 = vsel %vm3393_vm14, %v3392_v39, %v3145_v4 }
 0x247   : > { %4376 = vmatmul.msk.bf16.gmra.mxu3 %vm3426_vm15, %v3425_v30  ;;  %v4473_v30 = vld [vmem:[%s7025_s3 + $0x10] sm:$0xff] }
 0x26e   : > { %v3562_v14 = vpop.f32.mrf.mxu1 }
 0x26f   : > { %v3563_v15 = vadd.f32 %v6688_v57, %v3562_v14 }
 0x270   : > { %v3582_v35 = vpop.f32.mrf.mxu2 }
 0x271   : > { %v3627_v11 = vmax.f32 %v3563_v15, 0.0  ;;  %v3583_v49 = vadd.f32 %v6688_v57, %v3582_v35 }
 0x273   : > { %3659 = vst [vmem:[%s6221_s8 + $0x50] sm:$0xff] %v3627_v11  ;;  %v3635_v16 = vmax.f32 %v3583_v49, 0.0  ;;  %v3691_v10 = vadd.f32 %v3690_v19, %v3627_v11  ;;  %v4472_v19 = vld [vmem:[%s7025_s3 + $0x8] sm:$0xff] }
 0x275   : > { %3667 = vst [vmem:[%s6221_s8 + $0x90] sm:$0xff] %v3635_v16 }
 0x276   : > { %v3564_v25 = vpop.f32.mrf.mxu1 }
 0x277   : > { %v3565_v45 = vadd.f32 %v6688_v57, %v3564_v25 }
 0x278   : > { %v3584_v38 = vpop.f32.mrf.mxu2 }
 0x279   : > { %v3628_v0 = vmax.f32 %v3565_v45, 0.0  ;;  %v3585_v24 = vadd.f32 %v6688_v57, %v3584_v38 }
 0x27b   : > { %3660 = vst [vmem:[%s6221_s8 + $0x58] sm:$0xff] %v3628_v0  ;;  %v3692_v63 = vadd.f32 %v3691_v10, %v3628_v0  ;;  %v3636_v13 = vmax.f32 %v3585_v24, 0.0 }
 0x27d   : > { %v3693_v31 = vadd.f32 %v4577_v36, %v3692_v63  ;;  %3668 = vst [vmem:[%s6221_s8 + $0x98] sm:$0xff] %v3636_v13  ;;  %v3681_v63 = vld [vmem:[#allocation3] sm:$0x1] }
 0x27f   : > { %v3694_v12 = vadd.f32 %v4578_v54, %v3693_v31 }
 0x281   : > { %v3695_v20 = vadd.f32 %v3694_v12, %v7127_v48 }
 0x283   : > { %v3696_v29 = vadd.f32 %v3695_v20, %v3632_v8 }
 0x285   : > { %v3697_v33 = vadd.f32 %v3696_v29, %v3633_v52 }
 0x287   : > { %v3698_v32 = vadd.f32 %v3697_v33, %v3634_v62 }
 0x289   : > { %v3699_v51 = vadd.f32 %v3698_v32, %v3635_v16  ;;  %v4471_v16 = vld [vmem:[%s7025_s3] sm:$0xff] }
 0x28a   : > { %v3602_v59 = vpop.f32.mrf.mxu3 }
 0x28b   : > { %v3700_v50 = vadd.f32 %v3699_v51, %v3636_v13  ;;  %v3603_v17 = vadd.f32 %v6688_v57, %v3602_v59 }
 0x28d   : > { %v3643_v26 = vmax.f32 %v3603_v17, 0.0 }
 0x28f   : > { %3675 = vst [vmem:[%s6221_s8 + $0xd0] sm:$0xff] %v3643_v26 }
 0x292   : > { %v3604_v60 = vpop.f32.mrf.mxu3 }
 0x293   : > { %v3605_v22 = vadd.f32 %v6688_v57, %v3604_v60 }
 0x295   : > { %v3644_v21 = vmax.f32 %v3605_v22, 0.0 }
 0x297   : > { %3676 = vst [vmem:[%s6221_s8 + $0xd8] sm:$0xff] %v3644_v21 }
 0x2aa   : > { %v3587_v8 = vpop.f32.mrf.mxu2 }
 0x2ab   : > { %v3588_v56 = vadd.f32 %v6688_v57, %v3587_v8 }
 0x2ad   : > { %v3637_v52 = vmax.f32 %v3588_v56, 0.0 }
 0x2af   : > { %3669 = vst [vmem:[%s6221_s8 + $0xa0] sm:$0xff] %v3637_v52  ;;  %v3701_v55 = vadd.f32 %v3700_v50, %v3637_v52 }
 0x2b2   : > { %v3589_v62 = vpop.f32.mrf.mxu2 }
 0x2b3   : > { %v3590_v44 = vadd.f32 %v6688_v57, %v3589_v62  ;;  %v3607_v23 = vpop.f32.mrf.mxu3 }
 0x2b4   : > { %v3608_v1 = vadd.f32 %v6688_v57, %v3607_v23 }
 0x2b5   : > { %v3638_v40 = vmax.f32 %v3590_v44, 0.0 }
 0x2b6   : > { %v3645_v5 = vmax.f32 %v3608_v1, 0.0 }
 0x2b7   : > { %3670 = vst [vmem:[%s6221_s8 + $0xa8] sm:$0xff] %v3638_v40  ;;  %v3702_v47 = vadd.f32 %v3701_v55, %v3638_v40 }
 0x2b8   : > { %3677 = vst [vmem:[%s6221_s8 + $0xe0] sm:$0xff] %v3645_v5 }
 0x2b9   : > { %v3703_v7 = vadd.f32 %v3702_v47, %v3639_v27  ;;  %v4477_v27 = vld [vmem:[%s7025_s3 + $0x30] sm:$0xff] }
 0x2ba   : > { %3793 = vmatpush.bf16.msrb.mxu1 %v4477_v27 }
 0x2bb   : > { %v3704_v28 = vadd.f32 %v3703_v7, %v3640_v43  ;;  %v3609_v41 = vpop.f32.mrf.mxu3 }
 0x2bc   : > { %v3610_v58 = vadd.f32 %v6688_v57, %v3609_v41 }
 0x2bd   : > { %v3705_v18 = vadd.f32 %v3704_v28, %v3641_v53  ;;  %v4475_v53 = vld [vmem:[%s7025_s3 + $0x20] sm:$0xff] }
 0x2be   : > { %v3646_v43 = vmax.f32 %v3610_v58, 0.0  ;;  %3794 = vmatpush.bf16.msrb.mxu1 %v4476_v6 }
 0x2bf   : > { %v3706_v42 = vadd.f32 %v3705_v18, %v3642_v9 }
 0x2c0   : > { %3678 = vst [vmem:[%s6221_s8 + $0xe8] sm:$0xff] %v3646_v43 }
 0x2c1   : > { %v3707_v61 = vadd.f32 %v3706_v42, %v3643_v26 }
 0x2c2   : > { %3795 = vmatpush.bf16.msrb.mxu1 %v4475_v53 }
 0x2c3   : > { %v3708_v39 = vadd.f32 %v3707_v61, %v3644_v21 }
 0x2c5   : > { %v3709_v2 = vadd.f32 %v3708_v39, %v3645_v5 }
 0x2c6   : > { %3796 = vmatpush.bf16.msrb.mxu1 %v4474_v34 }
 0x2c7   : > { %v3710_v15 = vadd.f32 %v3709_v2, %v3646_v43 }
 0x2ca   : > { %v3612_v9 = vpop.f32.mrf.mxu3  ;;  %3797 = vmatpush.bf16.msrb.mxu1 %v4473_v30 }
 0x2cb   : > { %v3613_v4 = vadd.f32 %v6688_v57, %v3612_v9 }
 0x2cd   : > { %v3647_v37 = vmax.f32 %v3613_v4, 0.0 }
 0x2ce   : > { %3798 = vmatpush.bf16.msrb.mxu1 %v4472_v19 }
 0x2cf   : > { %3679 = vst [vmem:[%s6221_s8 + $0xf0] sm:$0xff] %v3647_v37  ;;  %v3711_v35 = vadd.f32 %v3710_v15, %v3647_v37 }
 0x2d2   : > { %v3614_v14 = vpop.f32.mrf.mxu3  ;;  %3799 = vmatpush.bf16.msrb.mxu1 %v4471_v16 }
 0x2d3   : > { %v3615_v11 = vadd.f32 %v6688_v57, %v3614_v14 }
 0x2d5   : > { %v3648_v49 = vmax.f32 %v3615_v11, 0.0 }
 0x2d7   : > { %3680 = vst [vmem:[%s6221_s8 + $0xf8] sm:$0xff] %v3648_v49  ;;  %v3712_v25 = vadd.f32 %v3711_v35, %v3648_v49 }
 0x2d9   : > { %v3713_v45 = vrot.slane %v3712_v25, 4 }
 0x2db   : > { %v3714_v10 = vadd.f32 %v3713_v45, %v3712_v25 }
 0x2dd   : > { %v3715_v0 = vrot.slane %v3714_v10, 2 }
 0x2df   : > { %v3716_v38 = vadd.f32 %v3715_v0, %v3714_v10 }
 0x2e1   : > { %v3717_v24 = vrot.slane %v3716_v38, 1 }
 0x2e3   : > { %v3718_v57 = vadd.f32 %v3717_v24, %v3716_v38 }
 0x2e5   : > { %v3719_v13 = vadd.f32 %v3718_v57, %v3681_v63 }
 0x2e7   : > { %3720 = vst [vmem:[#allocation3] sm:$0x1] %v3719_v13 }
 0x2ee   : > { %v3724_v36 = vld [vmem:[#allocation3] sm:$0x1] }
 0x2ef   : > { %v3725_v31 = vmul.f32 0.00390625, %v3724_v36 }
 0x2f1   : > { %v3726_v54 = vpack.c.bf16 %v3725_v31, %v3725_v31 }
 0x2f3   : > { %3800 = vmatmul.bf16.vlgmr.msrb.gmra.mxu1 %v3726_v54 }
 0x2f4   : > { %4606 = shalt.err (!%p4603_p5)
}
 0x2f5   : > { %s4701_s30 = smov 128   ;;  %s7128_s14 = smov 8   ;;  %v3743_v12 = vld [vmem:[%s7026_s4] sm:$0x1] }
 0x2f6   : > { %4504 = dma.vmem_to_hbm [thread:$0]  (%p4777_p4), %s3827_s13, 4096, %s3829_s16, %s3807_s17, %s4701_s30, %s4701_s30, %s7128_s14  }
 0x2f7   : > { %s3840_s27 = scalar_lea.hbm %s7028_s6, %s4681_s24  ;;  %s268_s18 = scalar_lea.vmem [#allocation6], %s6169_s12 }
 0x2f8   : > { %s3842_s19 = sshll.u32 %s268_s18, 4  ;;  %s3844_s20 = sshll.u32 %s3840_s27, 4  ;;  %s3843_s19 = int_to_ptr.vmem [resolvable:$true] %s3842_s19  ;;  %s3845_s20 = int_to_ptr.hbm [resolvable:$true] %s3844_s20 }
 0x2f9   : > { %s3812_s8 = scalar_lea.sflag [#allocation7], %s6169_s12  ;;  %s4621_s1 = sshra.s32 %s3845_s20, 4  ;;  %s4622_s1 = int_to_ptr.hbm [resolvable:$true] %s4621_s1 }
 0x2fa   : > { %s4623_s13 = scalar_lea.hbm %s4622_s1, 1  ;;  %s4627_s17 = scalar_lea.hbm %s7028_s6, 2 }
 0x2fb   : > { %p4624_p6 = scmp.ne.s32.totalorder %s4622_s1, %s4623_s13  ;;  %p4628_p10 = scmp.lt.s32.totalorder %s4622_s1, %s7028_s6 }
 0x2fc   : > { %p4629_p11 = scmp.lt.s32.totalorder %s4627_s17, %s4623_s13 }
 0x2fd   : > { %p4625_p7 = pnand %p4624_p6, %p4777_p4 }
 0x2fe   : > { %p4630_p12 = por %p4629_p11, %p4628_p10 }
 0x2ff   : > { %p4626_p9 = pneg %p4625_p7 }
 0x301   : > { %p4631_p13 = pnand %p4630_p12, %p4626_p9 }
 0x370   : > { %v3801_v48 = vpop.f32.mrf.mxu1 }
 0x371   : > { %v3802_v20 = vadd.f32 %v3801_v48, %v3743_v12 }
 0x373   : > { %3805 = vst [vmem:[%s268_s18] sm:$0x1] %v3802_v20 }
 0x374   : > { %4634 = shalt.err (!%p4631_p13)
}
 0x375   : > { %4505 = dma.vmem_to_hbm [thread:$0]  (%p4777_p4), %s3843_s19, 16, %s3845_s20, %s3812_s8  }
 0x378   : > { %v3803_v29 = vpop.f32.mrf.mxu1 }
 0x379 PF: > { %p4515_p0 = scmp.ge.s32.totalorder %s4689_s26, 2  ;;  %s3856_s12 = sand.u32 1, %s4669_s21  }
 0x37a   : > { %s3857_s15 = scalar_lea.sflag [#allocation5], %s3856_s12 }
 0x37b   : > { %p4509_p1 = pnand %p4515_p0, %p4784_p8 }
 0x37d   : > { %p4510_p2 = pneg %p4509_p1 }
 0x37f   : > { %4660 = dma.done.wait (%p4510_p2), %s3857_s15, 4096  }
 0x380   : > { %4662 = vsyncadd (%p4510_p2), %s3857_s15, 4294963200  ;;  %s3867_s1 = scalar_lea.sflag [#allocation7], %s3856_s12 }
 0x381   : > { %4664 = dma.done.wait (%p4510_p2), %s3867_s1, 16  }
 0x382   : > { %4666 = vsyncadd (%p4510_p2), %s3867_s1, 4294967280  ;;  %s23_s26 = sadd.s32 1, %s4689_s26   ;;  %s7129_s21 = smov %s4673_s22 }
 0x383   : > { %p20_p3 = scmp.ge.s32.totalorder %s23_s26, 4   ;;  %s7130_s22 = smov %s4677_s23 }
 0x384   : > { %s7131_s23 = smov %s4790_s10  ;;  %s7132_s24 = smov %s4685_s25 }
 0x385   : > { %s7133_s25 = smov %s7135_s29  ;;  %22 = sbr.rel (!%p20_p3) target bundleno = 9 (0x9), region = 105 }
 0x38a   :  { %3872 = vsyncpa [#allocation5], 1 }
 0x38b   :  { %3874 = vsyncpa [#allocation5 + $0x1], 1 }
 0x38c   :  { %3875 = vsyncpa [#allocation7], 1 }
 0x38d   :  { %3877 = vsyncpa [#allocation7 + $0x1], 1 }

</bundles_post_ra>
